<compile_context>
chip_gen: v7x
topology: tpu7x:2x2x1
jax: 0.10.0
libtpu: 0.0.40
codegen_flags: <defaults>
</compile_context>

<pallas_src>
import functools

import jax
import jax.numpy as jnp
from jax.experimental import pallas as pl
from jax.experimental.pallas import tpu as pltpu


# ---------------------------------------------------------------------------
# The single fused kernel.
# ---------------------------------------------------------------------------
def _onset_kernel(shift_ref, x_ref, x1_ref,
                  fm_m1_ref, fm_0_ref, fm_p1_ref, rm1_ref, rp1_ref,
                  se_ref, so_ref, prev_ref,
                  *rest, B, T, F, H, L, n_pre, n_post):
    lstm_refs = rest[:4 * L]
    (indw1_ref, w1x_ref, b1_ref, selb_ref,
     w2t_ref, b2_ref, w3t_ref, b3_ref) = rest[4 * L:4 * L + 8]
    out_ref = rest[4 * L + 8]
    ybuf_f, ybuf_b = rest[4 * L + 9], rest[4 * L + 10]

    f32 = jnp.float32
    shift = shift_ref[0]                     # folded conv_bias*bn_scale + bn_shift
    rm1 = rm1_ref[...]                       # (W, W) time-shift t-1
    rp1 = rp1_ref[...]                       # (W, W) time-shift t+1

    def conv_bn_relu(x, hc):
        # 3x3 'same' conv + eval-mode BN + ReLU on an (T*B, hc) slab.
        # feature-axis taps -> tridiagonal FM matrices (bn_scale folded in),
        # time-axis taps    -> band matrices R (per-batch 'same' padding is
        # automatic because all batches share the time boundaries).
        t_m1 = jnp.dot(x, fm_m1_ref[0:hc, 0:hc], preferred_element_type=f32)
        t_0 = jnp.dot(x, fm_0_ref[0:hc, 0:hc], preferred_element_type=f32)
        t_p1 = jnp.dot(x, fm_p1_ref[0:hc, 0:hc], preferred_element_type=f32)
        acc = (jnp.dot(rm1, t_m1, preferred_element_type=f32) + t_0
               + jnp.dot(rp1, t_p1, preferred_element_type=f32))
        return jnp.maximum(acc + shift, 0.0)

    # ---- 3x (conv + BN + ReLU) on the spectrogram slab (T*B, F) -------------
    a = x_ref[...]
    for _ in range(n_pre):
        a = conv_bn_relu(a, F)

    # ---- bidirectional multi-layer LSTM (rows t*B + b) -----------------------
    # TODO(synk): inter-layer LSTM dropout (p=0.5) and all nn.Dropout layers are
    # identity here (inference mode); BatchNorm2d uses running statistics.
    prev = prev_ref[...]                     # (W, W) time-reversal permutation
    x_l = a
    for l in range(L):
        wf_ref, wb_ref, whh_ref, bias_ref = lstm_refs[4 * l:4 * (l + 1)]
        # Hoisted input projection (both directions) + gate bias, off the
        # serial recurrence critical path.
        xr = jnp.dot(prev, x_l, preferred_element_type=f32)
        xw = (jnp.dot(x_l, wf_ref[...], preferred_element_type=f32)
              + jnp.dot(xr, wb_ref[...], preferred_element_type=f32)
              + bias_ref[...])               # (T*B, 8H), gate cols interleaved
        whh = whh_ref[...]                   # (2H, 8H) block-diagonal
        h = jnp.zeros((B, 2 * H), f32)       # [h_fwd | h_bwd]
        c = jnp.zeros((B, 2 * H), f32)
        for s in range(T):                   # fully unrolled, static indices
            g = xw[s * B:(s + 1) * B, :] + jnp.dot(
                h, whh, preferred_element_type=f32)
            sg = jax.nn.sigmoid(g[:, 0:6 * H])       # [i_f i_b f_f f_b o_f o_b]
            gg = jnp.tanh(g[:, 6 * H:8 * H])         # [g_f g_b]
            c = sg[:, 2 * H:4 * H] * c + sg[:, 0:2 * H] * gg
            h = sg[:, 4 * H:6 * H] * jnp.tanh(c)
            ybuf_f[s * B:(s + 1) * B, :] = h[:, 0:H]              # fwd @ t = s
            ybuf_b[(T - 1 - s) * B:(T - s) * B, :] = h[:, H:2 * H]  # bwd @ t = T-1-s
        x_l = jnp.concatenate([ybuf_f[...], ybuf_b[...]], axis=1)  # (T*B, 2H)

    # ---- 6x (conv + BN + ReLU + MaxPool((2,1))) -------------------------------
    z = x_l
    hc = 2 * H
    for _ in range(n_post):
        y = conv_bn_relu(z, hc)
        half = hc // 2
        if half >= 2:
            z = jnp.maximum(
                jnp.dot(y, se_ref[0:hc, 0:half], preferred_element_type=f32),
                jnp.dot(y, so_ref[0:hc, 0:half], preferred_element_type=f32))
        else:
            z = jnp.maximum(y[:, 0:1], y[:, 1:2])
        hc = half
    # z: (T*B, 1) with z[t*B + b, 0] == flattened feature for (b, t).

    # ---- flatten + concat(x1) + fc1 -> fc2 -> fc3 -----------------------------
    # flat @ fc1_w[:, :T].T is folded into (selb @ (z * indw1)); the x1 column
    # of fc1 is a broadcast multiply.
    z1 = (jnp.dot(selb_ref[...], z * indw1_ref[...], preferred_element_type=f32)
          + x1_ref[...] * w1x_ref[...] + b1_ref[...])
    z2 = jnp.dot(z1, w2t_ref[...], preferred_element_type=f32) + b2_ref[...]
    out_ref[...] = (jnp.dot(z2, w3t_ref[...], preferred_element_type=f32)
                    + b3_ref[...])


def _onset_pallas(packed, x_in, x1, *, B, T, F, H, L, n_pre=3, n_post=6):
    W = T * B
    args = [packed["t_shift"], x_in, x1,
            packed["fm_m1"], packed["fm_0"], packed["fm_p1"],
            packed["r_m1"], packed["r_p1"], packed["se"], packed["so"],
            packed["prev"]]
    for lp in packed["lstm"]:
        args += [lp["wf"], lp["wb"], lp["whh"], lp["bias"]]
    args += [packed["indw1"], packed["w1x"], packed["b1"], packed["selb"],
             packed["w2t"], packed["b2"], packed["w3t"], packed["b3"]]
    kernel = functools.partial(_onset_kernel, B=B, T=T, F=F, H=H, L=L,
                               n_pre=n_pre, n_post=n_post)
    in_specs = ([pl.BlockSpec(memory_space=pltpu.MemorySpace.SMEM)]
                + [pl.BlockSpec(memory_space=pltpu.MemorySpace.VMEM)]
                * (len(args) - 1))
    return pl.pallas_call(
        kernel,
        out_shape=jax.ShapeDtypeStruct((B, T), jnp.float32),
        in_specs=in_specs,
        out_specs=pl.BlockSpec(memory_space=pltpu.MemorySpace.VMEM),
        scratch_shapes=[pltpu.VMEM((W, H), jnp.float32),
                        pltpu.VMEM((W, H), jnp.float32)],
    )(*args)


# ---------------------------------------------------------------------------
# Parameters (deterministic, in-script), one-time packing, and forward pass.
# ---------------------------------------------------------------------------
def init_params(key, input_size, hidden_size, num_layers, sequence_length):
    keys = iter(jax.random.split(key, 64))
    p = {}
    p["conv_w"] = jax.random.normal(next(keys), (3, 3), jnp.float32) * 0.2
    p["conv_b"] = jax.random.normal(next(keys), (1,), jnp.float32) * 0.1
    # BatchNorm2d(1), eval mode with fresh-init buffers.
    p["bn_gamma"] = jnp.ones((1,), jnp.float32)
    p["bn_beta"] = jnp.zeros((1,), jnp.float32)
    p["bn_mean"] = jnp.zeros((1,), jnp.float32)
    p["bn_var"] = jnp.ones((1,), jnp.float32)
    lstm = []
    for layer_idx in range(num_layers):
        in_dim = input_size if layer_idx == 0 else 2 * hidden_size
        layer = {}
        for d in ("fwd", "bwd"):
            layer[d] = dict(
                wih=jax.random.normal(next(keys), (4 * hidden_size, in_dim),
                                      jnp.float32) * 0.1,
                whh=jax.random.normal(next(keys), (4 * hidden_size, hidden_size),
                                      jnp.float32) * 0.1,
                bih=jax.random.normal(next(keys), (4 * hidden_size,),
                                      jnp.float32) * 0.1,
                bhh=jax.random.normal(next(keys), (4 * hidden_size,),
                                      jnp.float32) * 0.1,
            )
        lstm.append(layer)
    p["lstm"] = lstm
    p["fc1_w"] = jax.random.normal(next(keys), (hidden_size, sequence_length + 1),
                                   jnp.float32) * 0.1
    p["fc1_b"] = jax.random.normal(next(keys), (hidden_size,), jnp.float32) * 0.1
    p["fc2_w"] = jax.random.normal(next(keys), (hidden_size, hidden_size),
                                   jnp.float32) * 0.1
    p["fc2_b"] = jax.random.normal(next(keys), (hidden_size,), jnp.float32) * 0.1
    p["fc3_w"] = jax.random.normal(next(keys), (sequence_length, hidden_size),
                                   jnp.float32) * 0.1
    p["fc3_b"] = jax.random.normal(next(keys), (sequence_length,), jnp.float32) * 0.1
    return p


def pack_params(params, *, B, T, F, H, L, n_post=6):
    """One-time packing of all weights into kernel-friendly matrices."""
    assert 2 * H == (1 << n_post), (
        "flatten->fc1 only matches when 2*hidden collapses to one row after "
        f"{n_post} MaxPool2d((2,1)) layers (got 2*hidden={2 * H})")
    eps = 1e-5
    scale = params["bn_gamma"][0] / jnp.sqrt(params["bn_var"][0] + eps)
    shift0 = params["bn_beta"][0] - params["bn_mean"][0] * scale
    t_shift = jnp.reshape(params["conv_b"][0] * scale + shift0, (1,)).astype(jnp.float32)

    K = params["conv_w"].astype(jnp.float32)          # (kH over features, kW over time)
    W = T * B
    cmax = max(F, 2 * H)

    def diag(n, k, v):
        return v * jnp.eye(n, n, k=k, dtype=jnp.float32)

    # FM_dt[j, c] = K[(j - c) + 1, dt + 1] * bn_scale  (tridiagonal, nests on slicing)
    fms = []
    for dt in (-1, 0, 1):
        fms.append((diag(cmax, 1, K[0, dt + 1]) + diag(cmax, 0, K[1, dt + 1])
                    + diag(cmax, -1, K[2, dt + 1])) * scale)
    fm_m1, fm_0, fm_p1 = fms
    r_m1 = jnp.eye(W, W, k=-B, dtype=jnp.float32)      # rows -> time t-1
    r_p1 = jnp.eye(W, W, k=+B, dtype=jnp.float32)      # rows -> time t+1

    half = cmax // 2
    ii = jnp.arange(half)
    se = jnp.zeros((cmax, half), jnp.float32).at[2 * ii, ii].set(1.0)
    so = jnp.zeros((cmax, half), jnp.float32).at[2 * ii + 1, ii].set(1.0)

    rows = jnp.arange(W)
    rev = (T - 1 - rows // B) * B + rows % B
    prev = jnp.zeros((W, W), jnp.float32).at[rows, rev].set(1.0)

    def gate_blocks(wih, whh, bih, bhh):
        # PyTorch gate row order: i, f, g, o.  Return (i, f, o, g) blocks.
        wi, wf, wg, wo = wih[0:H], wih[H:2 * H], wih[2 * H:3 * H], wih[3 * H:4 * H]
        ui, uf, ug, uo = whh[0:H], whh[H:2 * H], whh[2 * H:3 * H], whh[3 * H:4 * H]
        b = bih + bhh
        bi, bf, bg, bo = b[0:H], b[H:2 * H], b[2 * H:3 * H], b[3 * H:4 * H]
        return (wi.T, wf.T, wo.T, wg.T), (ui.T, uf.T, uo.T, ug.T), (bi, bf, bo, bg)

    lstm_packed = []
    for l in range(L):
        in_dim = F if l == 0 else 2 * H
        fw, bw = params["lstm"][l]["fwd"], params["lstm"][l]["bwd"]
        (fwi, fwf, fwo, fwg), (fui, fuf, fuo, fug), (fbi, fbf, fbo, fbg) = gate_blocks(
            fw["wih"], fw["whh"], fw["bih"], fw["bhh"])
        (bwi, bwf, bwo, bwg), (bui, buf_, buo, bug), (bbi, bbf, bbo, bbg) = gate_blocks(
            bw["wih"], bw["whh"], bw["bih"], bw["bhh"])
        zI = jnp.zeros((in_dim, H), jnp.float32)
        zH = jnp.zeros((H, H), jnp.float32)
        # column layout (8 blocks of width H): [i_f, i_b, f_f, f_b, o_f, o_b, g_f, g_b]
        wf_pack = jnp.concatenate([fwi, zI, fwf, zI, fwo, zI, fwg, zI], axis=1)
        wb_pack = jnp.concatenate([zI, bwi, zI, bwf, zI, bwo, zI, bwg], axis=1)
        whh_pack = jnp.concatenate([
            jnp.concatenate([fui, zH, fuf, zH, fuo, zH, fug, zH], axis=1),
            jnp.concatenate([zH, bui, zH, buf_, zH, buo, zH, bug], axis=1)], axis=0)
        bias_pack = jnp.concatenate(
            [fbi, bbi, fbf, bbf, fbo, bbo, fbg, bbg]).reshape(1, 8 * H)
        lstm_packed.append(dict(wf=wf_pack, wb=wb_pack, whh=whh_pack, bias=bias_pack))

    w1t = params["fc1_w"].T.astype(jnp.float32)        # (T+1, H)
    packed = dict(
        t_shift=t_shift, fm_m1=fm_m1, fm_0=fm_0, fm_p1=fm_p1,
        r_m1=r_m1, r_p1=r_p1, se=se, so=so, prev=prev, lstm=lstm_packed,
        indw1=jnp.repeat(w1t[0:T, :], B, axis=0),      # (T*B, H): row r -> fc1 col r//B
        w1x=w1t[T:T + 1, :],                           # fc1 column for x1
        b1=params["fc1_b"].reshape(1, H),
        selb=(rows[None, :] % B == jnp.arange(B)[:, None]).astype(jnp.float32),
        w2t=params["fc2_w"].T.astype(jnp.float32),
        b2=params["fc2_b"].reshape(1, H),
        w3t=params["fc3_w"].T.astype(jnp.float32),
        b3=params["fc3_b"].reshape(1, T),
    )
    return packed


def onset_detector_forward(packed, x0, x1):
    # x0: (B, 1, F, T) NCHW spectrogram, x1: (B, 1) extra scalar feature.
    B, _, F, T = x0.shape
    H = packed["b1"].shape[1]
    L = len(packed["lstm"])
    # Single tiny layout op: (B,1,F,T) -> (T*B, F) with row index t*B + b.
    x_in = jnp.transpose(x0[:, 0], (2, 0, 1)).reshape(T * B, F).astype(jnp.float32)
    return _onset_pallas(packed, x_in, x1.astype(jnp.float32),
                         B=B, T=T, F=F, H=H, L=L)


if __name__ == "__main__":
    B = 2
    INPUT_SIZE = 16     # frequency bins F = LSTM input_size
    HIDDEN_SIZE = 32    # D*H = 64 -> exactly 1 row left after six (2,1) maxpools
    NUM_LAYERS = 2
    SEQ_LEN = 8         # time frames T = sequence_length

    key = jax.random.PRNGKey(0)
    k_params, k_x0, k_x1 = jax.random.split(key, 3)
    params = init_params(k_params, INPUT_SIZE, HIDDEN_SIZE, NUM_LAYERS, SEQ_LEN)
    packed = pack_params(params, B=B, T=SEQ_LEN, F=INPUT_SIZE, H=HIDDEN_SIZE,
                         L=NUM_LAYERS)
    x0 = jax.random.normal(k_x0, (B, 1, INPUT_SIZE, SEQ_LEN), jnp.float32)
    x1 = jax.random.normal(k_x1, (B, 1), jnp.float32)

    out = jax.jit(onset_detector_forward)(packed, x0, x1)
    out = jax.block_until_ready(out)
    assert out.shape == (B, SEQ_LEN), out.shape
    assert bool(jnp.all(jnp.isfinite(out)))
    print("KERNEL_OK")
</pallas_src>

<mosaic_0001>
module attributes {stable_mosaic.version = 11 : i64} {
  func.func @_onset_kernel(%arg0: memref<1xf32, #tpu.memory_space<smem>>, %arg1: memref<16x16xf32, #tpu.memory_space<vmem>>, %arg2: memref<2x1xf32, #tpu.memory_space<vmem>>, %arg3: memref<64x64xf32, #tpu.memory_space<vmem>>, %arg4: memref<64x64xf32, #tpu.memory_space<vmem>>, %arg5: memref<64x64xf32, #tpu.memory_space<vmem>>, %arg6: memref<16x16xf32, #tpu.memory_space<vmem>>, %arg7: memref<16x16xf32, #tpu.memory_space<vmem>>, %arg8: memref<64x32xf32, #tpu.memory_space<vmem>>, %arg9: memref<64x32xf32, #tpu.memory_space<vmem>>, %arg10: memref<16x16xf32, #tpu.memory_space<vmem>>, %arg11: memref<16x256xf32, #tpu.memory_space<vmem>>, %arg12: memref<16x256xf32, #tpu.memory_space<vmem>>, %arg13: memref<64x256xf32, #tpu.memory_space<vmem>>, %arg14: memref<1x256xf32, #tpu.memory_space<vmem>>, %arg15: memref<64x256xf32, #tpu.memory_space<vmem>>, %arg16: memref<64x256xf32, #tpu.memory_space<vmem>>, %arg17: memref<64x256xf32, #tpu.memory_space<vmem>>, %arg18: memref<1x256xf32, #tpu.memory_space<vmem>>, %arg19: memref<16x32xf32, #tpu.memory_space<vmem>>, %arg20: memref<1x32xf32, #tpu.memory_space<vmem>>, %arg21: memref<1x32xf32, #tpu.memory_space<vmem>>, %arg22: memref<2x16xf32, #tpu.memory_space<vmem>>, %arg23: memref<32x32xf32, #tpu.memory_space<vmem>>, %arg24: memref<1x32xf32, #tpu.memory_space<vmem>>, %arg25: memref<32x8xf32, #tpu.memory_space<vmem>>, %arg26: memref<1x8xf32, #tpu.memory_space<vmem>>, %arg27: memref<2x8xf32, #tpu.memory_space<vmem>>, %arg28: memref<16x32xf32, #tpu.memory_space<vmem>>, %arg29: memref<16x32xf32, #tpu.memory_space<vmem>>) attributes {dimension_semantics = [], scalar_prefetch = 0 : i64, scratch_operands = 2 : i64, tpu.core_type = #tpu.core_type<tc>} {
    %c0 = arith.constant 0 : index
    %0 = memref.load %arg0[%c0] : memref<1xf32, #tpu.memory_space<smem>>
    %c0_0 = arith.constant 0 : index
    %c0_1 = arith.constant 0 : index
    %1 = vector.load %arg6[%c0_0, %c0_1] : memref<16x16xf32, #tpu.memory_space<vmem>>, vector<16x16xf32>
    %c0_2 = arith.constant 0 : index
    %c0_3 = arith.constant 0 : index
    %2 = vector.load %arg7[%c0_2, %c0_3] : memref<16x16xf32, #tpu.memory_space<vmem>>, vector<16x16xf32>
    %c0_4 = arith.constant 0 : index
    %c0_5 = arith.constant 0 : index
    %3 = vector.load %arg1[%c0_4, %c0_5] : memref<16x16xf32, #tpu.memory_space<vmem>>, vector<16x16xf32>
    %c0_6 = arith.constant 0 : index
    %c0_7 = arith.constant 0 : index
    %4 = vector.load %arg3[%c0_6, %c0_7] : memref<64x64xf32, #tpu.memory_space<vmem>>, vector<16x16xf32>
    %cst = arith.constant dense<0.000000e+00> : vector<16x16xf32>
    %5 = tpu.matmul %3, %4, %cst {dimension_numbers = #tpu.dot_dimension_numbers<[1], [0], [0], [1], [0, 0, 1, 1], [], []>} : vector<16x16xf32>, vector<16x16xf32>, vector<16x16xf32> -> vector<16x16xf32>
    %c0_8 = arith.constant 0 : index
    %c0_9 = arith.constant 0 : index
    %6 = vector.load %arg4[%c0_8, %c0_9] : memref<64x64xf32, #tpu.memory_space<vmem>>, vector<16x16xf32>
    %cst_10 = arith.constant dense<0.000000e+00> : vector<16x16xf32>
    %7 = tpu.matmul %3, %6, %cst_10 {dimension_numbers = #tpu.dot_dimension_numbers<[1], [0], [0], [1], [0, 0, 1, 1], [], []>} : vector<16x16xf32>, vector<16x16xf32>, vector<16x16xf32> -> vector<16x16xf32>
    %c0_11 = arith.constant 0 : index
    %c0_12 = arith.constant 0 : index
    %8 = vector.load %arg5[%c0_11, %c0_12] : memref<64x64xf32, #tpu.memory_space<vmem>>, vector<16x16xf32>
    %cst_13 = arith.constant dense<0.000000e+00> : vector<16x16xf32>
    %9 = tpu.matmul %3, %8, %cst_13 {dimension_numbers = #tpu.dot_dimension_numbers<[1], [0], [0], [1], [0, 0, 1, 1], [], []>} : vector<16x16xf32>, vector<16x16xf32>, vector<16x16xf32> -> vector<16x16xf32>
    %cst_14 = arith.constant dense<0.000000e+00> : vector<16x16xf32>
    %10 = tpu.matmul %1, %5, %cst_14 {dimension_numbers = #tpu.dot_dimension_numbers<[1], [0], [0], [1], [0, 0, 1, 1], [], []>} : vector<16x16xf32>, vector<16x16xf32>, vector<16x16xf32> -> vector<16x16xf32>
    %11 = arith.addf %10, %7 : vector<16x16xf32>
    %cst_15 = arith.constant dense<0.000000e+00> : vector<16x16xf32>
    %12 = tpu.matmul %2, %9, %cst_15 {dimension_numbers = #tpu.dot_dimension_numbers<[1], [0], [0], [1], [0, 0, 1, 1], [], []>} : vector<16x16xf32>, vector<16x16xf32>, vector<16x16xf32> -> vector<16x16xf32>
    %13 = arith.addf %11, %12 : vector<16x16xf32>
    %14 = vector.broadcast %0 : f32 to vector<16x16xf32>
    %15 = arith.addf %13, %14 : vector<16x16xf32>
    %cst_16 = arith.constant 0.000000e+00 : f32
    %16 = vector.broadcast %cst_16 : f32 to vector<16x16xf32>
    %17 = arith.maximumf %15, %16 : vector<16x16xf32>
    %c0_17 = arith.constant 0 : index
    %c0_18 = arith.constant 0 : index
    %18 = vector.load %arg3[%c0_17, %c0_18] : memref<64x64xf32, #tpu.memory_space<vmem>>, vector<16x16xf32>
    %cst_19 = arith.constant dense<0.000000e+00> : vector<16x16xf32>
    %19 = tpu.matmul %17, %18, %cst_19 {dimension_numbers = #tpu.dot_dimension_numbers<[1], [0], [0], [1], [0, 0, 1, 1], [], []>} : vector<16x16xf32>, vector<16x16xf32>, vector<16x16xf32> -> vector<16x16xf32>
    %c0_20 = arith.constant 0 : index
    %c0_21 = arith.constant 0 : index
    %20 = vector.load %arg4[%c0_20, %c0_21] : memref<64x64xf32, #tpu.memory_space<vmem>>, vector<16x16xf32>
    %cst_22 = arith.constant dense<0.000000e+00> : vector<16x16xf32>
    %21 = tpu.matmul %17, %20, %cst_22 {dimension_numbers = #tpu.dot_dimension_numbers<[1], [0], [0], [1], [0, 0, 1, 1], [], []>} : vector<16x16xf32>, vector<16x16xf32>, vector<16x16xf32> -> vector<16x16xf32>
    %c0_23 = arith.constant 0 : index
    %c0_24 = arith.constant 0 : index
    %22 = vector.load %arg5[%c0_23, %c0_24] : memref<64x64xf32, #tpu.memory_space<vmem>>, vector<16x16xf32>
    %cst_25 = arith.constant dense<0.000000e+00> : vector<16x16xf32>
    %23 = tpu.matmul %17, %22, %cst_25 {dimension_numbers = #tpu.dot_dimension_numbers<[1], [0], [0], [1], [0, 0, 1, 1], [], []>} : vector<16x16xf32>, vector<16x16xf32>, vector<16x16xf32> -> vector<16x16xf32>
    %cst_26 = arith.constant dense<0.000000e+00> : vector<16x16xf32>
    %24 = tpu.matmul %1, %19, %cst_26 {dimension_numbers = #tpu.dot_dimension_numbers<[1], [0], [0], [1], [0, 0, 1, 1], [], []>} : vector<16x16xf32>, vector<16x16xf32>, vector<16x16xf32> -> vector<16x16xf32>
    %25 = arith.addf %24, %21 : vector<16x16xf32>
    %cst_27 = arith.constant dense<0.000000e+00> : vector<16x16xf32>
    %26 = tpu.matmul %2, %23, %cst_27 {dimension_numbers = #tpu.dot_dimension_numbers<[1], [0], [0], [1], [0, 0, 1, 1], [], []>} : vector<16x16xf32>, vector<16x16xf32>, vector<16x16xf32> -> vector<16x16xf32>
    %27 = arith.addf %25, %26 : vector<16x16xf32>
    %28 = vector.broadcast %0 : f32 to vector<16x16xf32>
    %29 = arith.addf %27, %28 : vector<16x16xf32>
    %cst_28 = arith.constant 0.000000e+00 : f32
    %30 = vector.broadcast %cst_28 : f32 to vector<16x16xf32>
    %31 = arith.maximumf %29, %30 : vector<16x16xf32>
    %c0_29 = arith.constant 0 : index
    %c0_30 = arith.constant 0 : index
    %32 = vector.load %arg3[%c0_29, %c0_30] : memref<64x64xf32, #tpu.memory_space<vmem>>, vector<16x16xf32>
    %cst_31 = arith.constant dense<0.000000e+00> : vector<16x16xf32>
    %33 = tpu.matmul %31, %32, %cst_31 {dimension_numbers = #tpu.dot_dimension_numbers<[1], [0], [0], [1], [0, 0, 1, 1], [], []>} : vector<16x16xf32>, vector<16x16xf32>, vector<16x16xf32> -> vector<16x16xf32>
    %c0_32 = arith.constant 0 : index
    %c0_33 = arith.constant 0 : index
    %34 = vector.load %arg4[%c0_32, %c0_33] : memref<64x64xf32, #tpu.memory_space<vmem>>, vector<16x16xf32>
    %cst_34 = arith.constant dense<0.000000e+00> : vector<16x16xf32>
    %35 = tpu.matmul %31, %34, %cst_34 {dimension_numbers = #tpu.dot_dimension_numbers<[1], [0], [0], [1], [0, 0, 1, 1], [], []>} : vector<16x16xf32>, vector<16x16xf32>, vector<16x16xf32> -> vector<16x16xf32>
    %c0_35 = arith.constant 0 : index
    %c0_36 = arith.constant 0 : index
    %36 = vector.load %arg5[%c0_35, %c0_36] : memref<64x64xf32, #tpu.memory_space<vmem>>, vector<16x16xf32>
    %cst_37 = arith.constant dense<0.000000e+00> : vector<16x16xf32>
    %37 = tpu.matmul %31, %36, %cst_37 {dimension_numbers = #tpu.dot_dimension_numbers<[1], [0], [0], [1], [0, 0, 1, 1], [], []>} : vector<16x16xf32>, vector<16x16xf32>, vector<16x16xf32> -> vector<16x16xf32>
    %cst_38 = arith.constant dense<0.000000e+00> : vector<16x16xf32>
    %38 = tpu.matmul %1, %33, %cst_38 {dimension_numbers = #tpu.dot_dimension_numbers<[1], [0], [0], [1], [0, 0, 1, 1], [], []>} : vector<16x16xf32>, vector<16x16xf32>, vector<16x16xf32> -> vector<16x16xf32>
    %39 = arith.addf %38, %35 : vector<16x16xf32>
    %cst_39 = arith.constant dense<0.000000e+00> : vector<16x16xf32>
    %40 = tpu.matmul %2, %37, %cst_39 {dimension_numbers = #tpu.dot_dimension_numbers<[1], [0], [0], [1], [0, 0, 1, 1], [], []>} : vector<16x16xf32>, vector<16x16xf32>, vector<16x16xf32> -> vector<16x16xf32>
    %41 = arith.addf %39, %40 : vector<16x16xf32>
    %42 = vector.broadcast %0 : f32 to vector<16x16xf32>
    %43 = arith.addf %41, %42 : vector<16x16xf32>
    %cst_40 = arith.constant 0.000000e+00 : f32
    %44 = vector.broadcast %cst_40 : f32 to vector<16x16xf32>
    %45 = arith.maximumf %43, %44 : vector<16x16xf32>
    %c0_41 = arith.constant 0 : index
    %c0_42 = arith.constant 0 : index
    %46 = vector.load %arg10[%c0_41, %c0_42] : memref<16x16xf32, #tpu.memory_space<vmem>>, vector<16x16xf32>
    %cst_43 = arith.constant dense<0.000000e+00> : vector<16x16xf32>
    %47 = tpu.matmul %46, %45, %cst_43 {dimension_numbers = #tpu.dot_dimension_numbers<[1], [0], [0], [1], [0, 0, 1, 1], [], []>} : vector<16x16xf32>, vector<16x16xf32>, vector<16x16xf32> -> vector<16x16xf32>
    %c0_44 = arith.constant 0 : index
    %c0_45 = arith.constant 0 : index
    %48 = vector.load %arg11[%c0_44, %c0_45] : memref<16x256xf32, #tpu.memory_space<vmem>>, vector<16x256xf32>
    %cst_46 = arith.constant dense<0.000000e+00> : vector<16x256xf32>
    %49 = tpu.matmul %45, %48, %cst_46 {dimension_numbers = #tpu.dot_dimension_numbers<[1], [0], [0], [1], [0, 0, 1, 1], [], []>} : vector<16x16xf32>, vector<16x256xf32>, vector<16x256xf32> -> vector<16x256xf32>
    %c0_47 = arith.constant 0 : index
    %c0_48 = arith.constant 0 : index
    %50 = vector.load %arg12[%c0_47, %c0_48] : memref<16x256xf32, #tpu.memory_space<vmem>>, vector<16x256xf32>
    %cst_49 = arith.constant dense<0.000000e+00> : vector<16x256xf32>
    %51 = tpu.matmul %47, %50, %cst_49 {dimension_numbers = #tpu.dot_dimension_numbers<[1], [0], [0], [1], [0, 0, 1, 1], [], []>} : vector<16x16xf32>, vector<16x256xf32>, vector<16x256xf32> -> vector<16x256xf32>
    %52 = arith.addf %49, %51 : vector<16x256xf32>
    %c0_50 = arith.constant 0 : index
    %c0_51 = arith.constant 0 : index
    %53 = vector.load %arg14[%c0_50, %c0_51] : memref<1x256xf32, #tpu.memory_space<vmem>>, vector<1x256xf32>
    %54 = vector.broadcast %53 : vector<1x256xf32> to vector<16x256xf32>
    %55 = arith.addf %52, %54 : vector<16x256xf32>
    %c0_52 = arith.constant 0 : index
    %c0_53 = arith.constant 0 : index
    %56 = vector.load %arg13[%c0_52, %c0_53] : memref<64x256xf32, #tpu.memory_space<vmem>>, vector<64x256xf32>
    %cst_54 = arith.constant 0.000000e+00 : f32
    %57 = vector.broadcast %cst_54 : f32 to vector<2x64xf32>
    %cst_55 = arith.constant 0.000000e+00 : f32
    %58 = vector.broadcast %cst_55 : f32 to vector<2x64xf32>
    %59 = vector.extract_strided_slice %55 {offsets = [0, 0], sizes = [2, 256], strides = [1, 1]} : vector<16x256xf32> to vector<2x256xf32>
    %cst_56 = arith.constant dense<0.000000e+00> : vector<2x256xf32>
    %60 = tpu.matmul %57, %56, %cst_56 {dimension_numbers = #tpu.dot_dimension_numbers<[1], [0], [0], [1], [0, 0, 1, 1], [], []>} : vector<2x64xf32>, vector<64x256xf32>, vector<2x256xf32> -> vector<2x256xf32>
    %61 = arith.addf %59, %60 : vector<2x256xf32>
    %62 = vector.extract_strided_slice %61 {offsets = [0, 0], sizes = [2, 192], strides = [1, 1]} : vector<2x256xf32> to vector<2x192xf32>
    %63 = arith.negf %62 : vector<2x192xf32>
    %64 = math.exp %63 : vector<2x192xf32>
    %cst_57 = arith.constant 1.000000e+00 : f32
    %65 = vector.broadcast %cst_57 : f32 to vector<2x192xf32>
    %66 = arith.addf %65, %64 : vector<2x192xf32>
    %67 = arith.divf %65, %66 : vector<2x192xf32>
    %68 = vector.extract_strided_slice %61 {offsets = [0, 192], sizes = [2, 64], strides = [1, 1]} : vector<2x256xf32> to vector<2x64xf32>
    %69 = math.tanh %68 : vector<2x64xf32>
    %70 = vector.extract_strided_slice %67 {offsets = [0, 64], sizes = [2, 64], strides = [1, 1]} : vector<2x192xf32> to vector<2x64xf32>
    %71 = arith.mulf %70, %58 : vector<2x64xf32>
    %72 = vector.extract_strided_slice %67 {offsets = [0, 0], sizes = [2, 64], strides = [1, 1]} : vector<2x192xf32> to vector<2x64xf32>
    %73 = arith.mulf %72, %69 : vector<2x64xf32>
    %74 = arith.addf %71, %73 : vector<2x64xf32>
    %75 = vector.extract_strided_slice %67 {offsets = [0, 128], sizes = [2, 64], strides = [1, 1]} : vector<2x192xf32> to vector<2x64xf32>
    %76 = math.tanh %74 : vector<2x64xf32>
    %77 = arith.mulf %75, %76 : vector<2x64xf32>
    %78 = vector.extract_strided_slice %77 {offsets = [0, 0], sizes = [2, 32], strides = [1, 1]} : vector<2x64xf32> to vector<2x32xf32>
    %c0_58 = arith.constant 0 : index
    %c0_59 = arith.constant 0 : index
    %79 = vector.load %arg28[%c0_58, %c0_59] : memref<16x32xf32, #tpu.memory_space<vmem>>, vector<2x32xf32>
    tpu.vector_store %arg28[%c0_58, %c0_59], %78 {strides = array<i32>} : memref<16x32xf32, #tpu.memory_space<vmem>>, vector<2x32xf32>,
    %80 = vector.extract_strided_slice %77 {offsets = [0, 32], sizes = [2, 32], strides = [1, 1]} : vector<2x64xf32> to vector<2x32xf32>
    %c14 = arith.constant 14 : index
    %c0_60 = arith.constant 0 : index
    %81 = vector.load %arg29[%c14, %c0_60] : memref<16x32xf32, #tpu.memory_space<vmem>>, vector<2x32xf32>
    tpu.vector_store %arg29[%c14, %c0_60], %80 {strides = array<i32>} : memref<16x32xf32, #tpu.memory_space<vmem>>, vector<2x32xf32>,
    %82 = vector.extract_strided_slice %55 {offsets = [2, 0], sizes = [2, 256], strides = [1, 1]} : vector<16x256xf32> to vector<2x256xf32>
    %cst_61 = arith.constant dense<0.000000e+00> : vector<2x256xf32>
    %83 = tpu.matmul %77, %56, %cst_61 {dimension_numbers = #tpu.dot_dimension_numbers<[1], [0], [0], [1], [0, 0, 1, 1], [], []>} : vector<2x64xf32>, vector<64x256xf32>, vector<2x256xf32> -> vector<2x256xf32>
    %84 = arith.addf %82, %83 : vector<2x256xf32>
    %85 = vector.extract_strided_slice %84 {offsets = [0, 0], sizes = [2, 192], strides = [1, 1]} : vector<2x256xf32> to vector<2x192xf32>
    %86 = arith.negf %85 : vector<2x192xf32>
    %87 = math.exp %86 : vector<2x192xf32>
    %cst_62 = arith.constant 1.000000e+00 : f32
    %88 = vector.broadcast %cst_62 : f32 to vector<2x192xf32>
    %89 = arith.addf %88, %87 : vector<2x192xf32>
    %90 = arith.divf %88, %89 : vector<2x192xf32>
    %91 = vector.extract_strided_slice %84 {offsets = [0, 192], sizes = [2, 64], strides = [1, 1]} : vector<2x256xf32> to vector<2x64xf32>
    %92 = math.tanh %91 : vector<2x64xf32>
    %93 = vector.extract_strided_slice %90 {offsets = [0, 64], sizes = [2, 64], strides = [1, 1]} : vector<2x192xf32> to vector<2x64xf32>
    %94 = arith.mulf %93, %74 : vector<2x64xf32>
    %95 = vector.extract_strided_slice %90 {offsets = [0, 0], sizes = [2, 64], strides = [1, 1]} : vector<2x192xf32> to vector<2x64xf32>
    %96 = arith.mulf %95, %92 : vector<2x64xf32>
    %97 = arith.addf %94, %96 : vector<2x64xf32>
    %98 = vector.extract_strided_slice %90 {offsets = [0, 128], sizes = [2, 64], strides = [1, 1]} : vector<2x192xf32> to vector<2x64xf32>
    %99 = math.tanh %97 : vector<2x64xf32>
    %100 = arith.mulf %98, %99 : vector<2x64xf32>
    %101 = vector.extract_strided_slice %100 {offsets = [0, 0], sizes = [2, 32], strides = [1, 1]} : vector<2x64xf32> to vector<2x32xf32>
    %c2 = arith.constant 2 : index
    %c0_63 = arith.constant 0 : index
    %102 = vector.load %arg28[%c2, %c0_63] : memref<16x32xf32, #tpu.memory_space<vmem>>, vector<2x32xf32>
    tpu.vector_store %arg28[%c2, %c0_63], %101 {strides = array<i32>} : memref<16x32xf32, #tpu.memory_space<vmem>>, vector<2x32xf32>,
    %103 = vector.extract_strided_slice %100 {offsets = [0, 32], sizes = [2, 32], strides = [1, 1]} : vector<2x64xf32> to vector<2x32xf32>
    %c12 = arith.constant 12 : index
    %c0_64 = arith.constant 0 : index
    %104 = vector.load %arg29[%c12, %c0_64] : memref<16x32xf32, #tpu.memory_space<vmem>>, vector<2x32xf32>
    tpu.vector_store %arg29[%c12, %c0_64], %103 {strides = array<i32>} : memref<16x32xf32, #tpu.memory_space<vmem>>, vector<2x32xf32>,
    %105 = vector.extract_strided_slice %55 {offsets = [4, 0], sizes = [2, 256], strides = [1, 1]} : vector<16x256xf32> to vector<2x256xf32>
    %cst_65 = arith.constant dense<0.000000e+00> : vector<2x256xf32>
    %106 = tpu.matmul %100, %56, %cst_65 {dimension_numbers = #tpu.dot_dimension_numbers<[1], [0], [0], [1], [0, 0, 1, 1], [], []>} : vector<2x64xf32>, vector<64x256xf32>, vector<2x256xf32> -> vector<2x256xf32>
    %107 = arith.addf %105, %106 : vector<2x256xf32>
    %108 = vector.extract_strided_slice %107 {offsets = [0, 0], sizes = [2, 192], strides = [1, 1]} : vector<2x256xf32> to vector<2x192xf32>
    %109 = arith.negf %108 : vector<2x192xf32>
    %110 = math.exp %109 : vector<2x192xf32>
    %cst_66 = arith.constant 1.000000e+00 : f32
    %111 = vector.broadcast %cst_66 : f32 to vector<2x192xf32>
    %112 = arith.addf %111, %110 : vector<2x192xf32>
    %113 = arith.divf %111, %112 : vector<2x192xf32>
    %114 = vector.extract_strided_slice %107 {offsets = [0, 192], sizes = [2, 64], strides = [1, 1]} : vector<2x256xf32> to vector<2x64xf32>
    %115 = math.tanh %114 : vector<2x64xf32>
    %116 = vector.extract_strided_slice %113 {offsets = [0, 64], sizes = [2, 64], strides = [1, 1]} : vector<2x192xf32> to vector<2x64xf32>
    %117 = arith.mulf %116, %97 : vector<2x64xf32>
    %118 = vector.extract_strided_slice %113 {offsets = [0, 0], sizes = [2, 64], strides = [1, 1]} : vector<2x192xf32> to vector<2x64xf32>
    %119 = arith.mulf %118, %115 : vector<2x64xf32>
    %120 = arith.addf %117, %119 : vector<2x64xf32>
    %121 = vector.extract_strided_slice %113 {offsets = [0, 128], sizes = [2, 64], strides = [1, 1]} : vector<2x192xf32> to vector<2x64xf32>
    %122 = math.tanh %120 : vector<2x64xf32>
    %123 = arith.mulf %121, %122 : vector<2x64xf32>
    %124 = vector.extract_strided_slice %123 {offsets = [0, 0], sizes = [2, 32], strides = [1, 1]} : vector<2x64xf32> to vector<2x32xf32>
    %c4 = arith.constant 4 : index
    %c0_67 = arith.constant 0 : index
    %125 = vector.load %arg28[%c4, %c0_67] : memref<16x32xf32, #tpu.memory_space<vmem>>, vector<2x32xf32>
    tpu.vector_store %arg28[%c4, %c0_67], %124 {strides = array<i32>} : memref<16x32xf32, #tpu.memory_space<vmem>>, vector<2x32xf32>,
    %126 = vector.extract_strided_slice %123 {offsets = [0, 32], sizes = [2, 32], strides = [1, 1]} : vector<2x64xf32> to vector<2x32xf32>
    %c10 = arith.constant 10 : index
    %c0_68 = arith.constant 0 : index
    %127 = vector.load %arg29[%c10, %c0_68] : memref<16x32xf32, #tpu.memory_space<vmem>>, vector<2x32xf32>
    tpu.vector_store %arg29[%c10, %c0_68], %126 {strides = array<i32>} : memref<16x32xf32, #tpu.memory_space<vmem>>, vector<2x32xf32>,
    %128 = vector.extract_strided_slice %55 {offsets = [6, 0], sizes = [2, 256], strides = [1, 1]} : vector<16x256xf32> to vector<2x256xf32>
    %cst_69 = arith.constant dense<0.000000e+00> : vector<2x256xf32>
    %129 = tpu.matmul %123, %56, %cst_69 {dimension_numbers = #tpu.dot_dimension_numbers<[1], [0], [0], [1], [0, 0, 1, 1], [], []>} : vector<2x64xf32>, vector<64x256xf32>, vector<2x256xf32> -> vector<2x256xf32>
    %130 = arith.addf %128, %129 : vector<2x256xf32>
    %131 = vector.extract_strided_slice %130 {offsets = [0, 0], sizes = [2, 192], strides = [1, 1]} : vector<2x256xf32> to vector<2x192xf32>
    %132 = arith.negf %131 : vector<2x192xf32>
    %133 = math.exp %132 : vector<2x192xf32>
    %cst_70 = arith.constant 1.000000e+00 : f32
    %134 = vector.broadcast %cst_70 : f32 to vector<2x192xf32>
    %135 = arith.addf %134, %133 : vector<2x192xf32>
    %136 = arith.divf %134, %135 : vector<2x192xf32>
    %137 = vector.extract_strided_slice %130 {offsets = [0, 192], sizes = [2, 64], strides = [1, 1]} : vector<2x256xf32> to vector<2x64xf32>
    %138 = math.tanh %137 : vector<2x64xf32>
    %139 = vector.extract_strided_slice %136 {offsets = [0, 64], sizes = [2, 64], strides = [1, 1]} : vector<2x192xf32> to vector<2x64xf32>
    %140 = arith.mulf %139, %120 : vector<2x64xf32>
    %141 = vector.extract_strided_slice %136 {offsets = [0, 0], sizes = [2, 64], strides = [1, 1]} : vector<2x192xf32> to vector<2x64xf32>
    %142 = arith.mulf %141, %138 : vector<2x64xf32>
    %143 = arith.addf %140, %142 : vector<2x64xf32>
    %144 = vector.extract_strided_slice %136 {offsets = [0, 128], sizes = [2, 64], strides = [1, 1]} : vector<2x192xf32> to vector<2x64xf32>
    %145 = math.tanh %143 : vector<2x64xf32>
    %146 = arith.mulf %144, %145 : vector<2x64xf32>
    %147 = vector.extract_strided_slice %146 {offsets = [0, 0], sizes = [2, 32], strides = [1, 1]} : vector<2x64xf32> to vector<2x32xf32>
    %c6 = arith.constant 6 : index
    %c0_71 = arith.constant 0 : index
    %148 = vector.load %arg28[%c6, %c0_71] : memref<16x32xf32, #tpu.memory_space<vmem>>, vector<2x32xf32>
    tpu.vector_store %arg28[%c6, %c0_71], %147 {strides = array<i32>} : memref<16x32xf32, #tpu.memory_space<vmem>>, vector<2x32xf32>,
    %149 = vector.extract_strided_slice %146 {offsets = [0, 32], sizes = [2, 32], strides = [1, 1]} : vector<2x64xf32> to vector<2x32xf32>
    %c8 = arith.constant 8 : index
    %c0_72 = arith.constant 0 : index
    %150 = vector.load %arg29[%c8, %c0_72] : memref<16x32xf32, #tpu.memory_space<vmem>>, vector<2x32xf32>
    tpu.vector_store %arg29[%c8, %c0_72], %149 {strides = array<i32>} : memref<16x32xf32, #tpu.memory_space<vmem>>, vector<2x32xf32>,
    %151 = vector.extract_strided_slice %55 {offsets = [8, 0], sizes = [2, 256], strides = [1, 1]} : vector<16x256xf32> to vector<2x256xf32>
    %cst_73 = arith.constant dense<0.000000e+00> : vector<2x256xf32>
    %152 = tpu.matmul %146, %56, %cst_73 {dimension_numbers = #tpu.dot_dimension_numbers<[1], [0], [0], [1], [0, 0, 1, 1], [], []>} : vector<2x64xf32>, vector<64x256xf32>, vector<2x256xf32> -> vector<2x256xf32>
    %153 = arith.addf %151, %152 : vector<2x256xf32>
    %154 = vector.extract_strided_slice %153 {offsets = [0, 0], sizes = [2, 192], strides = [1, 1]} : vector<2x256xf32> to vector<2x192xf32>
    %155 = arith.negf %154 : vector<2x192xf32>
    %156 = math.exp %155 : vector<2x192xf32>
    %cst_74 = arith.constant 1.000000e+00 : f32
    %157 = vector.broadcast %cst_74 : f32 to vector<2x192xf32>
    %158 = arith.addf %157, %156 : vector<2x192xf32>
    %159 = arith.divf %157, %158 : vector<2x192xf32>
    %160 = vector.extract_strided_slice %153 {offsets = [0, 192], sizes = [2, 64], strides = [1, 1]} : vector<2x256xf32> to vector<2x64xf32>
    %161 = math.tanh %160 : vector<2x64xf32>
    %162 = vector.extract_strided_slice %159 {offsets = [0, 64], sizes = [2, 64], strides = [1, 1]} : vector<2x192xf32> to vector<2x64xf32>
    %163 = arith.mulf %162, %143 : vector<2x64xf32>
    %164 = vector.extract_strided_slice %159 {offsets = [0, 0], sizes = [2, 64], strides = [1, 1]} : vector<2x192xf32> to vector<2x64xf32>
    %165 = arith.mulf %164, %161 : vector<2x64xf32>
    %166 = arith.addf %163, %165 : vector<2x64xf32>
    %167 = vector.extract_strided_slice %159 {offsets = [0, 128], sizes = [2, 64], strides = [1, 1]} : vector<2x192xf32> to vector<2x64xf32>
    %168 = math.tanh %166 : vector<2x64xf32>
    %169 = arith.mulf %167, %168 : vector<2x64xf32>
    %170 = vector.extract_strided_slice %169 {offsets = [0, 0], sizes = [2, 32], strides = [1, 1]} : vector<2x64xf32> to vector<2x32xf32>
    %c8_75 = arith.constant 8 : index
    %c0_76 = arith.constant 0 : index
    %171 = vector.load %arg28[%c8_75, %c0_76] : memref<16x32xf32, #tpu.memory_space<vmem>>, vector<2x32xf32>
    tpu.vector_store %arg28[%c8_75, %c0_76], %170 {strides = array<i32>} : memref<16x32xf32, #tpu.memory_space<vmem>>, vector<2x32xf32>,
    %172 = vector.extract_strided_slice %169 {offsets = [0, 32], sizes = [2, 32], strides = [1, 1]} : vector<2x64xf32> to vector<2x32xf32>
    %c6_77 = arith.constant 6 : index
    %c0_78 = arith.constant 0 : index
    %173 = vector.load %arg29[%c6_77, %c0_78] : memref<16x32xf32, #tpu.memory_space<vmem>>, vector<2x32xf32>
    tpu.vector_store %arg29[%c6_77, %c0_78], %172 {strides = array<i32>} : memref<16x32xf32, #tpu.memory_space<vmem>>, vector<2x32xf32>,
    %174 = vector.extract_strided_slice %55 {offsets = [10, 0], sizes = [2, 256], strides = [1, 1]} : vector<16x256xf32> to vector<2x256xf32>
    %cst_79 = arith.constant dense<0.000000e+00> : vector<2x256xf32>
    %175 = tpu.matmul %169, %56, %cst_79 {dimension_numbers = #tpu.dot_dimension_numbers<[1], [0], [0], [1], [0, 0, 1, 1], [], []>} : vector<2x64xf32>, vector<64x256xf32>, vector<2x256xf32> -> vector<2x256xf32>
    %176 = arith.addf %174, %175 : vector<2x256xf32>
    %177 = vector.extract_strided_slice %176 {offsets = [0, 0], sizes = [2, 192], strides = [1, 1]} : vector<2x256xf32> to vector<2x192xf32>
    %178 = arith.negf %177 : vector<2x192xf32>
    %179 = math.exp %178 : vector<2x192xf32>
    %cst_80 = arith.constant 1.000000e+00 : f32
    %180 = vector.broadcast %cst_80 : f32 to vector<2x192xf32>
    %181 = arith.addf %180, %179 : vector<2x192xf32>
    %182 = arith.divf %180, %181 : vector<2x192xf32>
    %183 = vector.extract_strided_slice %176 {offsets = [0, 192], sizes = [2, 64], strides = [1, 1]} : vector<2x256xf32> to vector<2x64xf32>
    %184 = math.tanh %183 : vector<2x64xf32>
    %185 = vector.extract_strided_slice %182 {offsets = [0, 64], sizes = [2, 64], strides = [1, 1]} : vector<2x192xf32> to vector<2x64xf32>
    %186 = arith.mulf %185, %166 : vector<2x64xf32>
    %187 = vector.extract_strided_slice %182 {offsets = [0, 0], sizes = [2, 64], strides = [1, 1]} : vector<2x192xf32> to vector<2x64xf32>
    %188 = arith.mulf %187, %184 : vector<2x64xf32>
    %189 = arith.addf %186, %188 : vector<2x64xf32>
    %190 = vector.extract_strided_slice %182 {offsets = [0, 128], sizes = [2, 64], strides = [1, 1]} : vector<2x192xf32> to vector<2x64xf32>
    %191 = math.tanh %189 : vector<2x64xf32>
    %192 = arith.mulf %190, %191 : vector<2x64xf32>
    %193 = vector.extract_strided_slice %192 {offsets = [0, 0], sizes = [2, 32], strides = [1, 1]} : vector<2x64xf32> to vector<2x32xf32>
    %c10_81 = arith.constant 10 : index
    %c0_82 = arith.constant 0 : index
    %194 = vector.load %arg28[%c10_81, %c0_82] : memref<16x32xf32, #tpu.memory_space<vmem>>, vector<2x32xf32>
    tpu.vector_store %arg28[%c10_81, %c0_82], %193 {strides = array<i32>} : memref<16x32xf32, #tpu.memory_space<vmem>>, vector<2x32xf32>,
    %195 = vector.extract_strided_slice %192 {offsets = [0, 32], sizes = [2, 32], strides = [1, 1]} : vector<2x64xf32> to vector<2x32xf32>
    %c4_83 = arith.constant 4 : index
    %c0_84 = arith.constant 0 : index
    %196 = vector.load %arg29[%c4_83, %c0_84] : memref<16x32xf32, #tpu.memory_space<vmem>>, vector<2x32xf32>
    tpu.vector_store %arg29[%c4_83, %c0_84], %195 {strides = array<i32>} : memref<16x32xf32, #tpu.memory_space<vmem>>, vector<2x32xf32>,
    %197 = vector.extract_strided_slice %55 {offsets = [12, 0], sizes = [2, 256], strides = [1, 1]} : vector<16x256xf32> to vector<2x256xf32>
    %cst_85 = arith.constant dense<0.000000e+00> : vector<2x256xf32>
    %198 = tpu.matmul %192, %56, %cst_85 {dimension_numbers = #tpu.dot_dimension_numbers<[1], [0], [0], [1], [0, 0, 1, 1], [], []>} : vector<2x64xf32>, vector<64x256xf32>, vector<2x256xf32> -> vector<2x256xf32>
    %199 = arith.addf %197, %198 : vector<2x256xf32>
    %200 = vector.extract_strided_slice %199 {offsets = [0, 0], sizes = [2, 192], strides = [1, 1]} : vector<2x256xf32> to vector<2x192xf32>
    %201 = arith.negf %200 : vector<2x192xf32>
    %202 = math.exp %201 : vector<2x192xf32>
    %cst_86 = arith.constant 1.000000e+00 : f32
    %203 = vector.broadcast %cst_86 : f32 to vector<2x192xf32>
    %204 = arith.addf %203, %202 : vector<2x192xf32>
    %205 = arith.divf %203, %204 : vector<2x192xf32>
    %206 = vector.extract_strided_slice %199 {offsets = [0, 192], sizes = [2, 64], strides = [1, 1]} : vector<2x256xf32> to vector<2x64xf32>
    %207 = math.tanh %206 : vector<2x64xf32>
    %208 = vector.extract_strided_slice %205 {offsets = [0, 64], sizes = [2, 64], strides = [1, 1]} : vector<2x192xf32> to vector<2x64xf32>
    %209 = arith.mulf %208, %189 : vector<2x64xf32>
    %210 = vector.extract_strided_slice %205 {offsets = [0, 0], sizes = [2, 64], strides = [1, 1]} : vector<2x192xf32> to vector<2x64xf32>
    %211 = arith.mulf %210, %207 : vector<2x64xf32>
    %212 = arith.addf %209, %211 : vector<2x64xf32>
    %213 = vector.extract_strided_slice %205 {offsets = [0, 128], sizes = [2, 64], strides = [1, 1]} : vector<2x192xf32> to vector<2x64xf32>
    %214 = math.tanh %212 : vector<2x64xf32>
    %215 = arith.mulf %213, %214 : vector<2x64xf32>
    %216 = vector.extract_strided_slice %215 {offsets = [0, 0], sizes = [2, 32], strides = [1, 1]} : vector<2x64xf32> to vector<2x32xf32>
    %c12_87 = arith.constant 12 : index
    %c0_88 = arith.constant 0 : index
    %217 = vector.load %arg28[%c12_87, %c0_88] : memref<16x32xf32, #tpu.memory_space<vmem>>, vector<2x32xf32>
    tpu.vector_store %arg28[%c12_87, %c0_88], %216 {strides = array<i32>} : memref<16x32xf32, #tpu.memory_space<vmem>>, vector<2x32xf32>,
    %218 = vector.extract_strided_slice %215 {offsets = [0, 32], sizes = [2, 32], strides = [1, 1]} : vector<2x64xf32> to vector<2x32xf32>
    %c2_89 = arith.constant 2 : index
    %c0_90 = arith.constant 0 : index
    %219 = vector.load %arg29[%c2_89, %c0_90] : memref<16x32xf32, #tpu.memory_space<vmem>>, vector<2x32xf32>
    tpu.vector_store %arg29[%c2_89, %c0_90], %218 {strides = array<i32>} : memref<16x32xf32, #tpu.memory_space<vmem>>, vector<2x32xf32>,
    %220 = vector.extract_strided_slice %55 {offsets = [14, 0], sizes = [2, 256], strides = [1, 1]} : vector<16x256xf32> to vector<2x256xf32>
    %cst_91 = arith.constant dense<0.000000e+00> : vector<2x256xf32>
    %221 = tpu.matmul %215, %56, %cst_91 {dimension_numbers = #tpu.dot_dimension_numbers<[1], [0], [0], [1], [0, 0, 1, 1], [], []>} : vector<2x64xf32>, vector<64x256xf32>, vector<2x256xf32> -> vector<2x256xf32>
    %222 = arith.addf %220, %221 : vector<2x256xf32>
    %223 = vector.extract_strided_slice %222 {offsets = [0, 0], sizes = [2, 192], strides = [1, 1]} : vector<2x256xf32> to vector<2x192xf32>
    %224 = arith.negf %223 : vector<2x192xf32>
    %225 = math.exp %224 : vector<2x192xf32>
    %cst_92 = arith.constant 1.000000e+00 : f32
    %226 = vector.broadcast %cst_92 : f32 to vector<2x192xf32>
    %227 = arith.addf %226, %225 : vector<2x192xf32>
    %228 = arith.divf %226, %227 : vector<2x192xf32>
    %229 = vector.extract_strided_slice %222 {offsets = [0, 192], sizes = [2, 64], strides = [1, 1]} : vector<2x256xf32> to vector<2x64xf32>
    %230 = math.tanh %229 : vector<2x64xf32>
    %231 = vector.extract_strided_slice %228 {offsets = [0, 64], sizes = [2, 64], strides = [1, 1]} : vector<2x192xf32> to vector<2x64xf32>
    %232 = arith.mulf %231, %212 : vector<2x64xf32>
    %233 = vector.extract_strided_slice %228 {offsets = [0, 0], sizes = [2, 64], strides = [1, 1]} : vector<2x192xf32> to vector<2x64xf32>
    %234 = arith.mulf %233, %230 : vector<2x64xf32>
    %235 = arith.addf %232, %234 : vector<2x64xf32>
    %236 = vector.extract_strided_slice %228 {offsets = [0, 128], sizes = [2, 64], strides = [1, 1]} : vector<2x192xf32> to vector<2x64xf32>
    %237 = math.tanh %235 : vector<2x64xf32>
    %238 = arith.mulf %236, %237 : vector<2x64xf32>
    %239 = vector.extract_strided_slice %238 {offsets = [0, 0], sizes = [2, 32], strides = [1, 1]} : vector<2x64xf32> to vector<2x32xf32>
    %c14_93 = arith.constant 14 : index
    %c0_94 = arith.constant 0 : index
    %240 = vector.load %arg28[%c14_93, %c0_94] : memref<16x32xf32, #tpu.memory_space<vmem>>, vector<2x32xf32>
    tpu.vector_store %arg28[%c14_93, %c0_94], %239 {strides = array<i32>} : memref<16x32xf32, #tpu.memory_space<vmem>>, vector<2x32xf32>,
    %241 = vector.extract_strided_slice %238 {offsets = [0, 32], sizes = [2, 32], strides = [1, 1]} : vector<2x64xf32> to vector<2x32xf32>
    %c0_95 = arith.constant 0 : index
    %c0_96 = arith.constant 0 : index
    %242 = vector.load %arg29[%c0_95, %c0_96] : memref<16x32xf32, #tpu.memory_space<vmem>>, vector<2x32xf32>
    tpu.vector_store %arg29[%c0_95, %c0_96], %241 {strides = array<i32>} : memref<16x32xf32, #tpu.memory_space<vmem>>, vector<2x32xf32>,
    %c0_97 = arith.constant 0 : index
    %c0_98 = arith.constant 0 : index
    %243 = vector.load %arg28[%c0_97, %c0_98] : memref<16x32xf32, #tpu.memory_space<vmem>>, vector<16x32xf32>
    %c0_99 = arith.constant 0 : index
    %c0_100 = arith.constant 0 : index
    %244 = vector.load %arg29[%c0_99, %c0_100] : memref<16x32xf32, #tpu.memory_space<vmem>>, vector<16x32xf32>
    %245 = tpu.concatenate %243, %244 in 1 : vector<16x32xf32>, vector<16x32xf32> -> vector<16x64xf32>
    %cst_101 = arith.constant dense<0.000000e+00> : vector<16x64xf32>
    %246 = tpu.matmul %46, %245, %cst_101 {dimension_numbers = #tpu.dot_dimension_numbers<[1], [0], [0], [1], [0, 0, 1, 1], [], []>} : vector<16x16xf32>, vector<16x64xf32>, vector<16x64xf32> -> vector<16x64xf32>
    %c0_102 = arith.constant 0 : index
    %c0_103 = arith.constant 0 : index
    %247 = vector.load %arg15[%c0_102, %c0_103] : memref<64x256xf32, #tpu.memory_space<vmem>>, vector<64x256xf32>
    %cst_104 = arith.constant dense<0.000000e+00> : vector<16x256xf32>
    %248 = tpu.matmul %245, %247, %cst_104 {dimension_numbers = #tpu.dot_dimension_numbers<[1], [0], [0], [1], [0, 0, 1, 1], [], []>} : vector<16x64xf32>, vector<64x256xf32>, vector<16x256xf32> -> vector<16x256xf32>
    %c0_105 = arith.constant 0 : index
    %c0_106 = arith.constant 0 : index
    %249 = vector.load %arg16[%c0_105, %c0_106] : memref<64x256xf32, #tpu.memory_space<vmem>>, vector<64x256xf32>
    %cst_107 = arith.constant dense<0.000000e+00> : vector<16x256xf32>
    %250 = tpu.matmul %246, %249, %cst_107 {dimension_numbers = #tpu.dot_dimension_numbers<[1], [0], [0], [1], [0, 0, 1, 1], [], []>} : vector<16x64xf32>, vector<64x256xf32>, vector<16x256xf32> -> vector<16x256xf32>
    %251 = arith.addf %248, %250 : vector<16x256xf32>
    %c0_108 = arith.constant 0 : index
    %c0_109 = arith.constant 0 : index
    %252 = vector.load %arg18[%c0_108, %c0_109] : memref<1x256xf32, #tpu.memory_space<vmem>>, vector<1x256xf32>
    %253 = vector.broadcast %252 : vector<1x256xf32> to vector<16x256xf32>
    %254 = arith.addf %251, %253 : vector<16x256xf32>
    %c0_110 = arith.constant 0 : index
    %c0_111 = arith.constant 0 : index
    %255 = vector.load %arg17[%c0_110, %c0_111] : memref<64x256xf32, #tpu.memory_space<vmem>>, vector<64x256xf32>
    %cst_112 = arith.constant 0.000000e+00 : f32
    %256 = vector.broadcast %cst_112 : f32 to vector<2x64xf32>
    %cst_113 = arith.constant 0.000000e+00 : f32
    %257 = vector.broadcast %cst_113 : f32 to vector<2x64xf32>
    %258 = vector.extract_strided_slice %254 {offsets = [0, 0], sizes = [2, 256], strides = [1, 1]} : vector<16x256xf32> to vector<2x256xf32>
    %cst_114 = arith.constant dense<0.000000e+00> : vector<2x256xf32>
    %259 = tpu.matmul %256, %255, %cst_114 {dimension_numbers = #tpu.dot_dimension_numbers<[1], [0], [0], [1], [0, 0, 1, 1], [], []>} : vector<2x64xf32>, vector<64x256xf32>, vector<2x256xf32> -> vector<2x256xf32>
    %260 = arith.addf %258, %259 : vector<2x256xf32>
    %261 = vector.extract_strided_slice %260 {offsets = [0, 0], sizes = [2, 192], strides = [1, 1]} : vector<2x256xf32> to vector<2x192xf32>
    %262 = arith.negf %261 : vector<2x192xf32>
    %263 = math.exp %262 : vector<2x192xf32>
    %cst_115 = arith.constant 1.000000e+00 : f32
    %264 = vector.broadcast %cst_115 : f32 to vector<2x192xf32>
    %265 = arith.addf %264, %263 : vector<2x192xf32>
    %266 = arith.divf %264, %265 : vector<2x192xf32>
    %267 = vector.extract_strided_slice %260 {offsets = [0, 192], sizes = [2, 64], strides = [1, 1]} : vector<2x256xf32> to vector<2x64xf32>
    %268 = math.tanh %267 : vector<2x64xf32>
    %269 = vector.extract_strided_slice %266 {offsets = [0, 64], sizes = [2, 64], strides = [1, 1]} : vector<2x192xf32> to vector<2x64xf32>
    %270 = arith.mulf %269, %257 : vector<2x64xf32>
    %271 = vector.extract_strided_slice %266 {offsets = [0, 0], sizes = [2, 64], strides = [1, 1]} : vector<2x192xf32> to vector<2x64xf32>
    %272 = arith.mulf %271, %268 : vector<2x64xf32>
    %273 = arith.addf %270, %272 : vector<2x64xf32>
    %274 = vector.extract_strided_slice %266 {offsets = [0, 128], sizes = [2, 64], strides = [1, 1]} : vector<2x192xf32> to vector<2x64xf32>
    %275 = math.tanh %273 : vector<2x64xf32>
    %276 = arith.mulf %274, %275 : vector<2x64xf32>
    %277 = vector.extract_strided_slice %276 {offsets = [0, 0], sizes = [2, 32], strides = [1, 1]} : vector<2x64xf32> to vector<2x32xf32>
    %c0_116 = arith.constant 0 : index
    %c0_117 = arith.constant 0 : index
    %278 = vector.load %arg28[%c0_116, %c0_117] : memref<16x32xf32, #tpu.memory_space<vmem>>, vector<2x32xf32>
    tpu.vector_store %arg28[%c0_116, %c0_117], %277 {strides = array<i32>} : memref<16x32xf32, #tpu.memory_space<vmem>>, vector<2x32xf32>,
    %279 = vector.extract_strided_slice %276 {offsets = [0, 32], sizes = [2, 32], strides = [1, 1]} : vector<2x64xf32> to vector<2x32xf32>
    %c14_118 = arith.constant 14 : index
    %c0_119 = arith.constant 0 : index
    %280 = vector.load %arg29[%c14_118, %c0_119] : memref<16x32xf32, #tpu.memory_space<vmem>>, vector<2x32xf32>
    tpu.vector_store %arg29[%c14_118, %c0_119], %279 {strides = array<i32>} : memref<16x32xf32, #tpu.memory_space<vmem>>, vector<2x32xf32>,
    %281 = vector.extract_strided_slice %254 {offsets = [2, 0], sizes = [2, 256], strides = [1, 1]} : vector<16x256xf32> to vector<2x256xf32>
    %cst_120 = arith.constant dense<0.000000e+00> : vector<2x256xf32>
    %282 = tpu.matmul %276, %255, %cst_120 {dimension_numbers = #tpu.dot_dimension_numbers<[1], [0], [0], [1], [0, 0, 1, 1], [], []>} : vector<2x64xf32>, vector<64x256xf32>, vector<2x256xf32> -> vector<2x256xf32>
    %283 = arith.addf %281, %282 : vector<2x256xf32>
    %284 = vector.extract_strided_slice %283 {offsets = [0, 0], sizes = [2, 192], strides = [1, 1]} : vector<2x256xf32> to vector<2x192xf32>
    %285 = arith.negf %284 : vector<2x192xf32>
    %286 = math.exp %285 : vector<2x192xf32>
    %cst_121 = arith.constant 1.000000e+00 : f32
    %287 = vector.broadcast %cst_121 : f32 to vector<2x192xf32>
    %288 = arith.addf %287, %286 : vector<2x192xf32>
    %289 = arith.divf %287, %288 : vector<2x192xf32>
    %290 = vector.extract_strided_slice %283 {offsets = [0, 192], sizes = [2, 64], strides = [1, 1]} : vector<2x256xf32> to vector<2x64xf32>
    %291 = math.tanh %290 : vector<2x64xf32>
    %292 = vector.extract_strided_slice %289 {offsets = [0, 64], sizes = [2, 64], strides = [1, 1]} : vector<2x192xf32> to vector<2x64xf32>
    %293 = arith.mulf %292, %273 : vector<2x64xf32>
    %294 = vector.extract_strided_slice %289 {offsets = [0, 0], sizes = [2, 64], strides = [1, 1]} : vector<2x192xf32> to vector<2x64xf32>
    %295 = arith.mulf %294, %291 : vector<2x64xf32>
    %296 = arith.addf %293, %295 : vector<2x64xf32>
    %297 = vector.extract_strided_slice %289 {offsets = [0, 128], sizes = [2, 64], strides = [1, 1]} : vector<2x192xf32> to vector<2x64xf32>
    %298 = math.tanh %296 : vector<2x64xf32>
    %299 = arith.mulf %297, %298 : vector<2x64xf32>
    %300 = vector.extract_strided_slice %299 {offsets = [0, 0], sizes = [2, 32], strides = [1, 1]} : vector<2x64xf32> to vector<2x32xf32>
    %c2_122 = arith.constant 2 : index
    %c0_123 = arith.constant 0 : index
    %301 = vector.load %arg28[%c2_122, %c0_123] : memref<16x32xf32, #tpu.memory_space<vmem>>, vector<2x32xf32>
    tpu.vector_store %arg28[%c2_122, %c0_123], %300 {strides = array<i32>} : memref<16x32xf32, #tpu.memory_space<vmem>>, vector<2x32xf32>,
    %302 = vector.extract_strided_slice %299 {offsets = [0, 32], sizes = [2, 32], strides = [1, 1]} : vector<2x64xf32> to vector<2x32xf32>
    %c12_124 = arith.constant 12 : index
    %c0_125 = arith.constant 0 : index
    %303 = vector.load %arg29[%c12_124, %c0_125] : memref<16x32xf32, #tpu.memory_space<vmem>>, vector<2x32xf32>
    tpu.vector_store %arg29[%c12_124, %c0_125], %302 {strides = array<i32>} : memref<16x32xf32, #tpu.memory_space<vmem>>, vector<2x32xf32>,
    %304 = vector.extract_strided_slice %254 {offsets = [4, 0], sizes = [2, 256], strides = [1, 1]} : vector<16x256xf32> to vector<2x256xf32>
    %cst_126 = arith.constant dense<0.000000e+00> : vector<2x256xf32>
    %305 = tpu.matmul %299, %255, %cst_126 {dimension_numbers = #tpu.dot_dimension_numbers<[1], [0], [0], [1], [0, 0, 1, 1], [], []>} : vector<2x64xf32>, vector<64x256xf32>, vector<2x256xf32> -> vector<2x256xf32>
    %306 = arith.addf %304, %305 : vector<2x256xf32>
    %307 = vector.extract_strided_slice %306 {offsets = [0, 0], sizes = [2, 192], strides = [1, 1]} : vector<2x256xf32> to vector<2x192xf32>
    %308 = arith.negf %307 : vector<2x192xf32>
    %309 = math.exp %308 : vector<2x192xf32>
    %cst_127 = arith.constant 1.000000e+00 : f32
    %310 = vector.broadcast %cst_127 : f32 to vector<2x192xf32>
    %311 = arith.addf %310, %309 : vector<2x192xf32>
    %312 = arith.divf %310, %311 : vector<2x192xf32>
    %313 = vector.extract_strided_slice %306 {offsets = [0, 192], sizes = [2, 64], strides = [1, 1]} : vector<2x256xf32> to vector<2x64xf32>
    %314 = math.tanh %313 : vector<2x64xf32>
    %315 = vector.extract_strided_slice %312 {offsets = [0, 64], sizes = [2, 64], strides = [1, 1]} : vector<2x192xf32> to vector<2x64xf32>
    %316 = arith.mulf %315, %296 : vector<2x64xf32>
    %317 = vector.extract_strided_slice %312 {offsets = [0, 0], sizes = [2, 64], strides = [1, 1]} : vector<2x192xf32> to vector<2x64xf32>
    %318 = arith.mulf %317, %314 : vector<2x64xf32>
    %319 = arith.addf %316, %318 : vector<2x64xf32>
    %320 = vector.extract_strided_slice %312 {offsets = [0, 128], sizes = [2, 64], strides = [1, 1]} : vector<2x192xf32> to vector<2x64xf32>
    %321 = math.tanh %319 : vector<2x64xf32>
    %322 = arith.mulf %320, %321 : vector<2x64xf32>
    %323 = vector.extract_strided_slice %322 {offsets = [0, 0], sizes = [2, 32], strides = [1, 1]} : vector<2x64xf32> to vector<2x32xf32>
    %c4_128 = arith.constant 4 : index
    %c0_129 = arith.constant 0 : index
    %324 = vector.load %arg28[%c4_128, %c0_129] : memref<16x32xf32, #tpu.memory_space<vmem>>, vector<2x32xf32>
    tpu.vector_store %arg28[%c4_128, %c0_129], %323 {strides = array<i32>} : memref<16x32xf32, #tpu.memory_space<vmem>>, vector<2x32xf32>,
    %325 = vector.extract_strided_slice %322 {offsets = [0, 32], sizes = [2, 32], strides = [1, 1]} : vector<2x64xf32> to vector<2x32xf32>
    %c10_130 = arith.constant 10 : index
    %c0_131 = arith.constant 0 : index
    %326 = vector.load %arg29[%c10_130, %c0_131] : memref<16x32xf32, #tpu.memory_space<vmem>>, vector<2x32xf32>
    tpu.vector_store %arg29[%c10_130, %c0_131], %325 {strides = array<i32>} : memref<16x32xf32, #tpu.memory_space<vmem>>, vector<2x32xf32>,
    %327 = vector.extract_strided_slice %254 {offsets = [6, 0], sizes = [2, 256], strides = [1, 1]} : vector<16x256xf32> to vector<2x256xf32>
    %cst_132 = arith.constant dense<0.000000e+00> : vector<2x256xf32>
    %328 = tpu.matmul %322, %255, %cst_132 {dimension_numbers = #tpu.dot_dimension_numbers<[1], [0], [0], [1], [0, 0, 1, 1], [], []>} : vector<2x64xf32>, vector<64x256xf32>, vector<2x256xf32> -> vector<2x256xf32>
    %329 = arith.addf %327, %328 : vector<2x256xf32>
    %330 = vector.extract_strided_slice %329 {offsets = [0, 0], sizes = [2, 192], strides = [1, 1]} : vector<2x256xf32> to vector<2x192xf32>
    %331 = arith.negf %330 : vector<2x192xf32>
    %332 = math.exp %331 : vector<2x192xf32>
    %cst_133 = arith.constant 1.000000e+00 : f32
    %333 = vector.broadcast %cst_133 : f32 to vector<2x192xf32>
    %334 = arith.addf %333, %332 : vector<2x192xf32>
    %335 = arith.divf %333, %334 : vector<2x192xf32>
    %336 = vector.extract_strided_slice %329 {offsets = [0, 192], sizes = [2, 64], strides = [1, 1]} : vector<2x256xf32> to vector<2x64xf32>
    %337 = math.tanh %336 : vector<2x64xf32>
    %338 = vector.extract_strided_slice %335 {offsets = [0, 64], sizes = [2, 64], strides = [1, 1]} : vector<2x192xf32> to vector<2x64xf32>
    %339 = arith.mulf %338, %319 : vector<2x64xf32>
    %340 = vector.extract_strided_slice %335 {offsets = [0, 0], sizes = [2, 64], strides = [1, 1]} : vector<2x192xf32> to vector<2x64xf32>
    %341 = arith.mulf %340, %337 : vector<2x64xf32>
    %342 = arith.addf %339, %341 : vector<2x64xf32>
    %343 = vector.extract_strided_slice %335 {offsets = [0, 128], sizes = [2, 64], strides = [1, 1]} : vector<2x192xf32> to vector<2x64xf32>
    %344 = math.tanh %342 : vector<2x64xf32>
    %345 = arith.mulf %343, %344 : vector<2x64xf32>
    %346 = vector.extract_strided_slice %345 {offsets = [0, 0], sizes = [2, 32], strides = [1, 1]} : vector<2x64xf32> to vector<2x32xf32>
    %c6_134 = arith.constant 6 : index
    %c0_135 = arith.constant 0 : index
    %347 = vector.load %arg28[%c6_134, %c0_135] : memref<16x32xf32, #tpu.memory_space<vmem>>, vector<2x32xf32>
    tpu.vector_store %arg28[%c6_134, %c0_135], %346 {strides = array<i32>} : memref<16x32xf32, #tpu.memory_space<vmem>>, vector<2x32xf32>,
    %348 = vector.extract_strided_slice %345 {offsets = [0, 32], sizes = [2, 32], strides = [1, 1]} : vector<2x64xf32> to vector<2x32xf32>
    %c8_136 = arith.constant 8 : index
    %c0_137 = arith.constant 0 : index
    %349 = vector.load %arg29[%c8_136, %c0_137] : memref<16x32xf32, #tpu.memory_space<vmem>>, vector<2x32xf32>
    tpu.vector_store %arg29[%c8_136, %c0_137], %348 {strides = array<i32>} : memref<16x32xf32, #tpu.memory_space<vmem>>, vector<2x32xf32>,
    %350 = vector.extract_strided_slice %254 {offsets = [8, 0], sizes = [2, 256], strides = [1, 1]} : vector<16x256xf32> to vector<2x256xf32>
    %cst_138 = arith.constant dense<0.000000e+00> : vector<2x256xf32>
    %351 = tpu.matmul %345, %255, %cst_138 {dimension_numbers = #tpu.dot_dimension_numbers<[1], [0], [0], [1], [0, 0, 1, 1], [], []>} : vector<2x64xf32>, vector<64x256xf32>, vector<2x256xf32> -> vector<2x256xf32>
    %352 = arith.addf %350, %351 : vector<2x256xf32>
    %353 = vector.extract_strided_slice %352 {offsets = [0, 0], sizes = [2, 192], strides = [1, 1]} : vector<2x256xf32> to vector<2x192xf32>
    %354 = arith.negf %353 : vector<2x192xf32>
    %355 = math.exp %354 : vector<2x192xf32>
    %cst_139 = arith.constant 1.000000e+00 : f32
    %356 = vector.broadcast %cst_139 : f32 to vector<2x192xf32>
    %357 = arith.addf %356, %355 : vector<2x192xf32>
    %358 = arith.divf %356, %357 : vector<2x192xf32>
    %359 = vector.extract_strided_slice %352 {offsets = [0, 192], sizes = [2, 64], strides = [1, 1]} : vector<2x256xf32> to vector<2x64xf32>
    %360 = math.tanh %359 : vector<2x64xf32>
    %361 = vector.extract_strided_slice %358 {offsets = [0, 64], sizes = [2, 64], strides = [1, 1]} : vector<2x192xf32> to vector<2x64xf32>
    %362 = arith.mulf %361, %342 : vector<2x64xf32>
    %363 = vector.extract_strided_slice %358 {offsets = [0, 0], sizes = [2, 64], strides = [1, 1]} : vector<2x192xf32> to vector<2x64xf32>
    %364 = arith.mulf %363, %360 : vector<2x64xf32>
    %365 = arith.addf %362, %364 : vector<2x64xf32>
    %366 = vector.extract_strided_slice %358 {offsets = [0, 128], sizes = [2, 64], strides = [1, 1]} : vector<2x192xf32> to vector<2x64xf32>
    %367 = math.tanh %365 : vector<2x64xf32>
    %368 = arith.mulf %366, %367 : vector<2x64xf32>
    %369 = vector.extract_strided_slice %368 {offsets = [0, 0], sizes = [2, 32], strides = [1, 1]} : vector<2x64xf32> to vector<2x32xf32>
    %c8_140 = arith.constant 8 : index
    %c0_141 = arith.constant 0 : index
    %370 = vector.load %arg28[%c8_140, %c0_141] : memref<16x32xf32, #tpu.memory_space<vmem>>, vector<2x32xf32>
    tpu.vector_store %arg28[%c8_140, %c0_141], %369 {strides = array<i32>} : memref<16x32xf32, #tpu.memory_space<vmem>>, vector<2x32xf32>,
    %371 = vector.extract_strided_slice %368 {offsets = [0, 32], sizes = [2, 32], strides = [1, 1]} : vector<2x64xf32> to vector<2x32xf32>
    %c6_142 = arith.constant 6 : index
    %c0_143 = arith.constant 0 : index
    %372 = vector.load %arg29[%c6_142, %c0_143] : memref<16x32xf32, #tpu.memory_space<vmem>>, vector<2x32xf32>
    tpu.vector_store %arg29[%c6_142, %c0_143], %371 {strides = array<i32>} : memref<16x32xf32, #tpu.memory_space<vmem>>, vector<2x32xf32>,
    %373 = vector.extract_strided_slice %254 {offsets = [10, 0], sizes = [2, 256], strides = [1, 1]} : vector<16x256xf32> to vector<2x256xf32>
    %cst_144 = arith.constant dense<0.000000e+00> : vector<2x256xf32>
    %374 = tpu.matmul %368, %255, %cst_144 {dimension_numbers = #tpu.dot_dimension_numbers<[1], [0], [0], [1], [0, 0, 1, 1], [], []>} : vector<2x64xf32>, vector<64x256xf32>, vector<2x256xf32> -> vector<2x256xf32>
    %375 = arith.addf %373, %374 : vector<2x256xf32>
    %376 = vector.extract_strided_slice %375 {offsets = [0, 0], sizes = [2, 192], strides = [1, 1]} : vector<2x256xf32> to vector<2x192xf32>
    %377 = arith.negf %376 : vector<2x192xf32>
    %378 = math.exp %377 : vector<2x192xf32>
    %cst_145 = arith.constant 1.000000e+00 : f32
    %379 = vector.broadcast %cst_145 : f32 to vector<2x192xf32>
    %380 = arith.addf %379, %378 : vector<2x192xf32>
    %381 = arith.divf %379, %380 : vector<2x192xf32>
    %382 = vector.extract_strided_slice %375 {offsets = [0, 192], sizes = [2, 64], strides = [1, 1]} : vector<2x256xf32> to vector<2x64xf32>
    %383 = math.tanh %382 : vector<2x64xf32>
    %384 = vector.extract_strided_slice %381 {offsets = [0, 64], sizes = [2, 64], strides = [1, 1]} : vector<2x192xf32> to vector<2x64xf32>
    %385 = arith.mulf %384, %365 : vector<2x64xf32>
    %386 = vector.extract_strided_slice %381 {offsets = [0, 0], sizes = [2, 64], strides = [1, 1]} : vector<2x192xf32> to vector<2x64xf32>
    %387 = arith.mulf %386, %383 : vector<2x64xf32>
    %388 = arith.addf %385, %387 : vector<2x64xf32>
    %389 = vector.extract_strided_slice %381 {offsets = [0, 128], sizes = [2, 64], strides = [1, 1]} : vector<2x192xf32> to vector<2x64xf32>
    %390 = math.tanh %388 : vector<2x64xf32>
    %391 = arith.mulf %389, %390 : vector<2x64xf32>
    %392 = vector.extract_strided_slice %391 {offsets = [0, 0], sizes = [2, 32], strides = [1, 1]} : vector<2x64xf32> to vector<2x32xf32>
    %c10_146 = arith.constant 10 : index
    %c0_147 = arith.constant 0 : index
    %393 = vector.load %arg28[%c10_146, %c0_147] : memref<16x32xf32, #tpu.memory_space<vmem>>, vector<2x32xf32>
    tpu.vector_store %arg28[%c10_146, %c0_147], %392 {strides = array<i32>} : memref<16x32xf32, #tpu.memory_space<vmem>>, vector<2x32xf32>,
    %394 = vector.extract_strided_slice %391 {offsets = [0, 32], sizes = [2, 32], strides = [1, 1]} : vector<2x64xf32> to vector<2x32xf32>
    %c4_148 = arith.constant 4 : index
    %c0_149 = arith.constant 0 : index
    %395 = vector.load %arg29[%c4_148, %c0_149] : memref<16x32xf32, #tpu.memory_space<vmem>>, vector<2x32xf32>
    tpu.vector_store %arg29[%c4_148, %c0_149], %394 {strides = array<i32>} : memref<16x32xf32, #tpu.memory_space<vmem>>, vector<2x32xf32>,
    %396 = vector.extract_strided_slice %254 {offsets = [12, 0], sizes = [2, 256], strides = [1, 1]} : vector<16x256xf32> to vector<2x256xf32>
    %cst_150 = arith.constant dense<0.000000e+00> : vector<2x256xf32>
    %397 = tpu.matmul %391, %255, %cst_150 {dimension_numbers = #tpu.dot_dimension_numbers<[1], [0], [0], [1], [0, 0, 1, 1], [], []>} : vector<2x64xf32>, vector<64x256xf32>, vector<2x256xf32> -> vector<2x256xf32>
    %398 = arith.addf %396, %397 : vector<2x256xf32>
    %399 = vector.extract_strided_slice %398 {offsets = [0, 0], sizes = [2, 192], strides = [1, 1]} : vector<2x256xf32> to vector<2x192xf32>
    %400 = arith.negf %399 : vector<2x192xf32>
    %401 = math.exp %400 : vector<2x192xf32>
    %cst_151 = arith.constant 1.000000e+00 : f32
    %402 = vector.broadcast %cst_151 : f32 to vector<2x192xf32>
    %403 = arith.addf %402, %401 : vector<2x192xf32>
    %404 = arith.divf %402, %403 : vector<2x192xf32>
    %405 = vector.extract_strided_slice %398 {offsets = [0, 192], sizes = [2, 64], strides = [1, 1]} : vector<2x256xf32> to vector<2x64xf32>
    %406 = math.tanh %405 : vector<2x64xf32>
    %407 = vector.extract_strided_slice %404 {offsets = [0, 64], sizes = [2, 64], strides = [1, 1]} : vector<2x192xf32> to vector<2x64xf32>
    %408 = arith.mulf %407, %388 : vector<2x64xf32>
    %409 = vector.extract_strided_slice %404 {offsets = [0, 0], sizes = [2, 64], strides = [1, 1]} : vector<2x192xf32> to vector<2x64xf32>
    %410 = arith.mulf %409, %406 : vector<2x64xf32>
    %411 = arith.addf %408, %410 : vector<2x64xf32>
    %412 = vector.extract_strided_slice %404 {offsets = [0, 128], sizes = [2, 64], strides = [1, 1]} : vector<2x192xf32> to vector<2x64xf32>
    %413 = math.tanh %411 : vector<2x64xf32>
    %414 = arith.mulf %412, %413 : vector<2x64xf32>
    %415 = vector.extract_strided_slice %414 {offsets = [0, 0], sizes = [2, 32], strides = [1, 1]} : vector<2x64xf32> to vector<2x32xf32>
    %c12_152 = arith.constant 12 : index
    %c0_153 = arith.constant 0 : index
    %416 = vector.load %arg28[%c12_152, %c0_153] : memref<16x32xf32, #tpu.memory_space<vmem>>, vector<2x32xf32>
    tpu.vector_store %arg28[%c12_152, %c0_153], %415 {strides = array<i32>} : memref<16x32xf32, #tpu.memory_space<vmem>>, vector<2x32xf32>,
    %417 = vector.extract_strided_slice %414 {offsets = [0, 32], sizes = [2, 32], strides = [1, 1]} : vector<2x64xf32> to vector<2x32xf32>
    %c2_154 = arith.constant 2 : index
    %c0_155 = arith.constant 0 : index
    %418 = vector.load %arg29[%c2_154, %c0_155] : memref<16x32xf32, #tpu.memory_space<vmem>>, vector<2x32xf32>
    tpu.vector_store %arg29[%c2_154, %c0_155], %417 {strides = array<i32>} : memref<16x32xf32, #tpu.memory_space<vmem>>, vector<2x32xf32>,
    %419 = vector.extract_strided_slice %254 {offsets = [14, 0], sizes = [2, 256], strides = [1, 1]} : vector<16x256xf32> to vector<2x256xf32>
    %cst_156 = arith.constant dense<0.000000e+00> : vector<2x256xf32>
    %420 = tpu.matmul %414, %255, %cst_156 {dimension_numbers = #tpu.dot_dimension_numbers<[1], [0], [0], [1], [0, 0, 1, 1], [], []>} : vector<2x64xf32>, vector<64x256xf32>, vector<2x256xf32> -> vector<2x256xf32>
    %421 = arith.addf %419, %420 : vector<2x256xf32>
    %422 = vector.extract_strided_slice %421 {offsets = [0, 0], sizes = [2, 192], strides = [1, 1]} : vector<2x256xf32> to vector<2x192xf32>
    %423 = arith.negf %422 : vector<2x192xf32>
    %424 = math.exp %423 : vector<2x192xf32>
    %cst_157 = arith.constant 1.000000e+00 : f32
    %425 = vector.broadcast %cst_157 : f32 to vector<2x192xf32>
    %426 = arith.addf %425, %424 : vector<2x192xf32>
    %427 = arith.divf %425, %426 : vector<2x192xf32>
    %428 = vector.extract_strided_slice %421 {offsets = [0, 192], sizes = [2, 64], strides = [1, 1]} : vector<2x256xf32> to vector<2x64xf32>
    %429 = math.tanh %428 : vector<2x64xf32>
    %430 = vector.extract_strided_slice %427 {offsets = [0, 64], sizes = [2, 64], strides = [1, 1]} : vector<2x192xf32> to vector<2x64xf32>
    %431 = arith.mulf %430, %411 : vector<2x64xf32>
    %432 = vector.extract_strided_slice %427 {offsets = [0, 0], sizes = [2, 64], strides = [1, 1]} : vector<2x192xf32> to vector<2x64xf32>
    %433 = arith.mulf %432, %429 : vector<2x64xf32>
    %434 = arith.addf %431, %433 : vector<2x64xf32>
    %435 = vector.extract_strided_slice %427 {offsets = [0, 128], sizes = [2, 64], strides = [1, 1]} : vector<2x192xf32> to vector<2x64xf32>
    %436 = math.tanh %434 : vector<2x64xf32>
    %437 = arith.mulf %435, %436 : vector<2x64xf32>
    %438 = vector.extract_strided_slice %437 {offsets = [0, 0], sizes = [2, 32], strides = [1, 1]} : vector<2x64xf32> to vector<2x32xf32>
    %c14_158 = arith.constant 14 : index
    %c0_159 = arith.constant 0 : index
    %439 = vector.load %arg28[%c14_158, %c0_159] : memref<16x32xf32, #tpu.memory_space<vmem>>, vector<2x32xf32>
    tpu.vector_store %arg28[%c14_158, %c0_159], %438 {strides = array<i32>} : memref<16x32xf32, #tpu.memory_space<vmem>>, vector<2x32xf32>,
    %440 = vector.extract_strided_slice %437 {offsets = [0, 32], sizes = [2, 32], strides = [1, 1]} : vector<2x64xf32> to vector<2x32xf32>
    %c0_160 = arith.constant 0 : index
    %c0_161 = arith.constant 0 : index
    %441 = vector.load %arg29[%c0_160, %c0_161] : memref<16x32xf32, #tpu.memory_space<vmem>>, vector<2x32xf32>
    tpu.vector_store %arg29[%c0_160, %c0_161], %440 {strides = array<i32>} : memref<16x32xf32, #tpu.memory_space<vmem>>, vector<2x32xf32>,
    %c0_162 = arith.constant 0 : index
    %c0_163 = arith.constant 0 : index
    %442 = vector.load %arg28[%c0_162, %c0_163] : memref<16x32xf32, #tpu.memory_space<vmem>>, vector<16x32xf32>
    %c0_164 = arith.constant 0 : index
    %c0_165 = arith.constant 0 : index
    %443 = vector.load %arg29[%c0_164, %c0_165] : memref<16x32xf32, #tpu.memory_space<vmem>>, vector<16x32xf32>
    %444 = tpu.concatenate %442, %443 in 1 : vector<16x32xf32>, vector<16x32xf32> -> vector<16x64xf32>
    %c0_166 = arith.constant 0 : index
    %c0_167 = arith.constant 0 : index
    %445 = vector.load %arg3[%c0_166, %c0_167] : memref<64x64xf32, #tpu.memory_space<vmem>>, vector<64x64xf32>
    %cst_168 = arith.constant dense<0.000000e+00> : vector<16x64xf32>
    %446 = tpu.matmul %444, %445, %cst_168 {dimension_numbers = #tpu.dot_dimension_numbers<[1], [0], [0], [1], [0, 0, 1, 1], [], []>} : vector<16x64xf32>, vector<64x64xf32>, vector<16x64xf32> -> vector<16x64xf32>
    %c0_169 = arith.constant 0 : index
    %c0_170 = arith.constant 0 : index
    %447 = vector.load %arg4[%c0_169, %c0_170] : memref<64x64xf32, #tpu.memory_space<vmem>>, vector<64x64xf32>
    %cst_171 = arith.constant dense<0.000000e+00> : vector<16x64xf32>
    %448 = tpu.matmul %444, %447, %cst_171 {dimension_numbers = #tpu.dot_dimension_numbers<[1], [0], [0], [1], [0, 0, 1, 1], [], []>} : vector<16x64xf32>, vector<64x64xf32>, vector<16x64xf32> -> vector<16x64xf32>
    %c0_172 = arith.constant 0 : index
    %c0_173 = arith.constant 0 : index
    %449 = vector.load %arg5[%c0_172, %c0_173] : memref<64x64xf32, #tpu.memory_space<vmem>>, vector<64x64xf32>
    %cst_174 = arith.constant dense<0.000000e+00> : vector<16x64xf32>
    %450 = tpu.matmul %444, %449, %cst_174 {dimension_numbers = #tpu.dot_dimension_numbers<[1], [0], [0], [1], [0, 0, 1, 1], [], []>} : vector<16x64xf32>, vector<64x64xf32>, vector<16x64xf32> -> vector<16x64xf32>
    %cst_175 = arith.constant dense<0.000000e+00> : vector<16x64xf32>
    %451 = tpu.matmul %1, %446, %cst_175 {dimension_numbers = #tpu.dot_dimension_numbers<[1], [0], [0], [1], [0, 0, 1, 1], [], []>} : vector<16x16xf32>, vector<16x64xf32>, vector<16x64xf32> -> vector<16x64xf32>
    %452 = arith.addf %451, %448 : vector<16x64xf32>
    %cst_176 = arith.constant dense<0.000000e+00> : vector<16x64xf32>
    %453 = tpu.matmul %2, %450, %cst_176 {dimension_numbers = #tpu.dot_dimension_numbers<[1], [0], [0], [1], [0, 0, 1, 1], [], []>} : vector<16x16xf32>, vector<16x64xf32>, vector<16x64xf32> -> vector<16x64xf32>
    %454 = arith.addf %452, %453 : vector<16x64xf32>
    %455 = vector.broadcast %0 : f32 to vector<16x64xf32>
    %456 = arith.addf %454, %455 : vector<16x64xf32>
    %cst_177 = arith.constant 0.000000e+00 : f32
    %457 = vector.broadcast %cst_177 : f32 to vector<16x64xf32>
    %458 = arith.maximumf %456, %457 : vector<16x64xf32>
    %c0_178 = arith.constant 0 : index
    %c0_179 = arith.constant 0 : index
    %459 = vector.load %arg8[%c0_178, %c0_179] : memref<64x32xf32, #tpu.memory_space<vmem>>, vector<64x32xf32>
    %cst_180 = arith.constant dense<0.000000e+00> : vector<16x32xf32>
    %460 = tpu.matmul %458, %459, %cst_180 {dimension_numbers = #tpu.dot_dimension_numbers<[1], [0], [0], [1], [0, 0, 1, 1], [], []>} : vector<16x64xf32>, vector<64x32xf32>, vector<16x32xf32> -> vector<16x32xf32>
    %c0_181 = arith.constant 0 : index
    %c0_182 = arith.constant 0 : index
    %461 = vector.load %arg9[%c0_181, %c0_182] : memref<64x32xf32, #tpu.memory_space<vmem>>, vector<64x32xf32>
    %cst_183 = arith.constant dense<0.000000e+00> : vector<16x32xf32>
    %462 = tpu.matmul %458, %461, %cst_183 {dimension_numbers = #tpu.dot_dimension_numbers<[1], [0], [0], [1], [0, 0, 1, 1], [], []>} : vector<16x64xf32>, vector<64x32xf32>, vector<16x32xf32> -> vector<16x32xf32>
    %463 = arith.maximumf %460, %462 : vector<16x32xf32>
    %c0_184 = arith.constant 0 : index
    %c0_185 = arith.constant 0 : index
    %464 = vector.load %arg3[%c0_184, %c0_185] : memref<64x64xf32, #tpu.memory_space<vmem>>, vector<32x32xf32>
    %cst_186 = arith.constant dense<0.000000e+00> : vector<16x32xf32>
    %465 = tpu.matmul %463, %464, %cst_186 {dimension_numbers = #tpu.dot_dimension_numbers<[1], [0], [0], [1], [0, 0, 1, 1], [], []>} : vector<16x32xf32>, vector<32x32xf32>, vector<16x32xf32> -> vector<16x32xf32>
    %c0_187 = arith.constant 0 : index
    %c0_188 = arith.constant 0 : index
    %466 = vector.load %arg4[%c0_187, %c0_188] : memref<64x64xf32, #tpu.memory_space<vmem>>, vector<32x32xf32>
    %cst_189 = arith.constant dense<0.000000e+00> : vector<16x32xf32>
    %467 = tpu.matmul %463, %466, %cst_189 {dimension_numbers = #tpu.dot_dimension_numbers<[1], [0], [0], [1], [0, 0, 1, 1], [], []>} : vector<16x32xf32>, vector<32x32xf32>, vector<16x32xf32> -> vector<16x32xf32>
    %c0_190 = arith.constant 0 : index
    %c0_191 = arith.constant 0 : index
    %468 = vector.load %arg5[%c0_190, %c0_191] : memref<64x64xf32, #tpu.memory_space<vmem>>, vector<32x32xf32>
    %cst_192 = arith.constant dense<0.000000e+00> : vector<16x32xf32>
    %469 = tpu.matmul %463, %468, %cst_192 {dimension_numbers = #tpu.dot_dimension_numbers<[1], [0], [0], [1], [0, 0, 1, 1], [], []>} : vector<16x32xf32>, vector<32x32xf32>, vector<16x32xf32> -> vector<16x32xf32>
    %cst_193 = arith.constant dense<0.000000e+00> : vector<16x32xf32>
    %470 = tpu.matmul %1, %465, %cst_193 {dimension_numbers = #tpu.dot_dimension_numbers<[1], [0], [0], [1], [0, 0, 1, 1], [], []>} : vector<16x16xf32>, vector<16x32xf32>, vector<16x32xf32> -> vector<16x32xf32>
    %471 = arith.addf %470, %467 : vector<16x32xf32>
    %cst_194 = arith.constant dense<0.000000e+00> : vector<16x32xf32>
    %472 = tpu.matmul %2, %469, %cst_194 {dimension_numbers = #tpu.dot_dimension_numbers<[1], [0], [0], [1], [0, 0, 1, 1], [], []>} : vector<16x16xf32>, vector<16x32xf32>, vector<16x32xf32> -> vector<16x32xf32>
    %473 = arith.addf %471, %472 : vector<16x32xf32>
    %474 = vector.broadcast %0 : f32 to vector<16x32xf32>
    %475 = arith.addf %473, %474 : vector<16x32xf32>
    %cst_195 = arith.constant 0.000000e+00 : f32
    %476 = vector.broadcast %cst_195 : f32 to vector<16x32xf32>
    %477 = arith.maximumf %475, %476 : vector<16x32xf32>
    %c0_196 = arith.constant 0 : index
    %c0_197 = arith.constant 0 : index
    %478 = vector.load %arg8[%c0_196, %c0_197] : memref<64x32xf32, #tpu.memory_space<vmem>>, vector<32x16xf32>
    %cst_198 = arith.constant dense<0.000000e+00> : vector<16x16xf32>
    %479 = tpu.matmul %477, %478, %cst_198 {dimension_numbers = #tpu.dot_dimension_numbers<[1], [0], [0], [1], [0, 0, 1, 1], [], []>} : vector<16x32xf32>, vector<32x16xf32>, vector<16x16xf32> -> vector<16x16xf32>
    %c0_199 = arith.constant 0 : index
    %c0_200 = arith.constant 0 : index
    %480 = vector.load %arg9[%c0_199, %c0_200] : memref<64x32xf32, #tpu.memory_space<vmem>>, vector<32x16xf32>
    %cst_201 = arith.constant dense<0.000000e+00> : vector<16x16xf32>
    %481 = tpu.matmul %477, %480, %cst_201 {dimension_numbers = #tpu.dot_dimension_numbers<[1], [0], [0], [1], [0, 0, 1, 1], [], []>} : vector<16x32xf32>, vector<32x16xf32>, vector<16x16xf32> -> vector<16x16xf32>
    %482 = arith.maximumf %479, %481 : vector<16x16xf32>
    %c0_202 = arith.constant 0 : index
    %c0_203 = arith.constant 0 : index
    %483 = vector.load %arg3[%c0_202, %c0_203] : memref<64x64xf32, #tpu.memory_space<vmem>>, vector<16x16xf32>
    %cst_204 = arith.constant dense<0.000000e+00> : vector<16x16xf32>
    %484 = tpu.matmul %482, %483, %cst_204 {dimension_numbers = #tpu.dot_dimension_numbers<[1], [0], [0], [1], [0, 0, 1, 1], [], []>} : vector<16x16xf32>, vector<16x16xf32>, vector<16x16xf32> -> vector<16x16xf32>
    %c0_205 = arith.constant 0 : index
    %c0_206 = arith.constant 0 : index
    %485 = vector.load %arg4[%c0_205, %c0_206] : memref<64x64xf32, #tpu.memory_space<vmem>>, vector<16x16xf32>
    %cst_207 = arith.constant dense<0.000000e+00> : vector<16x16xf32>
    %486 = tpu.matmul %482, %485, %cst_207 {dimension_numbers = #tpu.dot_dimension_numbers<[1], [0], [0], [1], [0, 0, 1, 1], [], []>} : vector<16x16xf32>, vector<16x16xf32>, vector<16x16xf32> -> vector<16x16xf32>
    %c0_208 = arith.constant 0 : index
    %c0_209 = arith.constant 0 : index
    %487 = vector.load %arg5[%c0_208, %c0_209] : memref<64x64xf32, #tpu.memory_space<vmem>>, vector<16x16xf32>
    %cst_210 = arith.constant dense<0.000000e+00> : vector<16x16xf32>
    %488 = tpu.matmul %482, %487, %cst_210 {dimension_numbers = #tpu.dot_dimension_numbers<[1], [0], [0], [1], [0, 0, 1, 1], [], []>} : vector<16x16xf32>, vector<16x16xf32>, vector<16x16xf32> -> vector<16x16xf32>
    %cst_211 = arith.constant dense<0.000000e+00> : vector<16x16xf32>
    %489 = tpu.matmul %1, %484, %cst_211 {dimension_numbers = #tpu.dot_dimension_numbers<[1], [0], [0], [1], [0, 0, 1, 1], [], []>} : vector<16x16xf32>, vector<16x16xf32>, vector<16x16xf32> -> vector<16x16xf32>
    %490 = arith.addf %489, %486 : vector<16x16xf32>
    %cst_212 = arith.constant dense<0.000000e+00> : vector<16x16xf32>
    %491 = tpu.matmul %2, %488, %cst_212 {dimension_numbers = #tpu.dot_dimension_numbers<[1], [0], [0], [1], [0, 0, 1, 1], [], []>} : vector<16x16xf32>, vector<16x16xf32>, vector<16x16xf32> -> vector<16x16xf32>
    %492 = arith.addf %490, %491 : vector<16x16xf32>
    %493 = vector.broadcast %0 : f32 to vector<16x16xf32>
    %494 = arith.addf %492, %493 : vector<16x16xf32>
    %cst_213 = arith.constant 0.000000e+00 : f32
    %495 = vector.broadcast %cst_213 : f32 to vector<16x16xf32>
    %496 = arith.maximumf %494, %495 : vector<16x16xf32>
    %c0_214 = arith.constant 0 : index
    %c0_215 = arith.constant 0 : index
    %497 = vector.load %arg8[%c0_214, %c0_215] : memref<64x32xf32, #tpu.memory_space<vmem>>, vector<16x8xf32>
    %cst_216 = arith.constant dense<0.000000e+00> : vector<16x8xf32>
    %498 = tpu.matmul %496, %497, %cst_216 {dimension_numbers = #tpu.dot_dimension_numbers<[1], [0], [0], [1], [0, 0, 1, 1], [], []>} : vector<16x16xf32>, vector<16x8xf32>, vector<16x8xf32> -> vector<16x8xf32>
    %c0_217 = arith.constant 0 : index
    %c0_218 = arith.constant 0 : index
    %499 = vector.load %arg9[%c0_217, %c0_218] : memref<64x32xf32, #tpu.memory_space<vmem>>, vector<16x8xf32>
    %cst_219 = arith.constant dense<0.000000e+00> : vector<16x8xf32>
    %500 = tpu.matmul %496, %499, %cst_219 {dimension_numbers = #tpu.dot_dimension_numbers<[1], [0], [0], [1], [0, 0, 1, 1], [], []>} : vector<16x16xf32>, vector<16x8xf32>, vector<16x8xf32> -> vector<16x8xf32>
    %501 = arith.maximumf %498, %500 : vector<16x8xf32>
    %c0_220 = arith.constant 0 : index
    %c0_221 = arith.constant 0 : index
    %502 = vector.load %arg3[%c0_220, %c0_221] : memref<64x64xf32, #tpu.memory_space<vmem>>, vector<8x8xf32>
    %cst_222 = arith.constant dense<0.000000e+00> : vector<16x8xf32>
    %503 = tpu.matmul %501, %502, %cst_222 {dimension_numbers = #tpu.dot_dimension_numbers<[1], [0], [0], [1], [0, 0, 1, 1], [], []>} : vector<16x8xf32>, vector<8x8xf32>, vector<16x8xf32> -> vector<16x8xf32>
    %c0_223 = arith.constant 0 : index
    %c0_224 = arith.constant 0 : index
    %504 = vector.load %arg4[%c0_223, %c0_224] : memref<64x64xf32, #tpu.memory_space<vmem>>, vector<8x8xf32>
    %cst_225 = arith.constant dense<0.000000e+00> : vector<16x8xf32>
    %505 = tpu.matmul %501, %504, %cst_225 {dimension_numbers = #tpu.dot_dimension_numbers<[1], [0], [0], [1], [0, 0, 1, 1], [], []>} : vector<16x8xf32>, vector<8x8xf32>, vector<16x8xf32> -> vector<16x8xf32>
    %c0_226 = arith.constant 0 : index
    %c0_227 = arith.constant 0 : index
    %506 = vector.load %arg5[%c0_226, %c0_227] : memref<64x64xf32, #tpu.memory_space<vmem>>, vector<8x8xf32>
    %cst_228 = arith.constant dense<0.000000e+00> : vector<16x8xf32>
    %507 = tpu.matmul %501, %506, %cst_228 {dimension_numbers = #tpu.dot_dimension_numbers<[1], [0], [0], [1], [0, 0, 1, 1], [], []>} : vector<16x8xf32>, vector<8x8xf32>, vector<16x8xf32> -> vector<16x8xf32>
    %cst_229 = arith.constant dense<0.000000e+00> : vector<16x8xf32>
    %508 = tpu.matmul %1, %503, %cst_229 {dimension_numbers = #tpu.dot_dimension_numbers<[1], [0], [0], [1], [0, 0, 1, 1], [], []>} : vector<16x16xf32>, vector<16x8xf32>, vector<16x8xf32> -> vector<16x8xf32>
    %509 = arith.addf %508, %505 : vector<16x8xf32>
    %cst_230 = arith.constant dense<0.000000e+00> : vector<16x8xf32>
    %510 = tpu.matmul %2, %507, %cst_230 {dimension_numbers = #tpu.dot_dimension_numbers<[1], [0], [0], [1], [0, 0, 1, 1], [], []>} : vector<16x16xf32>, vector<16x8xf32>, vector<16x8xf32> -> vector<16x8xf32>
    %511 = arith.addf %509, %510 : vector<16x8xf32>
    %512 = vector.broadcast %0 : f32 to vector<16x8xf32>
    %513 = arith.addf %511, %512 : vector<16x8xf32>
    %cst_231 = arith.constant 0.000000e+00 : f32
    %514 = vector.broadcast %cst_231 : f32 to vector<16x8xf32>
    %515 = arith.maximumf %513, %514 : vector<16x8xf32>
    %c0_232 = arith.constant 0 : index
    %c0_233 = arith.constant 0 : index
    %516 = vector.load %arg8[%c0_232, %c0_233] : memref<64x32xf32, #tpu.memory_space<vmem>>, vector<8x4xf32>
    %cst_234 = arith.constant dense<0.000000e+00> : vector<16x4xf32>
    %517 = tpu.matmul %515, %516, %cst_234 {dimension_numbers = #tpu.dot_dimension_numbers<[1], [0], [0], [1], [0, 0, 1, 1], [], []>} : vector<16x8xf32>, vector<8x4xf32>, vector<16x4xf32> -> vector<16x4xf32>
    %c0_235 = arith.constant 0 : index
    %c0_236 = arith.constant 0 : index
    %518 = vector.load %arg9[%c0_235, %c0_236] : memref<64x32xf32, #tpu.memory_space<vmem>>, vector<8x4xf32>
    %cst_237 = arith.constant dense<0.000000e+00> : vector<16x4xf32>
    %519 = tpu.matmul %515, %518, %cst_237 {dimension_numbers = #tpu.dot_dimension_numbers<[1], [0], [0], [1], [0, 0, 1, 1], [], []>} : vector<16x8xf32>, vector<8x4xf32>, vector<16x4xf32> -> vector<16x4xf32>
    %520 = arith.maximumf %517, %519 : vector<16x4xf32>
    %c0_238 = arith.constant 0 : index
    %c0_239 = arith.constant 0 : index
    %521 = vector.load %arg3[%c0_238, %c0_239] : memref<64x64xf32, #tpu.memory_space<vmem>>, vector<4x4xf32>
    %cst_240 = arith.constant dense<0.000000e+00> : vector<16x4xf32>
    %522 = tpu.matmul %520, %521, %cst_240 {dimension_numbers = #tpu.dot_dimension_numbers<[1], [0], [0], [1], [0, 0, 1, 1], [], []>} : vector<16x4xf32>, vector<4x4xf32>, vector<16x4xf32> -> vector<16x4xf32>
    %c0_241 = arith.constant 0 : index
    %c0_242 = arith.constant 0 : index
    %523 = vector.load %arg4[%c0_241, %c0_242] : memref<64x64xf32, #tpu.memory_space<vmem>>, vector<4x4xf32>
    %cst_243 = arith.constant dense<0.000000e+00> : vector<16x4xf32>
    %524 = tpu.matmul %520, %523, %cst_243 {dimension_numbers = #tpu.dot_dimension_numbers<[1], [0], [0], [1], [0, 0, 1, 1], [], []>} : vector<16x4xf32>, vector<4x4xf32>, vector<16x4xf32> -> vector<16x4xf32>
    %c0_244 = arith.constant 0 : index
    %c0_245 = arith.constant 0 : index
    %525 = vector.load %arg5[%c0_244, %c0_245] : memref<64x64xf32, #tpu.memory_space<vmem>>, vector<4x4xf32>
    %cst_246 = arith.constant dense<0.000000e+00> : vector<16x4xf32>
    %526 = tpu.matmul %520, %525, %cst_246 {dimension_numbers = #tpu.dot_dimension_numbers<[1], [0], [0], [1], [0, 0, 1, 1], [], []>} : vector<16x4xf32>, vector<4x4xf32>, vector<16x4xf32> -> vector<16x4xf32>
    %cst_247 = arith.constant dense<0.000000e+00> : vector<16x4xf32>
    %527 = tpu.matmul %1, %522, %cst_247 {dimension_numbers = #tpu.dot_dimension_numbers<[1], [0], [0], [1], [0, 0, 1, 1], [], []>} : vector<16x16xf32>, vector<16x4xf32>, vector<16x4xf32> -> vector<16x4xf32>
    %528 = arith.addf %527, %524 : vector<16x4xf32>
    %cst_248 = arith.constant dense<0.000000e+00> : vector<16x4xf32>
    %529 = tpu.matmul %2, %526, %cst_248 {dimension_numbers = #tpu.dot_dimension_numbers<[1], [0], [0], [1], [0, 0, 1, 1], [], []>} : vector<16x16xf32>, vector<16x4xf32>, vector<16x4xf32> -> vector<16x4xf32>
    %530 = arith.addf %528, %529 : vector<16x4xf32>
    %531 = vector.broadcast %0 : f32 to vector<16x4xf32>
    %532 = arith.addf %530, %531 : vector<16x4xf32>
    %cst_249 = arith.constant 0.000000e+00 : f32
    %533 = vector.broadcast %cst_249 : f32 to vector<16x4xf32>
    %534 = arith.maximumf %532, %533 : vector<16x4xf32>
    %c0_250 = arith.constant 0 : index
    %c0_251 = arith.constant 0 : index
    %535 = vector.load %arg8[%c0_250, %c0_251] : memref<64x32xf32, #tpu.memory_space<vmem>>, vector<4x2xf32>
    %cst_252 = arith.constant dense<0.000000e+00> : vector<16x2xf32>
    %536 = tpu.matmul %534, %535, %cst_252 {dimension_numbers = #tpu.dot_dimension_numbers<[1], [0], [0], [1], [0, 0, 1, 1], [], []>} : vector<16x4xf32>, vector<4x2xf32>, vector<16x2xf32> -> vector<16x2xf32>
    %c0_253 = arith.constant 0 : index
    %c0_254 = arith.constant 0 : index
    %537 = vector.load %arg9[%c0_253, %c0_254] : memref<64x32xf32, #tpu.memory_space<vmem>>, vector<4x2xf32>
    %cst_255 = arith.constant dense<0.000000e+00> : vector<16x2xf32>
    %538 = tpu.matmul %534, %537, %cst_255 {dimension_numbers = #tpu.dot_dimension_numbers<[1], [0], [0], [1], [0, 0, 1, 1], [], []>} : vector<16x4xf32>, vector<4x2xf32>, vector<16x2xf32> -> vector<16x2xf32>
    %539 = arith.maximumf %536, %538 : vector<16x2xf32>
    %c0_256 = arith.constant 0 : index
    %c0_257 = arith.constant 0 : index
    %540 = vector.load %arg3[%c0_256, %c0_257] : memref<64x64xf32, #tpu.memory_space<vmem>>, vector<2x2xf32>
    %cst_258 = arith.constant dense<0.000000e+00> : vector<16x2xf32>
    %541 = tpu.matmul %539, %540, %cst_258 {dimension_numbers = #tpu.dot_dimension_numbers<[1], [0], [0], [1], [0, 0, 1, 1], [], []>} : vector<16x2xf32>, vector<2x2xf32>, vector<16x2xf32> -> vector<16x2xf32>
    %c0_259 = arith.constant 0 : index
    %c0_260 = arith.constant 0 : index
    %542 = vector.load %arg4[%c0_259, %c0_260] : memref<64x64xf32, #tpu.memory_space<vmem>>, vector<2x2xf32>
    %cst_261 = arith.constant dense<0.000000e+00> : vector<16x2xf32>
    %543 = tpu.matmul %539, %542, %cst_261 {dimension_numbers = #tpu.dot_dimension_numbers<[1], [0], [0], [1], [0, 0, 1, 1], [], []>} : vector<16x2xf32>, vector<2x2xf32>, vector<16x2xf32> -> vector<16x2xf32>
    %c0_262 = arith.constant 0 : index
    %c0_263 = arith.constant 0 : index
    %544 = vector.load %arg5[%c0_262, %c0_263] : memref<64x64xf32, #tpu.memory_space<vmem>>, vector<2x2xf32>
    %cst_264 = arith.constant dense<0.000000e+00> : vector<16x2xf32>
    %545 = tpu.matmul %539, %544, %cst_264 {dimension_numbers = #tpu.dot_dimension_numbers<[1], [0], [0], [1], [0, 0, 1, 1], [], []>} : vector<16x2xf32>, vector<2x2xf32>, vector<16x2xf32> -> vector<16x2xf32>
    %cst_265 = arith.constant dense<0.000000e+00> : vector<16x2xf32>
    %546 = tpu.matmul %1, %541, %cst_265 {dimension_numbers = #tpu.dot_dimension_numbers<[1], [0], [0], [1], [0, 0, 1, 1], [], []>} : vector<16x16xf32>, vector<16x2xf32>, vector<16x2xf32> -> vector<16x2xf32>
    %547 = arith.addf %546, %543 : vector<16x2xf32>
    %cst_266 = arith.constant dense<0.000000e+00> : vector<16x2xf32>
    %548 = tpu.matmul %2, %545, %cst_266 {dimension_numbers = #tpu.dot_dimension_numbers<[1], [0], [0], [1], [0, 0, 1, 1], [], []>} : vector<16x16xf32>, vector<16x2xf32>, vector<16x2xf32> -> vector<16x2xf32>
    %549 = arith.addf %547, %548 : vector<16x2xf32>
    %550 = vector.broadcast %0 : f32 to vector<16x2xf32>
    %551 = arith.addf %549, %550 : vector<16x2xf32>
    %cst_267 = arith.constant 0.000000e+00 : f32
    %552 = vector.broadcast %cst_267 : f32 to vector<16x2xf32>
    %553 = arith.maximumf %551, %552 : vector<16x2xf32>
    %554 = vector.extract_strided_slice %553 {offsets = [0, 0], sizes = [16, 1], strides = [1, 1]} : vector<16x2xf32> to vector<16x1xf32>
    %555 = vector.extract_strided_slice %553 {offsets = [0, 1], sizes = [16, 1], strides = [1, 1]} : vector<16x2xf32> to vector<16x1xf32>
    %556 = arith.maximumf %554, %555 : vector<16x1xf32>
    %c0_268 = arith.constant 0 : index
    %c0_269 = arith.constant 0 : index
    %557 = vector.load %arg22[%c0_268, %c0_269] : memref<2x16xf32, #tpu.memory_space<vmem>>, vector<2x16xf32>
    %c0_270 = arith.constant 0 : index
    %c0_271 = arith.constant 0 : index
    %558 = vector.load %arg19[%c0_270, %c0_271] : memref<16x32xf32, #tpu.memory_space<vmem>>, vector<16x32xf32>
    %559 = vector.broadcast %556 : vector<16x1xf32> to vector<16x32xf32>
    %560 = arith.mulf %559, %558 : vector<16x32xf32>
    %cst_272 = arith.constant dense<0.000000e+00> : vector<2x32xf32>
    %561 = tpu.matmul %557, %560, %cst_272 {dimension_numbers = #tpu.dot_dimension_numbers<[1], [0], [0], [1], [0, 0, 1, 1], [], []>} : vector<2x16xf32>, vector<16x32xf32>, vector<2x32xf32> -> vector<2x32xf32>
    %c0_273 = arith.constant 0 : index
    %c0_274 = arith.constant 0 : index
    %562 = vector.load %arg2[%c0_273, %c0_274] : memref<2x1xf32, #tpu.memory_space<vmem>>, vector<2x1xf32>
    %c0_275 = arith.constant 0 : index
    %c0_276 = arith.constant 0 : index
    %563 = vector.load %arg20[%c0_275, %c0_276] : memref<1x32xf32, #tpu.memory_space<vmem>>, vector<1x32xf32>
    %564 = vector.broadcast %562 : vector<2x1xf32> to vector<2x32xf32>
    %565 = vector.broadcast %563 : vector<1x32xf32> to vector<2x32xf32>
    %566 = arith.mulf %564, %565 : vector<2x32xf32>
    %567 = arith.addf %561, %566 : vector<2x32xf32>
    %c0_277 = arith.constant 0 : index
    %c0_278 = arith.constant 0 : index
    %568 = vector.load %arg21[%c0_277, %c0_278] : memref<1x32xf32, #tpu.memory_space<vmem>>, vector<1x32xf32>
    %569 = vector.broadcast %568 : vector<1x32xf32> to vector<2x32xf32>
    %570 = arith.addf %567, %569 : vector<2x32xf32>
    %c0_279 = arith.constant 0 : index
    %c0_280 = arith.constant 0 : index
    %571 = vector.load %arg23[%c0_279, %c0_280] : memref<32x32xf32, #tpu.memory_space<vmem>>, vector<32x32xf32>
    %cst_281 = arith.constant dense<0.000000e+00> : vector<2x32xf32>
    %572 = tpu.matmul %570, %571, %cst_281 {dimension_numbers = #tpu.dot_dimension_numbers<[1], [0], [0], [1], [0, 0, 1, 1], [], []>} : vector<2x32xf32>, vector<32x32xf32>, vector<2x32xf32> -> vector<2x32xf32>
    %c0_282 = arith.constant 0 : index
    %c0_283 = arith.constant 0 : index
    %573 = vector.load %arg24[%c0_282, %c0_283] : memref<1x32xf32, #tpu.memory_space<vmem>>, vector<1x32xf32>
    %574 = vector.broadcast %573 : vector<1x32xf32> to vector<2x32xf32>
    %575 = arith.addf %572, %574 : vector<2x32xf32>
    %c0_284 = arith.constant 0 : index
    %c0_285 = arith.constant 0 : index
    %576 = vector.load %arg25[%c0_284, %c0_285] : memref<32x8xf32, #tpu.memory_space<vmem>>, vector<32x8xf32>
    %cst_286 = arith.constant dense<0.000000e+00> : vector<2x8xf32>
    %577 = tpu.matmul %575, %576, %cst_286 {dimension_numbers = #tpu.dot_dimension_numbers<[1], [0], [0], [1], [0, 0, 1, 1], [], []>} : vector<2x32xf32>, vector<32x8xf32>, vector<2x8xf32> -> vector<2x8xf32>
    %c0_287 = arith.constant 0 : index
    %c0_288 = arith.constant 0 : index
    %578 = vector.load %arg26[%c0_287, %c0_288] : memref<1x8xf32, #tpu.memory_space<vmem>>, vector<1x8xf32>
    %579 = vector.broadcast %578 : vector<1x8xf32> to vector<2x8xf32>
    %580 = arith.addf %577, %579 : vector<2x8xf32>
    %c0_289 = arith.constant 0 : index
    %c0_290 = arith.constant 0 : index
    %581 = vector.load %arg27[%c0_289, %c0_290] : memref<2x8xf32, #tpu.memory_space<vmem>>, vector<2x8xf32>
    tpu.vector_store %arg27[%c0_289, %c0_290], %580 {strides = array<i32>} : memref<2x8xf32, #tpu.memory_space<vmem>>, vector<2x8xf32>,
    return
  }
}

</mosaic_0001>

<bundles_post_ra>
// kernel: onset_detector_forward.1
= control target key start
LH: loop header
LB: loop body
LE: loop exit
PB: predicated region body
PF: predicated region fallthrough
CT: control target
= control target key end

     0   :  { %s11124_s0 = inlined_call_operand.<no memory space> [shape: f32[1], index: 0, kind: input, shape index: {}]   ;;  %s11125_s1 = inlined_call_operand.vmem [shape: f32[16,16], index: 1, kind: input, shape index: {}]   ;;  %s11126_s2 = inlined_call_operand.vmem [shape: f32[2,1], index: 2, kind: input, shape index: {}]   ;;  %s11127_s3 = inlined_call_operand.hbm [shape: f32[64,64], index: 3, kind: input, shape index: {}]   ;;  %s11128_s4 = inlined_call_operand.hbm [shape: f32[64,64], index: 4, kind: input, shape index: {}]   ;;  %s11129_s5 = inlined_call_operand.hbm [shape: f32[64,64], index: 5, kind: input, shape index: {}]   ;;  %s11130_s6 = inlined_call_operand.hbm [shape: f32[16,16], index: 6, kind: input, shape index: {}]   ;;  %s11131_s7 = inlined_call_operand.hbm [shape: f32[16,16], index: 7, kind: input, shape index: {}]   ;;  %s11132_s8 = inlined_call_operand.vmem [shape: f32[64,32], index: 8, kind: input, shape index: {}]   ;;  %s11133_s9 = inlined_call_operand.vmem [shape: f32[64,32], index: 9, kind: input, shape index: {}]   ;;  %s11134_s10 = inlined_call_operand.hbm [shape: f32[16,16], index: 10, kind: input, shape index: {}]   ;;  %s11135_s11 = inlined_call_operand.hbm [shape: f32[16,256], index: 11, kind: input, shape index: {}]   ;;  %s11136_s12 = inlined_call_operand.hbm [shape: f32[16,256], index: 12, kind: input, shape index: {}]   ;;  %s11137_s13 = inlined_call_operand.vmem [shape: f32[64,256], index: 13, kind: input, shape index: {}]   ;;  %s11138_s14 = inlined_call_operand.hbm [shape: f32[1,256], index: 14, kind: input, shape index: {}]   ;;  %s11139_s15 = inlined_call_operand.vmem [shape: f32[64,256], index: 15, kind: input, shape index: {}]   ;;  %s11140_s16 = inlined_call_operand.hbm [shape: f32[64,256], index: 16, kind: input, shape index: {}]   ;;  %s11141_s17 = inlined_call_operand.hbm [shape: f32[64,256], index: 17, kind: input, shape index: {}]   ;;  %s11142_s18 = inlined_call_operand.hbm [shape: f32[1,256], index: 18, kind: input, shape index: {}]   ;;  %s11143_s19 = inlined_call_operand.hbm [shape: f32[16,32], index: 19, kind: input, shape index: {}]   ;;  %s11144_s20 = inlined_call_operand.vmem [shape: f32[1,32], index: 20, kind: input, shape index: {}]   ;;  %s11145_s21 = inlined_call_operand.hbm [shape: f32[1,32], index: 21, kind: input, shape index: {}]   ;;  %s11146_s22 = inlined_call_operand.hbm [shape: f32[2,16], index: 22, kind: input, shape index: {}]   ;;  %s11147_s23 = inlined_call_operand.vmem [shape: f32[32,32], index: 23, kind: input, shape index: {}]   ;;  %s11148_s24 = inlined_call_operand.hbm [shape: f32[1,32], index: 24, kind: input, shape index: {}]   ;;  %s11149_s25 = inlined_call_operand.vmem [shape: f32[32,8], index: 25, kind: input, shape index: {}]   ;;  %s11150_s26 = inlined_call_operand.hbm [shape: f32[1,8], index: 26, kind: input, shape index: {}]   ;;  %s11151_s27 = inlined_call_operand.hbm [shape: f32[2,8], index: 27, kind: output, shape index: {}]  }
   0x1   :  { %11163 = sst [smem:[#allocation43_spill]] %s11124_s0 }
   0x2   :  { %11164 = sst [smem:[#allocation44_spill]] %s11125_s1 }
   0x3   :  { %11165 = sst [smem:[#allocation45_spill]] %s11126_s2 }
   0x4   :  { %11166 = sst [smem:[#allocation46_spill]] %s11127_s3 }
   0x5   :  { %11167 = sst [smem:[#allocation47_spill]] %s11128_s4 }
   0x6   :  { %11168 = sst [smem:[#allocation48_spill]] %s11129_s5 }
   0x7   :  { %11169 = sst [smem:[#allocation49_spill]] %s11130_s6 }
   0x8   :  { %11170 = sst [smem:[#allocation50_spill]] %s11131_s7 }
   0x9   :  { %11171 = sst [smem:[#allocation51_spill]] %s11132_s8 }
   0xa   :  { %11172 = sst [smem:[#allocation52_spill]] %s11133_s9 }
   0xb   :  { %11173 = sst [smem:[#allocation53_spill]] %s11134_s10 }
   0xc   :  { %11174 = sst [smem:[#allocation54_spill]] %s11135_s11 }
   0xd   :  { %11175 = sst [smem:[#allocation55_spill]] %s11144_s20 }
   0xe   :  { %11176 = sst [smem:[#allocation56_spill]] %s11151_s27 }
   0xf   :  { %33 = vsyncpa [#allocation6], 0 }
  0x10   :  { %34 = vsyncpa [#allocation9], 0 }
  0x11   :  { %35 = vsyncpa [#allocation12], 0 }
  0x12   :  { %36 = vsyncpa [#allocation15], 0 }
  0x13   :  { %37 = vsyncpa [#allocation18], 0 }
  0x14   :  { %38 = vsyncpa [#allocation21], 0 }
  0x15   :  { %39 = vsyncpa [#allocation24], 0 }
  0x16   :  { %40 = vsyncpa [#allocation27], 0 }
  0x17   :  { %41 = vsyncpa [#allocation30], 0 }
  0x18   :  { %42 = vsyncpa [#allocation7], 0  ;;  %s9746_s7 = smov [#allocation8]   ;;  %s9747_s8 = smov [#allocation11]  }
  0x19   :  { %s66_s4 = sshll.u32 %s9746_s7, 4  ;;  %s90_s30 = sshll.u32 %s9747_s8, 4  ;;  %s67_s4 = int_to_ptr.vmem [resolvable:$true] %s66_s4  ;;  %s9916_s30 = int_to_ptr.vmem [resolvable:$true] %s90_s30 }
  0x1a   :  { %s11177_s28 = sld [smem:[#allocation47_spill]] }
  0x20   :  { %s9330_s0 = scalar_lea.hbm %s11177_s28, 1024 }
  0x21   :  { %p9331_p0 = scmp.ne.s32.totalorder %s11177_s28, %s9330_s0  ;;  %p9334_p1 = scmp.lt.u32.totalorder %s9330_s0, %s11177_s28 }
  0x23   :  { %p9336_p2 = pnand %p9334_p1, %p9331_p0 }
  0x25   :  { %9339 = shalt.err (!%p9336_p2)
}
  0x26   :  { %s9340_s11 = scalar_lea.vmem %s67_s4, 1024  ;;  %p9345_p4 = scmp.lt.s32.totalorder %s67_s4, %s67_s4 }
  0x27   :  { %p9341_p3 = scmp.ne.s32.totalorder %s67_s4, %s9340_s11  ;;  %p9346_p5 = scmp.lt.s32.totalorder %s9340_s11, %s9340_s11 }
  0x29   :  { %p9347_p6 = por %p9346_p5, %p9345_p4 }
  0x2b   :  { %p9348_p7 = pnand %p9347_p6, %p9341_p3 }
  0x2d   :  { %9351 = shalt.err (!%p9348_p7)
}
  0x2e   :  { %s9748_s2 = smov 128   ;;  %s9749_s3 = smov 8  }
  0x2f   :  { %72 = dma.hbm_to_vmem [thread:$0]  %s11177_s28, 1024, %s67_s4, [#allocation9], %s9748_s2, %s9748_s2, %s9749_s3  }
  0x30   :  { %s11178_s0 = sld [smem:[#allocation49_spill]] }
  0x36   :  { %s9352_s10 = scalar_lea.hbm %s11178_s0, 256 }
  0x37   :  { %p9353_p8 = scmp.ne.s32.totalorder %s11178_s0, %s9352_s10  ;;  %p9356_p9 = scmp.lt.u32.totalorder %s9352_s10, %s11178_s0 }
  0x39   :  { %p9358_p10 = pnand %p9356_p9, %p9353_p8 }
  0x3b   :  { %9361 = shalt.err (!%p9358_p10)
}
  0x3c   :  { %s9362_s27 = scalar_lea.vmem %s9916_s30, 256  ;;  %p9367_p12 = scmp.lt.s32.totalorder %s9916_s30, %s9916_s30 }
  0x3d   :  { %p9363_p11 = scmp.ne.s32.totalorder %s9916_s30, %s9362_s27  ;;  %p9368_p13 = scmp.lt.s32.totalorder %s9362_s27, %s9362_s27 }
  0x3f   :  { %p9369_p0 = por %p9368_p13, %p9367_p12 }
  0x41   :  { %p9370_p1 = pnand %p9369_p0, %p9363_p11 }
  0x43   :  { %9373 = shalt.err (!%p9370_p1)
}
  0x44   :  { %96 = dma.hbm_to_vmem [thread:$0]  %s11178_s0, 256, %s9916_s30, [#allocation12], %s9748_s2, %s9748_s2, %s9749_s3  }
  0x45   :  { %s9750_s7 = smov [#allocation14]   ;;  %s11179_s10 = sld [smem:[#allocation53_spill]] }
  0x46   :  { %s118_s8 = sshll.u32 %s9750_s7, 4  ;;  %s119_s8 = int_to_ptr.vmem [resolvable:$true] %s118_s8 }
  0x4b   :  { %s9374_s29 = scalar_lea.hbm %s11179_s10, 256 }
  0x4c   :  { %p9375_p2 = scmp.ne.s32.totalorder %s11179_s10, %s9374_s29  ;;  %p9378_p3 = scmp.lt.u32.totalorder %s9374_s29, %s11179_s10 }
  0x4e   :  { %p9380_p4 = pnand %p9378_p3, %p9375_p2 }
  0x50   :  { %9383 = shalt.err (!%p9380_p4)
}
  0x51   :  { %s9384_s20 = scalar_lea.vmem %s119_s8, 256  ;;  %p9389_p6 = scmp.lt.s32.totalorder %s119_s8, %s119_s8 }
  0x52   :  { %p9385_p5 = scmp.ne.s32.totalorder %s119_s8, %s9384_s20  ;;  %p9390_p7 = scmp.lt.s32.totalorder %s9384_s20, %s9384_s20 }
  0x54   :  { %p9391_p8 = por %p9390_p7, %p9389_p6 }
  0x56   :  { %p9392_p9 = pnand %p9391_p8, %p9385_p5 }
  0x58   :  { %9395 = shalt.err (!%p9392_p9)
}
  0x59   :  { %124 = dma.hbm_to_vmem [thread:$0]  %s11179_s10, 256, %s119_s8, [#allocation15], %s9748_s2, %s9748_s2, %s9749_s3  }
  0x5a   :  { %s9751_s4 = smov [#allocation17]   ;;  %s9752_s7 = smov [#allocation20]  }
  0x5b   :  { %s142_s28 = sshll.u32 %s9751_s4, 4  ;;  %s168_s9 = sshll.u32 %s9752_s7, 4  ;;  %s143_s28 = int_to_ptr.vmem [resolvable:$true] %s142_s28  ;;  %s169_s9 = int_to_ptr.vmem [resolvable:$true] %s168_s9 }
  0x5c   :  { %s9396_s1 = scalar_lea.hbm %s11136_s12, 512 }
  0x5d   :  { %p9397_p10 = scmp.ne.s32.totalorder %s11136_s12, %s9396_s1  ;;  %p9400_p11 = scmp.lt.u32.totalorder %s9396_s1, %s11136_s12 }
  0x5f   :  { %p9402_p12 = pnand %p9400_p11, %p9397_p10 }
  0x61   :  { %9405 = shalt.err (!%p9402_p12)
}
  0x62   :  { %s9406_s8 = scalar_lea.vmem %s143_s28, 512  ;;  %p9411_p0 = scmp.lt.s32.totalorder %s143_s28, %s143_s28 }
  0x63   :  { %p9407_p13 = scmp.ne.s32.totalorder %s143_s28, %s9406_s8  ;;  %p9412_p1 = scmp.lt.s32.totalorder %s9406_s8, %s9406_s8 }
  0x65   :  { %p9413_p2 = por %p9412_p1, %p9411_p0 }
  0x67   :  { %p9414_p3 = pnand %p9413_p2, %p9407_p13 }
  0x69   :  { %9417 = shalt.err (!%p9414_p3)
}
  0x6a   :  { %s9753_s10 = smov 256   ;;  %s9754_s30 = smov 16  }
  0x6b   :  { %148 = dma.hbm_to_vmem [thread:$0]  %s11136_s12, 512, %s143_s28, [#allocation18], %s9753_s10, %s9753_s10, %s9754_s30  }
  0x6c   :  { %s9418_s29 = scalar_lea.hbm %s11140_s16, 2048 }
  0x6d   :  { %p9419_p4 = scmp.ne.s32.totalorder %s11140_s16, %s9418_s29  ;;  %p9422_p5 = scmp.lt.u32.totalorder %s9418_s29, %s11140_s16 }
  0x6f   :  { %p9424_p6 = pnand %p9422_p5, %p9419_p4 }
  0x71   :  { %9427 = shalt.err (!%p9424_p6)
}
  0x72   :  { %s9428_s11 = scalar_lea.vmem %s169_s9, 2048  ;;  %p9433_p8 = scmp.lt.s32.totalorder %s169_s9, %s169_s9 }
  0x73   :  { %p9429_p7 = scmp.ne.s32.totalorder %s169_s9, %s9428_s11  ;;  %p9434_p9 = scmp.lt.s32.totalorder %s9428_s11, %s9428_s11 }
  0x75   :  { %p9435_p10 = por %p9434_p9, %p9433_p8 }
  0x77   :  { %p9436_p11 = pnand %p9435_p10, %p9429_p7 }
  0x79   :  { %9439 = shalt.err (!%p9436_p11)
}
  0x7a   :  { %174 = dma.hbm_to_vmem [thread:$0]  %s11140_s16, 2048, %s169_s9, [#allocation21], %s9753_s10, %s9753_s10, %s9754_s30  }
  0x7b   :  { %s9755_s8 = smov [#allocation23]   ;;  %s9756_s4 = smov [#allocation26]  }
  0x7c   :  { %s193_s0 = sshll.u32 %s9755_s8, 4  ;;  %s217_s7 = sshll.u32 %s9756_s4, 4  ;;  %s194_s0 = int_to_ptr.vmem [resolvable:$true] %s193_s0  ;;  %s218_s7 = int_to_ptr.vmem [resolvable:$true] %s217_s7 }
  0x7d   :  { %s9440_s1 = scalar_lea.hbm %s11142_s18, 32 }
  0x7e   :  { %p9441_p12 = scmp.ne.s32.totalorder %s11142_s18, %s9440_s1  ;;  %p9444_p13 = scmp.lt.u32.totalorder %s9440_s1, %s11142_s18 }
  0x80   :  { %p9446_p0 = pnand %p9444_p13, %p9441_p12 }
  0x82   :  { %9449 = shalt.err (!%p9446_p0)
}
  0x83   :  { %s9450_s16 = scalar_lea.vmem %s194_s0, 32  ;;  %p9455_p2 = scmp.lt.s32.totalorder %s194_s0, %s194_s0 }
  0x84   :  { %p9451_p1 = scmp.ne.s32.totalorder %s194_s0, %s9450_s16  ;;  %p9456_p3 = scmp.lt.s32.totalorder %s9450_s16, %s9450_s16 }
  0x86   :  { %p9457_p4 = por %p9456_p3, %p9455_p2 }
  0x88   :  { %p9458_p5 = pnand %p9457_p4, %p9451_p1 }
  0x8a   :  { %9461 = shalt.err (!%p9458_p5)
}
  0x8b   :  { %196 = dma.hbm_to_vmem [thread:$0]  %s11142_s18, 32, %s194_s0, [#allocation24]  }
  0x8c   :  { %s9462_s4 = scalar_lea.hbm %s11145_s21, 16 }
  0x8d   :  { %p9463_p6 = scmp.ne.s32.totalorder %s11145_s21, %s9462_s4  ;;  %p9466_p7 = scmp.lt.u32.totalorder %s9462_s4, %s11145_s21 }
  0x8f   :  { %p9468_p8 = pnand %p9466_p7, %p9463_p6 }
  0x91   :  { %9471 = shalt.err (!%p9468_p8)
}
  0x92   :  { %s9472_s27 = scalar_lea.vmem %s218_s7, 16  ;;  %s9476_s6 = scalar_lea.vmem %s218_s7, 32 }
  0x93   :  { %p9473_p9 = scmp.ne.s32.totalorder %s218_s7, %s9472_s27  ;;  %p9477_p10 = scmp.lt.s32.totalorder %s218_s7, %s218_s7 }
  0x94   :  { %p9478_p11 = scmp.lt.s32.totalorder %s9476_s6, %s9472_s27 }
  0x96   :  { %p9479_p12 = por %p9478_p11, %p9477_p10 }
  0x98   :  { %p9480_p13 = pnand %p9479_p12, %p9473_p9 }
  0x9a   :  { %9483 = shalt.err (!%p9480_p13)
}
  0x9b   :  { %220 = dma.hbm_to_vmem [thread:$0]  %s11145_s21, 16, %s218_s7, [#allocation27]  }
  0x9c   :  { %s9757_s11 = smov [#allocation29]   ;;  %s9758_s9 = smov [#allocation5]  }
  0x9d   :  { %s239_s16 = sshll.u32 %s9757_s11, 4  ;;  %s54_s12 = sshll.u32 %s9758_s9, 4  ;;  %s240_s16 = int_to_ptr.vmem [resolvable:$true] %s239_s16  ;;  %s55_s12 = int_to_ptr.vmem [resolvable:$true] %s54_s12 }
  0x9e   :  { %s9484_s4 = scalar_lea.hbm %s11148_s24, 16 }
  0x9f   :  { %p9485_p0 = scmp.ne.s32.totalorder %s11148_s24, %s9484_s4  ;;  %p9488_p1 = scmp.lt.u32.totalorder %s9484_s4, %s11148_s24 }
  0xa1   :  { %p9490_p2 = pnand %p9488_p1, %p9485_p0 }
  0xa3   :  { %9493 = shalt.err (!%p9490_p2)
}
  0xa4   :  { %s9494_s21 = scalar_lea.vmem %s240_s16, 16  ;;  %s9498_s7 = scalar_lea.vmem %s240_s16, 32 }
  0xa5   :  { %p9495_p3 = scmp.ne.s32.totalorder %s240_s16, %s9494_s21  ;;  %p9499_p4 = scmp.lt.s32.totalorder %s240_s16, %s240_s16 }
  0xa6   :  { %p9500_p5 = scmp.lt.s32.totalorder %s9498_s7, %s9494_s21 }
  0xa8   :  { %p9501_p6 = por %p9500_p5, %p9499_p4 }
  0xaa   :  { %p9502_p7 = pnand %p9501_p6, %p9495_p3 }
  0xac   :  { %9505 = shalt.err (!%p9502_p7)
}
  0xad   :  { %242 = dma.hbm_to_vmem [thread:$0]  %s11148_s24, 16, %s240_s16, [#allocation30]  }
  0xae   :  { %s11180_s11 = sld [smem:[#allocation46_spill]] }
  0xb4   :  { %s9506_s9 = scalar_lea.hbm %s11180_s11, 1024 }
  0xb5   :  { %p9507_p8 = scmp.ne.s32.totalorder %s11180_s11, %s9506_s9  ;;  %p9510_p9 = scmp.lt.u32.totalorder %s9506_s9, %s11180_s11 }
  0xb7   :  { %p9512_p10 = pnand %p9510_p9, %p9507_p8 }
  0xb9   :  { %9515 = shalt.err (!%p9512_p10)
}
  0xba   :  { %s9516_s29 = scalar_lea.vmem %s55_s12, 1024  ;;  %p9521_p12 = scmp.lt.s32.totalorder %s55_s12, %s55_s12 }
  0xbb   :  { %p9517_p11 = scmp.ne.s32.totalorder %s55_s12, %s9516_s29  ;;  %p9522_p13 = scmp.lt.s32.totalorder %s9516_s29, %s9516_s29 }
  0xbd   :  { %p9523_p0 = por %p9522_p13, %p9521_p12 }
  0xbf   :  { %p9524_p1 = pnand %p9523_p0, %p9517_p11 }
  0xc1   :  { %9527 = shalt.err (!%p9524_p1)
}
  0xc2   :  { %60 = dma.hbm_to_vmem [thread:$0]  %s11180_s11, 1024, %s55_s12, [#allocation6], %s9748_s2, %s9748_s2, %s9749_s3  }
  0xc3   :  { %s9759_s1 = smov [#allocation10]   ;;  %s9760_s21 = smov [#allocation13]  }
  0xc4   :  { %s78_s20 = sshll.u32 %s9759_s1, 4  ;;  %s102_s7 = sshll.u32 %s9760_s21, 4  ;;  %s79_s20 = int_to_ptr.vmem [resolvable:$true] %s78_s20  ;;  %s103_s7 = int_to_ptr.vmem [resolvable:$true] %s102_s7 }
  0xc5   :  { %s11181_s18 = sld [smem:[#allocation48_spill]] }
  0xcb   :  { %s9528_s0 = scalar_lea.hbm %s11181_s18, 1024 }
  0xcc   :  { %p9529_p2 = scmp.ne.s32.totalorder %s11181_s18, %s9528_s0  ;;  %p9532_p3 = scmp.lt.u32.totalorder %s9528_s0, %s11181_s18 }
  0xce   :  { %p9534_p4 = pnand %p9532_p3, %p9529_p2 }
  0xd0   :  { %9537 = shalt.err (!%p9534_p4)
}
  0xd1   :  { %s9538_s12 = scalar_lea.vmem %s79_s20, 1024  ;;  %p9543_p6 = scmp.lt.s32.totalorder %s79_s20, %s79_s20 }
  0xd2   :  { %p9539_p5 = scmp.ne.s32.totalorder %s79_s20, %s9538_s12  ;;  %p9544_p7 = scmp.lt.s32.totalorder %s9538_s12, %s9538_s12 }
  0xd4   :  { %p9545_p8 = por %p9544_p7, %p9543_p6 }
  0xd6   :  { %p9546_p9 = pnand %p9545_p8, %p9539_p5 }
  0xd8   :  { %9549 = shalt.err (!%p9546_p9)
}
  0xd9   :  { %84 = dma.hbm_to_vmem [thread:$0]  %s11181_s18, 1024, %s79_s20, [#allocation9], %s9748_s2, %s9748_s2, %s9749_s3  }
  0xda   :  { %s11182_s16 = sld [smem:[#allocation50_spill]] }
  0xe0   :  { %s9550_s1 = scalar_lea.hbm %s11182_s16, 256 }
  0xe1   :  { %p9551_p10 = scmp.ne.s32.totalorder %s11182_s16, %s9550_s1  ;;  %p9554_p11 = scmp.lt.u32.totalorder %s9550_s1, %s11182_s16 }
  0xe3   :  { %p9556_p12 = pnand %p9554_p11, %p9551_p10 }
  0xe5   :  { %9559 = shalt.err (!%p9556_p12)
}
  0xe6   :  { %s9560_s9 = scalar_lea.vmem %s103_s7, 256  ;;  %p9565_p0 = scmp.lt.s32.totalorder %s103_s7, %s103_s7 }
  0xe7   :  { %p9561_p13 = scmp.ne.s32.totalorder %s103_s7, %s9560_s9  ;;  %p9566_p1 = scmp.lt.s32.totalorder %s9560_s9, %s9560_s9 }
  0xe9   :  { %p9567_p2 = por %p9566_p1, %p9565_p0 }
  0xeb   :  { %p9568_p3 = pnand %p9567_p2, %p9561_p13 }
  0xed   :  { %9571 = shalt.err (!%p9568_p3)
}
  0xee   :  { %108 = dma.hbm_to_vmem [thread:$0]  %s11182_s16, 256, %s103_s7, [#allocation12], %s9748_s2, %s9748_s2, %s9749_s3  }
  0xef   :  { %s9761_s28 = smov [#allocation16]   ;;  %s9762_s4 = smov [#allocation19]  }
  0xf0   :  { %s130_s8 = sshll.u32 %s9761_s28, 4  ;;  %s157_s12 = sshll.u32 %s9762_s4, 4  ;;  %s131_s8 = int_to_ptr.vmem [resolvable:$true] %s130_s8  ;;  %s158_s12 = int_to_ptr.vmem [resolvable:$true] %s157_s12 }
  0xf1   :  { %s11183_s29 = sld [smem:[#allocation54_spill]] }
  0xf7   :  { %s9572_s24 = scalar_lea.hbm %s11183_s29, 512 }
  0xf8   :  { %p9573_p4 = scmp.ne.s32.totalorder %s11183_s29, %s9572_s24  ;;  %p9576_p5 = scmp.lt.u32.totalorder %s9572_s24, %s11183_s29 }
  0xfa   :  { %p9578_p6 = pnand %p9576_p5, %p9573_p4 }
  0xfc   :  { %9581 = shalt.err (!%p9578_p6)
}
  0xfd   :  { %s9582_s7 = scalar_lea.vmem %s131_s8, 512  ;;  %p9587_p8 = scmp.lt.s32.totalorder %s131_s8, %s131_s8 }
  0xfe   :  { %p9583_p7 = scmp.ne.s32.totalorder %s131_s8, %s9582_s7  ;;  %p9588_p9 = scmp.lt.s32.totalorder %s9582_s7, %s9582_s7 }
 0x100   :  { %p9589_p10 = por %p9588_p9, %p9587_p8 }
 0x102   :  { %p9590_p11 = pnand %p9589_p10, %p9583_p7 }
 0x104   :  { %9593 = shalt.err (!%p9590_p11)
}
 0x105   :  { %136 = dma.hbm_to_vmem [thread:$0]  %s11183_s29, 512, %s131_s8, [#allocation15], %s9753_s10, %s9753_s10, %s9754_s30  }
 0x106   :  { %s9594_s18 = scalar_lea.hbm %s11138_s14, 32 }
 0x107   :  { %p9595_p12 = scmp.ne.s32.totalorder %s11138_s14, %s9594_s18  ;;  %p9598_p13 = scmp.lt.u32.totalorder %s9594_s18, %s11138_s14 }
 0x109   :  { %p9600_p0 = pnand %p9598_p13, %p9595_p12 }
 0x10b   :  { %9603 = shalt.err (!%p9600_p0)
}
 0x10c   :  { %s9604_s24 = scalar_lea.vmem %s158_s12, 32  ;;  %p9609_p2 = scmp.lt.s32.totalorder %s158_s12, %s158_s12 }
 0x10d   :  { %p9605_p1 = scmp.ne.s32.totalorder %s158_s12, %s9604_s24  ;;  %p9610_p3 = scmp.lt.s32.totalorder %s9604_s24, %s9604_s24 }
 0x10f   :  { %p9611_p4 = por %p9610_p3, %p9609_p2 }
 0x111   :  { %p9612_p5 = pnand %p9611_p4, %p9605_p1 }
 0x113   :  { %9615 = shalt.err (!%p9612_p5)
}
 0x114   :  { %160 = dma.hbm_to_vmem [thread:$0]  %s11138_s14, 32, %s158_s12, [#allocation18]  }
 0x115   :  { %s9763_s1 = smov [#allocation22]   ;;  %s9764_s27 = smov [#allocation25]  }
 0x116   :  { %s180_s21 = sshll.u32 %s9763_s1, 4  ;;  %s202_s6 = sshll.u32 %s9764_s27, 4  ;;  %s181_s21 = int_to_ptr.vmem [resolvable:$true] %s180_s21  ;;  %s203_s6 = int_to_ptr.vmem [resolvable:$true] %s202_s6 }
 0x117   :  { %s9616_s0 = scalar_lea.hbm %s11141_s17, 2048 }
 0x118   :  { %p9617_p6 = scmp.ne.s32.totalorder %s11141_s17, %s9616_s0  ;;  %p9620_p7 = scmp.lt.u32.totalorder %s9616_s0, %s11141_s17 }
 0x11a   :  { %p9622_p8 = pnand %p9620_p7, %p9617_p6 }
 0x11c   :  { %9625 = shalt.err (!%p9622_p8)
}
 0x11d   :  { %s9626_s14 = scalar_lea.vmem %s181_s21, 2048  ;;  %p9631_p10 = scmp.lt.s32.totalorder %s181_s21, %s181_s21 }
 0x11e   :  { %p9627_p9 = scmp.ne.s32.totalorder %s181_s21, %s9626_s14  ;;  %p9632_p11 = scmp.lt.s32.totalorder %s9626_s14, %s9626_s14 }
 0x120   :  { %p9633_p12 = por %p9632_p11, %p9631_p10 }
 0x122   :  { %p9634_p13 = pnand %p9633_p12, %p9627_p9 }
 0x124   :  { %9637 = shalt.err (!%p9634_p13)
}
 0x125   :  { %186 = dma.hbm_to_vmem [thread:$0]  %s11141_s17, 2048, %s181_s21, [#allocation21], %s9753_s10, %s9753_s10, %s9754_s30  }
 0x126   :  { %s9638_s24 = scalar_lea.hbm %s11143_s19, 256 }
 0x127   :  { %p9639_p0 = scmp.ne.s32.totalorder %s11143_s19, %s9638_s24  ;;  %p9642_p1 = scmp.lt.u32.totalorder %s9638_s24, %s11143_s19 }
 0x129   :  { %p9644_p2 = pnand %p9642_p1, %p9639_p0 }
 0x12b   :  { %9647 = shalt.err (!%p9644_p2)
}
 0x12c   :  { %s9648_s7 = scalar_lea.vmem %s203_s6, 256  ;;  %p9653_p4 = scmp.lt.s32.totalorder %s203_s6, %s203_s6 }
 0x12d   :  { %p9649_p3 = scmp.ne.s32.totalorder %s203_s6, %s9648_s7  ;;  %p9654_p5 = scmp.lt.s32.totalorder %s9648_s7, %s9648_s7 }
 0x12f   :  { %p9655_p6 = por %p9654_p5, %p9653_p4 }
 0x131   :  { %p9656_p7 = pnand %p9655_p6, %p9649_p3 }
 0x133   :  { %9659 = shalt.err (!%p9656_p7)
}
 0x134   :  { %208 = dma.hbm_to_vmem [thread:$0]  %s11143_s19, 256, %s203_s6, [#allocation24], %s9748_s2, %s9748_s2, %s9749_s3  }
 0x135   :  { %s9765_s30 = smov [#allocation28]   ;;  %s9766_s16 = smov [#allocation31]  }
 0x136   :  { %s227_s21 = sshll.u32 %s9765_s30, 4  ;;  %s251_s0 = sshll.u32 %s9766_s16, 4  ;;  %s228_s21 = int_to_ptr.vmem [resolvable:$true] %s227_s21  ;;  %s252_s0 = int_to_ptr.vmem [resolvable:$true] %s251_s0 }
 0x137   :  { %s9660_s18 = scalar_lea.hbm %s11146_s22, 32 }
 0x138   :  { %p9661_p8 = scmp.ne.s32.totalorder %s11146_s22, %s9660_s18  ;;  %p9664_p9 = scmp.lt.u32.totalorder %s9660_s18, %s11146_s22 }
 0x13a   :  { %p9666_p10 = pnand %p9664_p9, %p9661_p8 }
 0x13c   :  { %9669 = shalt.err (!%p9666_p10)
}
 0x13d   :  { %s9670_s19 = scalar_lea.vmem %s228_s21, 32  ;;  %p9675_p12 = scmp.lt.s32.totalorder %s228_s21, %s228_s21 }
 0x13e   :  { %p9671_p11 = scmp.ne.s32.totalorder %s228_s21, %s9670_s19  ;;  %p9676_p13 = scmp.lt.s32.totalorder %s9670_s19, %s9670_s19 }
 0x140   :  { %p9677_p0 = por %p9676_p13, %p9675_p12 }
 0x142   :  { %p9678_p1 = pnand %p9677_p0, %p9671_p11 }
 0x144   :  { %9681 = shalt.err (!%p9678_p1)
}
 0x145   :  { %230 = dma.hbm_to_vmem [thread:$0]  %s11146_s22, 32, %s228_s21, [#allocation27]  }
 0x146   :  { %s9682_s5 = scalar_lea.hbm %s11150_s26, 16 }
 0x147   :  { %p9683_p2 = scmp.ne.s32.totalorder %s11150_s26, %s9682_s5  ;;  %p9686_p3 = scmp.lt.u32.totalorder %s9682_s5, %s11150_s26 }
 0x149   :  { %p9688_p4 = pnand %p9686_p3, %p9683_p2 }
 0x14b   :  { %9691 = shalt.err (!%p9688_p4)
}
 0x14c   :  { %s9692_s27 = scalar_lea.vmem %s252_s0, 16  ;;  %s9696_s7 = scalar_lea.vmem %s252_s0, 32 }
 0x14d   :  { %p9693_p5 = scmp.ne.s32.totalorder %s252_s0, %s9692_s27  ;;  %p9697_p6 = scmp.lt.s32.totalorder %s252_s0, %s252_s0 }
 0x14e   :  { %p9698_p7 = scmp.lt.s32.totalorder %s9696_s7, %s9692_s27 }
 0x150   :  { %p9699_p8 = por %p9698_p7, %p9697_p6 }
 0x152   :  { %p9700_p9 = pnand %p9699_p8, %p9693_p5 }
 0x154   :  { %9703 = shalt.err (!%p9700_p9)
}
 0x155   :  { %254 = dma.hbm_to_vmem [thread:$0]  %s11150_s26, 16, %s252_s0, [#allocation30]  }
 0x156   :  { %9726 = dma.done.wait [#allocation6], 1024  }
 0x157   :  { %9727 = vsyncadd [#allocation6], 4294966272 }
 0x158   :  { %9728 = dma.done.wait [#allocation9], 2048  }
 0x159   :  { %9729 = vsyncadd [#allocation9], 4294965248 }
 0x15a   :  { %9730 = dma.done.wait [#allocation12], 512  }
 0x15b   :  { %9731 = vsyncadd [#allocation12], 4294966784 }
 0x15c   :  { %9732 = dma.done.wait [#allocation15], 768  }
 0x15d   :  { %9733 = vsyncadd [#allocation15], 4294966528 }
 0x15e   :  { %9734 = dma.done.wait [#allocation18], 544  }
 0x15f   :  { %9735 = vsyncadd [#allocation18], 4294966752 }
 0x160   :  { %9736 = dma.done.wait [#allocation21], 4096  }
 0x161   :  { %9737 = vsyncadd [#allocation21], 4294963200 }
 0x162   :  { %9738 = dma.done.wait [#allocation24], 288  }
 0x163   :  { %9739 = vsyncadd [#allocation24], 4294967008 }
 0x164   :  { %9740 = dma.done.wait [#allocation27], 48  }
 0x165   :  { %9741 = vsyncadd [#allocation27], 4294967248 }
 0x166   :  { %9742 = dma.done.wait [#allocation30], 32  }
 0x167   :  { %9743 = vsyncadd [#allocation30], 4294967264  ;;  %vm315_vm0 = vcmask 130048   ;;  %v313_v0 = vld [vmem:[#allocation5] sm:$0xff]  ;;  %v314_v1 = vld [vmem:[#allocation5 + $0x8] sm:$0xff]  ;;  %s11184_s30 = sld [smem:[#allocation44_spill]] }
 0x168   :  { %v8491_v3 = vpack.c.bf16 %v314_v1, %v313_v0  ;;  %v474_v4 = vld [vmem:[#allocation10] sm:$0xff]  ;;  %v475_v5 = vld [vmem:[#allocation10 + $0x8] sm:$0xff]  ;;  %v10187_v19 = vld [vmem:[#allocation13] sm:$0xff]  ;;  %s11185_s20 = sld [smem:[#allocation43_spill]]  ;;  %vm1890_vm1 = vcmask 254976   ;;  %vm1783_vm2 = vcmask 523264  }
 0x169   :  { %v10165_v6 = vpack.c.bf16 %v475_v5, %v474_v4  ;;  %v397_v7 = vld [vmem:[#allocation8] sm:$0xff]  ;;  %v398_v8 = vld [vmem:[#allocation8 + $0x8] sm:$0xff]  ;;  %v310_v20 = vld [vmem:[#allocation13 + $0x8] sm:$0xff]  ;;  %vm2011_vm3 = vcmask 257026   ;;  %vm2133_vm4 = vcmask 259076   ;;  %vm2255_vm5 = vcmask 261126  }
 0x16a   :  { %8492 = vmatprep.subr.bf16.mxu0 %v8491_v3  ;;  %v10167_v9 = vpack.c.bf16 %v398_v8, %v397_v7  ;;  %v10181_v11 = vld [vmem:[#allocation11] sm:$0xff]  ;;  %v10185_v17 = vld [vmem:[#allocation11 + $0x8] sm:$0xff]  ;;  %v1770_v48 = vld [vmem:[%s11137_s13 + $0x18] sm:$0xff]  ;;  %s9769_s19 = smov 96   ;;  %s9770_s2 = smov 32   ;;  %vm2751_vm6 = vcmask 261120  }
 0x16b   :  { %8494 = vmatpush3.bf16.msra.mxu0 %v8491_v3  ;;  %v10236_v46 = vld [vmem:[#allocation14] sm:$0xff]  ;;  %v1768_v47 = vld [vmem:[%s11137_s13 + $0x8] sm:$0xff]  ;;  %v1769_v51 = vld [vmem:[%s11137_s13 + $0x10] sm:$0xff]  ;;  %s11187_s9 = sld [smem:[#allocation51_spill]]  ;;  %vm5727_vm7 = vcmask 64512   ;;  %vm6285_vm8 = vcmask 1043456  }
 0x16c   :  { %8500 = vmatprep.subr.bf16.mxu0 %v10165_v6  ;;  %8496 = vmatprep.subr.bf16.mxu1 %v10167_v9  ;;  %v1767_v49 = vld [vmem:[%s11137_s13] sm:$0xff]  ;;  %v10249_v50 = vpack.c.bf16 %v1770_v48, %v1768_v47  ;;  %v1772_v53 = vld [vmem:[%s11137_s13 + $0x28] sm:$0xff]  ;;  %v1774_v54 = vld [vmem:[%s11137_s13 + $0x38] sm:$0xff]  ;;  %vm6278_vm9 = vcmask 31744   ;;  %vm6852_vm10 = vcmask 1041408   ;;  %vm6845_vm11 = vcmask 15360  }
 0x16d   :  { %v311_v2 = vld [vmem:[%s11184_s30] sm:$0xff]  ;;  %v312_v10 = vld [vmem:[%s11184_s30 + $0x8] sm:$0xff]  ;;  %8498 = vmatpush3.bf16.msra.mxu1 %v10167_v9  ;;  %v10254_v52 = vpack.c.bf16 %v1769_v51, %v1767_v49  ;;  %v10264_v55 = vpack.c.bf16 %v1774_v54, %v1772_v53  ;;  %v1582_v61 = vld [vmem:[#allocation17 + $0x8] sm:$0xff]  ;;  %s11188_s21 = sld [smem:[#allocation45_spill]]  ;;  %vm9774_vm12 = vmmov 0   ;;  %s11189_s8 = sld [smem:[#allocation55_spill]] }
 0x16e   :  { %8013 = vmatprep.mubr.msk.f32.mxu0 %vm315_vm0, %v311_v2  ;;  %8020 = vmatprep.mubr.msk.f32.mxu1 %vm315_vm0, %v311_v2  ;;  %v10199_v21 = vstv %s11185_s20  ;;  %v1584_v62 = vld [vmem:[#allocation17 + $0x18] sm:$0xff]  ;;  %v1773_v7 = vld [vmem:[%s11137_s13 + $0x30] sm:$0xff]  ;;  %vm7533_vm13 = vcmask 58368  }
 0x16f   :  { %8014 = vmatmul.mubr.msk.f32.vlgmr.msra.gmra.mrb[0].mxu0 %vm315_vm0, %v312_v10  ;;  %v8555_v1 = vpack.c.bf16 %v1584_v62, %v1582_v61  ;;  %v10277_v4 = vld [vmem:[#allocation14 + $0x8] sm:$0xff] }
 0x170   :  { %8502 = vmatpush3.bf16.msra.mxu0 %v10165_v6  ;;  %8027 = vmatprep.mubr.msk.f32.mxu0 %vm315_vm0, %v311_v2  ;;  %v1581_v2 = vld [vmem:[#allocation17] sm:$0xff] }
 0x171   :  { %8021 = vmatmul.mubr.msk.f32.vlgmr.msra.gmra.mrb[0].mxu1 %vm315_vm0, %v312_v10  ;;  %8512 = vmatprep.subr.bf16.mxu0 %v8491_v3 }
 0x172   :  { %8034 = vmatprep.mubr.msk.f32.mxu1 %vm315_vm0, %v10181_v11 }
 0x173   :  { %8028 = vmatmul.mubr.msk.f32.vlgmr.msra.gmra.mrb[2].mxu0 %vm315_vm0, %v312_v10  ;;  %v1778_v10 = vld [vmem:[%s11137_s13 + $0x58] sm:$0xff] }
 0x174   :  { %8514 = vmatpush3.bf16.msra.mxu0 %v8491_v3 }
 0x175   :  { %8516 = vmatprep.subr.bf16.mxu0 %v10167_v9 }
 0x242   :  { %v8015_v12 = vpop.f32.mrb[0].mxu0 }
 0x243   :  { %v388_v13 = vpop.f32.mrb[1].mxu0 }
 0x244   :  { %v8503_v14 = vpack.c.bf16 %v8015_v12, %v388_v13  ;;  %v1775_v13 = vld [vmem:[%s11137_s13 + $0x40] sm:$0xff] }
 0x246   :  { %8504 = vmatprep.subr.bf16.mxu1 %v8503_v14  ;;  %v8029_v15 = vpop.f32.mrb[2].mxu0 }
 0x247   :  { %8506 = vmatpush3.bf16.msra.mxu1 %v8503_v14  ;;  %v542_v16 = vpop.f32.mrb[3].mxu0  ;;  %v1777_v14 = vld [vmem:[%s11137_s13 + $0x50] sm:$0xff] }
 0x248   :  { %v8507_v18 = vpack.c.bf16 %v8029_v15, %v542_v16  ;;  %v10306_v15 = vpack.c.bf16 %v1777_v14, %v1775_v13  ;;  %v1578_v16 = vld [vmem:[#allocation16 + $0x8] sm:$0xff] }
 0x24a   :  { %8035 = vmatmul.mubr.msk.f32.vlgmr.msra.gmra.mrb[0].mxu1 %vm315_vm0, %v10185_v17  ;;  %8508 = vmatprep.subr.bf16.mxu1 %v8507_v18 }
 0x24b   :  { %8510 = vmatpush3.bf16.msra.mxu1 %v8507_v18  ;;  %8041 = vmatprep.mubr.msk.f32.mxu1 %vm315_vm0, %v10187_v19 }
 0x24c   :  { %8520 = vmatprep.subr.bf16.mxu1 %v10165_v6 }
 0x252   :  { %8042 = vmatmul.mubr.msk.f32.vlgmr.msra.gmra.mrb[0].mxu1 %vm315_vm0, %v310_v20 }
 0x253   :  { %8522 = vmatpush3.bf16.msra.mxu1 %v10165_v6 }
 0x254   :  { %8532 = vmatprep.subr.bf16.mxu1 %v8491_v3 }
 0x325   :  { %v8043_v22 = vpop.f32.mrb[0].mxu1 }
 0x326   :  { %v717_v23 = vadd.f32 %v8043_v22, %v10199_v21  ;;  %v704_v24 = vpop.f32.mrb[1].mxu1  ;;  %v1779_v22 = vld [vmem:[%s11137_s13 + $0x60] sm:$0xff] }
 0x327   :  { %v716_v25 = vadd.f32 %v10199_v21, %v704_v24 }
 0x328   :  { %v719_v27 = vmax.f32 %v717_v23, 0.0  ;;  %v1781_v23 = vld [vmem:[%s11137_s13 + $0x70] sm:$0xff] }
 0x329   :  { %v718_v26 = vmax.f32 %v716_v25, 0.0  ;;  %v10324_v25 = vpack.c.bf16 %v1781_v23, %v1779_v22 }
 0x32b   :  { %8048 = vmatprep.mubr.msk.f32.mxu0 %vm315_vm0, %v718_v26  ;;  %8062 = vmatprep.mubr.msk.f32.mxu1 %vm315_vm0, %v718_v26 }
 0x32c   :  { %8049 = vmatmul.mubr.msk.f32.vlgmr.msra.gmra.mrb[4].mxu0 %vm315_vm0, %v719_v27  ;;  %8063 = vmatmul.mubr.msk.f32.vlgmr.msra.gmra.mrb[2].mxu1 %vm315_vm0, %v719_v27 }
 0x32d   :  { %8518 = vmatpush3.bf16.msra.mxu0 %v10167_v9  ;;  %8055 = vmatprep.mubr.msk.f32.mxu0 %vm315_vm0, %v718_v26  ;;  %v1577_v26 = vld [vmem:[#allocation16] sm:$0xff] }
 0x32e   :  { %8534 = vmatpush3.bf16.msra.mxu1 %v8491_v3  ;;  %v1583_v3 = vld [vmem:[#allocation17 + $0x10] sm:$0xff] }
 0x32f   :  { %8536 = vmatprep.subr.bf16.mxu1 %v10167_v9  ;;  %v8557_v5 = vpack.c.bf16 %v1583_v3, %v1581_v2 }
 0x330   :  { %8056 = vmatmul.mubr.msk.f32.vlgmr.msra.gmra.mrb[6].mxu0 %vm315_vm0, %v719_v27  ;;  %v1579_v27 = vld [vmem:[#allocation16 + $0x10] sm:$0xff] }
 0x331   :  { %8069 = vmatprep.mubr.msk.f32.mxu0 %vm315_vm0, %v10181_v11 }
 0x3ff   :  { %v8050_v28 = vpop.f32.mrb[4].mxu0  ;;  %v8064_v29 = vpop.f32.mrb[2].mxu1 }
 0x400   :  { %v792_v30 = vpop.f32.mrb[5].mxu0  ;;  %v942_v31 = vpop.f32.mrb[3].mxu1 }
 0x401   :  { %v8523_v32 = vpack.c.bf16 %v8050_v28, %v792_v30  ;;  %v8527_v33 = vpack.c.bf16 %v8064_v29, %v942_v31  ;;  %v8561_v28 = vpack.c.bf16 %v1579_v27, %v1577_v26 }
 0x403   :  { %8524 = vmatprep.subr.bf16.mxu0 %v8523_v32 }
 0x404   :  { %8526 = vmatpush3.bf16.msra.mxu0 %v8523_v32 }
 0x405   :  { %8528 = vmatprep.subr.bf16.mxu0 %v8527_v33 }
 0x407   :  { %8070 = vmatmul.mubr.msk.f32.vlgmr.msra.gmra.mrb[6].mxu0 %vm315_vm0, %v10185_v17 }
 0x408   :  { %8530 = vmatpush3.bf16.msra.mxu0 %v8527_v33  ;;  %8076 = vmatprep.mubr.msk.f32.mxu0 %vm315_vm0, %v10187_v19  ;;  %v1753_v33 = vlaneseq }
 0x409   :  { %8540 = vmatprep.subr.bf16.mxu0 %v10165_v6 }
 0x40f   :  { %8077 = vmatmul.mubr.msk.f32.vlgmr.msra.gmra.mrb[6].mxu0 %vm315_vm0, %v310_v20 }
 0x410   :  { %8542 = vmatpush3.bf16.msra.mxu0 %v10165_v6  ;;  %v1771_v6 = vld [vmem:[%s11137_s13 + $0x20] sm:$0xff] }
 0x411   :  { %v10287_v8 = vpack.c.bf16 %v1773_v7, %v1771_v6 }
 0x4e2   :  { %v8078_v34 = vpop.f32.mrb[6].mxu0 }
 0x4e3   :  { %v1104_v35 = vadd.f32 %v8078_v34, %v10199_v21  ;;  %v1092_v36 = vpop.f32.mrb[7].mxu0  ;;  %v10358_v34 = vshrl.u32 %v1753_v33, 7 }
 0x4e4   :  { %v1103_v37 = vadd.f32 %v1092_v36, %v10199_v21  ;;  %v1751_v36 = vld [vmem:[#allocation19] sm:$0x3] }
 0x4e5   :  { %v1106_v39 = vmax.f32 %v1104_v35, 0.0  ;;  %v1755_v35 = vsub.s32 0, %v10358_v34 }
 0x4e6   :  { %v1105_v38 = vmax.f32 %v1103_v37, 0.0  ;;  %v1759_v37 = vsub.s32 1, %v10358_v34 }
 0x4e8   :  { %8083 = vmatprep.mubr.msk.f32.mxu1 %vm315_vm0, %v1105_v38  ;;  %8097 = vmatprep.mubr.msk.f32.mxu0 %vm315_vm0, %v1105_v38 }
 0x4e9   :  { %8084 = vmatmul.mubr.msk.f32.vlgmr.msra.gmra.mrb[4].mxu1 %vm315_vm0, %v1106_v39  ;;  %8098 = vmatmul.mubr.msk.f32.vlgmr.msra.gmra.mrb[8].mxu0 %vm315_vm0, %v1106_v39 }
 0x4ea   :  { %8538 = vmatpush3.bf16.msra.mxu1 %v10167_v9  ;;  %8090 = vmatprep.mubr.msk.f32.mxu1 %vm315_vm0, %v1105_v38  ;;  %v1776_v9 = vld [vmem:[%s11137_s13 + $0x48] sm:$0xff]  ;;  %v1756_v38 = vrot.slane %v1751_v36, %v1755_v35 }
 0x4eb   :  { %8118 = vmatprep.mubr.msk.f32.mxu0 %vm315_vm0, %v10236_v46  ;;  %v10297_v12 = vpack.c.bf16 %v1778_v10, %v1776_v9 }
 0x4ed   :  { %8091 = vmatmul.mubr.msk.f32.vlgmr.msra.gmra.mrb[6].mxu1 %vm315_vm0, %v1106_v39  ;;  %v1760_v39 = vrot.slane %v1751_v36, %v1759_v37 }
 0x4ee   :  { %8104 = vmatprep.mubr.msk.f32.mxu1 %vm315_vm0, %v10181_v11  ;;  %v9767_v11 = vmov 0.0  }
 0x5bc   :  { %v8085_v40 = vpop.f32.mrb[4].mxu1  ;;  %v8099_v41 = vpop.f32.mrb[8].mxu0 }
 0x5bd   :  { %v1179_v42 = vpop.f32.mrb[5].mxu1  ;;  %v1329_v43 = vpop.f32.mrb[9].mxu0 }
 0x5be   :  { %v8543_v44 = vpack.c.bf16 %v8085_v40, %v1179_v42  ;;  %v8547_v45 = vpack.c.bf16 %v8099_v41, %v1329_v43 }
 0x5c0   :  { %8544 = vmatprep.subr.bf16.mxu1 %v8543_v44 }
 0x5c1   :  { %8546 = vmatpush3.bf16.msra.mxu1 %v8543_v44 }
 0x5c2   :  { %8548 = vmatprep.subr.bf16.mxu1 %v8547_v45 }
 0x5c4   :  { %8105 = vmatmul.mubr.msk.f32.vlgmr.msra.gmra.mrb[6].mxu1 %vm315_vm0, %v10185_v17  ;;  %v1580_v17 = vld [vmem:[#allocation16 + $0x18] sm:$0xff] }
 0x5c5   :  { %8550 = vmatpush3.bf16.msra.mxu1 %v8547_v45  ;;  %8111 = vmatprep.mubr.msk.f32.mxu1 %vm315_vm0, %v10187_v19  ;;  %v8559_v18 = vpack.c.bf16 %v1580_v17, %v1578_v16  ;;  %v1780_v19 = vld [vmem:[%s11137_s13 + $0x68] sm:$0xff] }
 0x5c6   :  { %8564 = vmatprep.subr.bf16.mxu1 %v10249_v50 }
 0x5cc   :  { %8112 = vmatmul.mubr.msk.f32.vlgmr.msra.gmra.mrb[6].mxu1 %vm315_vm0, %v310_v20  ;;  %v1782_v20 = vld [vmem:[%s11137_s13 + $0x78] sm:$0xff]  ;;  %s9768_s13 = smov 64  }
 0x5cd   :  { %8566 = vmatpush1.bf16.msra.mxu1 %v10254_v52  ;;  %1851 = vmatprep.mubr.f32.mxu1 %v9767_v11  ;;  %v10322_v24 = vpack.c.bf16 %v1782_v20, %v1780_v19 }
 0x5ce   :  { %8568 = vmatprep.subr.bf16.mxu1 %v10264_v55 }
 0x5d1   :  { %8570 = vmatpush1.bf16.msra.mxu1 %v10287_v8 }
 0x5d2   :  { %8572 = vmatprep.subr.bf16.mxu1 %v10297_v12 }
 0x5d5   :  { %8574 = vmatpush1.bf16.msra.mxu1 %v10306_v15 }
 0x5d6   :  { %8576 = vmatprep.subr.bf16.mxu1 %v10322_v24 }
 0x5d9   :  { %8578 = vmatpush1.bf16.msra.mxu1 %v10324_v25 }
 0x5da   :  { %8596 = vmatprep.subr.bf16.mxu1 %v10249_v50 }
 0x5dc   :  { %1852 = vmatmul.mubr.f32.vlgmr.msra.gmra.mrb[8].mxu1 %v9767_v11 }
 0x5dd   :  { %8598 = vmatpush1.bf16.msra.mxu1 %v10254_v52  ;;  %2085 = vmatprep.mubr.f32.mxu1 %v9767_v11 }
 0x5de   :  { %8600 = vmatprep.subr.bf16.mxu1 %v10264_v55 }
 0x5e1   :  { %8602 = vmatpush1.bf16.msra.mxu1 %v10287_v8 }
 0x5e2   :  { %8604 = vmatprep.subr.bf16.mxu1 %v10297_v12 }
 0x5e5   :  { %8606 = vmatpush1.bf16.msra.mxu1 %v10306_v15 }
 0x5e6   :  { %8608 = vmatprep.subr.bf16.mxu1 %v10322_v24 }
 0x5e9   :  { %8610 = vmatpush1.bf16.msra.mxu1 %v10324_v25 }
 0x5ea   :  { %8628 = vmatprep.subr.bf16.mxu1 %v10249_v50 }
 0x69f   :  { %v8113_v56 = vpop.f32.mrb[6].mxu1 }
 0x6a0   :  { %v10268_v57 = vadd.f32 %v8113_v56, %v10199_v21  ;;  %v1479_v58 = vpop.f32.mrb[7].mxu1 }
 0x6a1   :  { %v10271_v59 = vadd.f32 %v1479_v58, %v10199_v21 }
 0x6a2   :  { %v1493_v60 = vmax.f32 %v10268_v57, 0.0 }
 0x6a3   :  { %v1492_v63 = vmax.f32 %v10271_v59, 0.0 }
 0x6a5   :  { %v8551_v0 = vpack.c.bf16 %v1493_v60, %v1492_v63 }
 0x6a7   :  { %8552 = vmatprep.subr.bf16.mxu0 %v8551_v0 }
 0x6a8   :  { %8554 = vmatpush3.bf16.msra.mxu0 %v8551_v0 }
 0x6a9   :  { %8556 = vmatprep.subr.bf16.mxu0 %v8555_v1 }
 0x6ab   :  { %8119 = vmatmul.mubr.msk.f32.vlgmr.msra.gmra.mrb[10].mxu0 %vm315_vm0, %v10277_v4 }
 0x6ac   :  { %8558 = vmatpush1.bf16.msra.mxu0 %v8557_v5  ;;  %1655 = vmatprep.mubr.f32.mxu0 %v9767_v11 }
 0x6ad   :  { %8560 = vmatprep.subr.bf16.mxu0 %v8559_v18 }
 0x6af   :  { %v1853_v31 = vpop.f32.mrb[8].mxu1 }
 0x6b0   :  { %v1855_v32 = vpop.f32.mrb[9].mxu1 }
 0x77e   :  { %v8120_v29 = vpop.f32.mrb[10].mxu0 }
 0x77f   :  { %v1568_v30 = vpop.f32.mrb[11].mxu0 }
 0x780   :  { %7590 = vmatmul.mubr.msk.f32.vlgmr.msra.gmra.mrb[12].mxu0 %vm315_vm0, %v1568_v30 }
 0x781   :  { %1661 = vmatprep.mubr.f32.mxu0 %v9767_v11  ;;  %8562 = vmatpush1.bf16.msra.mxu0 %v8561_v28 }
 0x782   :  { %8580 = vmatprep.subr.bf16.mxu0 %v10249_v50 }
 0x784   :  { %7591 = vmatmul.mubr.msk.f32.gmra.mrb[14].mxu0 %vm315_vm0, %v8120_v29 }
 0x785   :  { %1738 = vmatprep.mubr.f32.mxu0 %v9767_v11 }
 0x788   :  { %7592 = vmatmul.mubr.msk.f32.vlgmr.msra.gmra.mrb[12].mxu0 %vm315_vm0, %v1492_v63 }
 0x789   :  { %1744 = vmatprep.mubr.f32.mxu0 %v9767_v11  ;;  %8582 = vmatpush1.bf16.msra.mxu0 %v10254_v52 }
 0x78a   :  { %8584 = vmatprep.subr.bf16.mxu0 %v10264_v55 }
 0x78c   :  { %7593 = vmatmul.mubr.msk.f32.gmra.mrb[14].mxu0 %vm315_vm0, %v1493_v60 }
 0x78d   :  { %8586 = vmatpush1.bf16.msra.mxu0 %v10287_v8  ;;  %1963 = vmatprep.mubr.f32.mxu0 %v9767_v11 }
 0x78e   :  { %8588 = vmatprep.subr.bf16.mxu0 %v10297_v12 }
 0x791   :  { %8590 = vmatpush1.bf16.msra.mxu0 %v10306_v15 }
 0x792   :  { %8592 = vmatprep.subr.bf16.mxu0 %v10322_v24 }
 0x795   :  { %8594 = vmatpush1.bf16.msra.mxu0 %v10324_v25 }
 0x796   :  { %8612 = vmatprep.subr.bf16.mxu0 %v10249_v50 }
 0x85b   :  { %v1740_v40 = vpop.f32.mrb[12].mxu0 }
 0x85c   :  { %v10366_v41 = vadd.f32 %v1756_v38, %v1740_v40  ;;  %v1742_v42 = vpop.f32.mrb[13].mxu0 }
 0x85d   :  { %v10368_v43 = vadd.f32 %v1760_v39, %v1742_v42 }
 0x85e   :  { %v1858_v53 = vadd.f32 %v1853_v31, %v10366_v41 }
 0x85f   :  { %v1859_v44 = vadd.f32 %v1855_v32, %v10368_v43  ;;  %v1746_v45 = vpop.f32.mrb[14].mxu0 }
 0x860   :  { %v10371_v47 = vadd.f32 %v1756_v38, %v1746_v45  ;;  %v1748_v48 = vpop.f32.mrb[15].mxu0  ;;  %v7594_v54 = vmul.f32 -1.442695, %v1858_v53 }
 0x861   :  { %9134 = vtanh.f32 %v1859_v44  ;;  %v10373_v49 = vadd.f32 %v1760_v39, %v1748_v48  ;;  %v7595_v1 = vmul.f32 -1.442695, %v1859_v44 }
 0x862   :  { %9136 = vpow2.f32 %v7594_v54 }
 0x86b   :  { %v9135_v51 = vpop.eup %9134 }
 0x86c   :  { %1875 = vrot.lane.b32.xlu0 %v9135_v51, %s9768_s13  ;;  %v9137_v56 = vpop.eup %9136 }
 0x86d   :  { %v1866_v57 = vadd.f32 1.0, %v9137_v56 }
 0x86f   :  { %9138 = vrcp.f32 %v1866_v57 }
 0x879   :  { %v9139_v58 = vpop.eup %9138 }
 0x87a   :  { %v1873_v61 = vmul.f32 0.0, %v9139_v58 }
 0x8de   :  { %v1876_v59 = vpop.permute.xlu0 %1875 }
 0x8df   :  { %v1878_v60 = vmul.f32 %v9139_v58, %v1876_v59 }
 0x8e1   :  { %1880 = vrot.lane.b32.xlu0 %v1878_v60, %s9768_s13 }
 0x953   :  { %v1881_v62 = vpop.permute.xlu0 %1880 }
 0x954   :  { %v1883_v63 = vadd.f32 %v1881_v62, %v1873_v61 }
 0x956   :  { %9140 = vtanh.f32 %v1883_v63  ;;  %v1992_v28 = vrot.slane %v1883_v63, 6 }
 0x957   :  { %9142 = vpow2.f32 %v7595_v1 }
 0x960   :  { %v9141_v0 = vpop.eup %9140 }
 0x961   :  { %1886 = vrot.lane.b32.xlu1 %v9141_v0, %s9768_s13  ;;  %v9143_v2 = vpop.eup %9142 }
 0x962   :  { %v1867_v3 = vadd.f32 1.0, %v9143_v2 }
 0x964   :  { %9144 = vrcp.f32 %v1867_v3 }
 0x96e   :  { %v9145_v5 = vpop.eup %9144 }
 0x9d3   :  { %v1887_v6 = vpop.permute.xlu1 %1886 }
 0x9d4   :  { %v10379_v7 = vmul.f32 %v9145_v5, %v1887_v6 }
 0x9d6   :  { %1891 = vst.msk [vmem:[#allocation2] sm:$0x3] %vm1890_vm1, %v10379_v7  ;;  %7596 = vmatmul.mubr.msk.f32.vlgmr.msra.gmra.mrb[16].mxu0 %vm1783_vm2, %v10379_v7 }
 0x9d7   :  { %8614 = vmatpush1.bf16.msra.mxu0 %v10254_v52  ;;  %2207 = vmatprep.mubr.f32.mxu0 %v9767_v11 }
 0x9d8   :  { %8616 = vmatprep.subr.bf16.mxu0 %v10264_v55 }
 0x9db   :  { %8618 = vmatpush1.bf16.msra.mxu0 %v10287_v8 }
 0x9dc   :  { %8620 = vmatprep.subr.bf16.mxu0 %v10297_v12 }
 0x9df   :  { %8622 = vmatpush1.bf16.msra.mxu0 %v10306_v15 }
 0x9e0   :  { %8624 = vmatprep.subr.bf16.mxu0 %v10322_v24 }
 0x9e3   :  { %8626 = vmatpush1.bf16.msra.mxu0 %v10324_v25 }
 0x9e4   :  { %8644 = vmatprep.subr.bf16.mxu0 %v10249_v50 }
 0xaa9   :  { %v1965_v9 = vpop.f32.mrb[16].mxu0 }
 0xaaa   :  { %v1967_v10 = vpop.f32.mrb[17].mxu0  ;;  %v1972_v17 = vrot.slane %v1965_v9, 6 }
 0xaab   :  { %v1973_v13 = vrot.slane %v1967_v10, 6 }
 0xaac   :  { %v1976_v18 = vadd.f32 %v1972_v17, %v10366_v41 }
 0xaad   :  { %v1977_v14 = vadd.f32 %v1973_v13, %v10368_v43 }
 0xaae   :  { %v7597_v19 = vmul.f32 -1.442695, %v1976_v18 }
 0xaaf   :  { %9146 = vtanh.f32 %v1977_v14  ;;  %v7598_v33 = vmul.f32 -1.442695, %v1977_v14 }
 0xab0   :  { %9148 = vpow2.f32 %v7597_v19 }
 0xab9   :  { %v9147_v16 = vpop.eup %9146 }
 0xaba   :  { %1996 = vrot.lane.b32.xlu1 %v9147_v16, %s9768_s13  ;;  %v9149_v20 = vpop.eup %9148 }
 0xabb   :  { %v1984_v22 = vadd.f32 1.0, %v9149_v20 }
 0xabd   :  { %9150 = vrcp.f32 %v1984_v22 }
 0xac7   :  { %v9151_v23 = vpop.eup %9150 }
 0xac8   :  { %v1994_v29 = vmul.f32 %v9151_v23, %v1992_v28 }
 0xb2c   :  { %v1997_v26 = vpop.permute.xlu1 %1996 }
 0xb2d   :  { %v1999_v27 = vmul.f32 %v9151_v23, %v1997_v26 }
 0xb2f   :  { %2001 = vrot.lane.b32.xlu0 %v1999_v27, %s9768_s13 }
 0xba1   :  { %v2002_v30 = vpop.permute.xlu0 %2001 }
 0xba2   :  { %v2004_v31 = vadd.f32 %v2002_v30, %v1994_v29 }
 0xba4   :  { %9152 = vtanh.f32 %v2004_v31  ;;  %v2114_v0 = vrot.slane %v2004_v31, 6 }
 0xba5   :  { %9154 = vpow2.f32 %v7598_v33 }
 0xbae   :  { %v9153_v32 = vpop.eup %9152 }
 0xbaf   :  { %2007 = vrot.lane.b32.xlu1 %v9153_v32, %s9768_s13  ;;  %v9155_v36 = vpop.eup %9154 }
 0xbb0   :  { %v1985_v38 = vadd.f32 1.0, %v9155_v36 }
 0xbb2   :  { %9156 = vrcp.f32 %v1985_v38 }
 0xbbc   :  { %v9157_v39 = vpop.eup %9156 }
 0xc21   :  { %v2008_v40 = vpop.permute.xlu1 %2007 }
 0xc22   :  { %v10399_v42 = vmul.f32 %v9157_v39, %v2008_v40 }
 0xc24   :  { %2012 = vst.msk [vmem:[#allocation2] sm:$0xc] %vm2011_vm3, %v10399_v42  ;;  %v2018_v44 = vrot.slane %v10399_v42, 2 }
 0xc26   :  { %7599 = vmatmul.mubr.msk.f32.vlgmr.msra.gmra.mrb[10].mxu1 %vm1783_vm2, %v2018_v44 }
 0xc27   :  { %8630 = vmatpush1.bf16.msra.mxu1 %v10254_v52  ;;  %2329 = vmatprep.mubr.f32.mxu1 %v9767_v11 }
 0xc28   :  { %8632 = vmatprep.subr.bf16.mxu1 %v10264_v55 }
 0xc2b   :  { %8634 = vmatpush1.bf16.msra.mxu1 %v10287_v8 }
 0xc2c   :  { %8636 = vmatprep.subr.bf16.mxu1 %v10297_v12 }
 0xc2f   :  { %8638 = vmatpush1.bf16.msra.mxu1 %v10306_v15 }
 0xc30   :  { %8640 = vmatprep.subr.bf16.mxu1 %v10322_v24 }
 0xc33   :  { %8642 = vmatpush1.bf16.msra.mxu1 %v10324_v25 }
 0xc34   :  { %8660 = vmatprep.subr.bf16.mxu1 %v10249_v50 }
 0xcf9   :  { %v2087_v45 = vpop.f32.mrb[10].mxu1 }
 0xcfa   :  { %v2089_v48 = vpop.f32.mrb[11].mxu1  ;;  %v2094_v56 = vrot.slane %v2087_v45, 4 }
 0xcfb   :  { %v2095_v51 = vrot.slane %v2089_v48, 4 }
 0xcfc   :  { %v2098_v57 = vadd.f32 %v2094_v56, %v10366_v41 }
 0xcfd   :  { %v2099_v53 = vadd.f32 %v2095_v51, %v10368_v43 }
 0xcfe   :  { %v7600_v58 = vmul.f32 -1.442695, %v2098_v57 }
 0xcff   :  { %9158 = vtanh.f32 %v2099_v53  ;;  %v7601_v6 = vmul.f32 -1.442695, %v2099_v53 }
 0xd00   :  { %9160 = vpow2.f32 %v7600_v58 }
 0xd09   :  { %v9159_v54 = vpop.eup %9158 }
 0xd0a   :  { %2118 = vrot.lane.b32.xlu0 %v9159_v54, %s9768_s13  ;;  %v9161_v59 = vpop.eup %9160 }
 0xd0b   :  { %v2106_v60 = vadd.f32 1.0, %v9161_v59 }
 0xd0d   :  { %9162 = vrcp.f32 %v2106_v60 }
 0xd17   :  { %v9163_v61 = vpop.eup %9162 }
 0xd18   :  { %v2116_v1 = vmul.f32 %v9163_v61, %v2114_v0 }
 0xd7c   :  { %v2119_v62 = vpop.permute.xlu0 %2118 }
 0xd7d   :  { %v2121_v63 = vmul.f32 %v9163_v61, %v2119_v62 }
 0xd7f   :  { %2123 = vrot.lane.b32.xlu1 %v2121_v63, %s9768_s13 }
 0xdf1   :  { %v2124_v2 = vpop.permute.xlu1 %2123 }
 0xdf2   :  { %v2126_v3 = vadd.f32 %v2124_v2, %v2116_v1 }
 0xdf4   :  { %9164 = vtanh.f32 %v2126_v3  ;;  %v2236_v33 = vrot.slane %v2126_v3, 6 }
 0xdf5   :  { %9166 = vpow2.f32 %v7601_v6 }
 0xdfe   :  { %v9165_v5 = vpop.eup %9164 }
 0xdff   :  { %2129 = vrot.lane.b32.xlu0 %v9165_v5, %s9768_s13  ;;  %v9167_v9 = vpop.eup %9166 }
 0xe00   :  { %v2107_v10 = vadd.f32 1.0, %v9167_v9 }
 0xe02   :  { %9168 = vrcp.f32 %v2107_v10 }
 0xe0c   :  { %v9169_v13 = vpop.eup %9168 }
 0xe71   :  { %v2130_v14 = vpop.permute.xlu0 %2129 }
 0xe72   :  { %v10419_v16 = vmul.f32 %v9169_v13, %v2130_v14 }
 0xe74   :  { %2134 = vst.msk [vmem:[#allocation2] sm:$0x30] %vm2133_vm4, %v10419_v16  ;;  %v2140_v17 = vrot.slane %v10419_v16, 4 }
 0xe76   :  { %7602 = vmatmul.mubr.msk.f32.vlgmr.msra.gmra.mrb[18].mxu0 %vm1783_vm2, %v2140_v17 }
 0xe77   :  { %8646 = vmatpush1.bf16.msra.mxu0 %v10254_v52  ;;  %2443 = vmatprep.mubr.f32.mxu0 %v9767_v11 }
 0xe78   :  { %8648 = vmatprep.subr.bf16.mxu0 %v10264_v55 }
 0xe7b   :  { %8650 = vmatpush1.bf16.msra.mxu0 %v10287_v8 }
 0xe7c   :  { %8652 = vmatprep.subr.bf16.mxu0 %v10297_v12 }
 0xe7f   :  { %8654 = vmatpush1.bf16.msra.mxu0 %v10306_v15 }
 0xe80   :  { %8656 = vmatprep.subr.bf16.mxu0 %v10322_v24 }
 0xe83   :  { %8658 = vmatpush1.bf16.msra.mxu0 %v10324_v25 }
 0xe84   :  { %8676 = vmatprep.subr.bf16.mxu0 %v10249_v50 }
 0xf49   :  { %v2209_v18 = vpop.f32.mrb[18].mxu0 }
 0xf4a   :  { %v2211_v19 = vpop.f32.mrb[19].mxu0  ;;  %v2216_v26 = vrot.slane %v2209_v18, 2 }
 0xf4b   :  { %v2217_v20 = vrot.slane %v2211_v19, 2 }
 0xf4c   :  { %v2220_v27 = vadd.f32 %v2216_v26, %v10366_v41 }
 0xf4d   :  { %v2221_v22 = vadd.f32 %v2217_v20, %v10368_v43 }
 0xf4e   :  { %v7603_v28 = vmul.f32 -1.442695, %v2220_v27 }
 0xf4f   :  { %9170 = vtanh.f32 %v2221_v22  ;;  %v7604_v40 = vmul.f32 -1.442695, %v2221_v22 }
 0xf50   :  { %9172 = vpow2.f32 %v7603_v28 }
 0xf59   :  { %v9171_v23 = vpop.eup %9170 }
 0xf5a   :  { %2240 = vrot.lane.b32.xlu1 %v9171_v23, %s9768_s13  ;;  %v9173_v29 = vpop.eup %9172 }
 0xf5b   :  { %v2228_v30 = vadd.f32 1.0, %v9173_v29 }
 0xf5d   :  { %9174 = vrcp.f32 %v2228_v30 }
 0xf67   :  { %v9175_v31 = vpop.eup %9174 }
 0xf68   :  { %v2238_v36 = vmul.f32 %v9175_v31, %v2236_v33 }
 0xfcc   :  { %v2241_v32 = vpop.permute.xlu1 %2240 }
 0xfcd   :  { %v2243_v50 = vmul.f32 %v9175_v31, %v2241_v32 }
 0xfcf   :  { %2245 = vrot.lane.b32.xlu0 %v2243_v50, %s9768_s13 }
0x1041   :  { %v2246_v43 = vpop.permute.xlu0 %2245 }
0x1042   :  { %v2248_v38 = vadd.f32 %v2246_v43, %v2238_v36 }
0x1044   :  { %9176 = vtanh.f32 %v2248_v38  ;;  %v2352_v2 = vrot.slane %v2248_v38, 6 }
0x1045   :  { %9178 = vpow2.f32 %v7604_v40 }
0x104e   :  { %v9177_v39 = vpop.eup %9176 }
0x104f   :  { %2251 = vrot.lane.b32.xlu1 %v9177_v39, %s9768_s13  ;;  %v9179_v41 = vpop.eup %9178 }
0x1050   :  { %v2229_v44 = vadd.f32 1.0, %v9179_v41 }
0x1052   :  { %9180 = vrcp.f32 %v2229_v44 }
0x105c   :  { %v9181_v45 = vpop.eup %9180 }
0x10c1   :  { %v2252_v48 = vpop.permute.xlu1 %2251 }
0x10c2   :  { %v10439_v51 = vmul.f32 %v9181_v45, %v2252_v48 }
0x10c4   :  { %2256 = vst.msk [vmem:[#allocation2] sm:$0xc0] %vm2255_vm5, %v10439_v51  ;;  %v2262_v53 = vrot.slane %v10439_v51, 6 }
0x10c6   :  { %7605 = vmatmul.mubr.msk.f32.vlgmr.msra.gmra.mrb[12].mxu1 %vm1783_vm2, %v2262_v53 }
0x10c7   :  { %8662 = vmatpush1.bf16.msra.mxu1 %v10254_v52  ;;  %2564 = vmatprep.mubr.f32.mxu1 %v9767_v11 }
0x10c8   :  { %8664 = vmatprep.subr.bf16.mxu1 %v10264_v55 }
0x10cb   :  { %8666 = vmatpush1.bf16.msra.mxu1 %v10287_v8 }
0x10cc   :  { %8668 = vmatprep.subr.bf16.mxu1 %v10297_v12 }
0x10cf   :  { %8670 = vmatpush1.bf16.msra.mxu1 %v10306_v15 }
0x10d0   :  { %8672 = vmatprep.subr.bf16.mxu1 %v10322_v24 }
0x10d3   :  { %8674 = vmatpush1.bf16.msra.mxu1 %v10324_v25 }
0x1199   :  { %v2331_v54 = vpop.f32.mrb[12].mxu1 }
0x119a   :  { %v2333_v56 = vpop.f32.mrb[13].mxu1  ;;  %v2336_v59 = vadd.f32 %v2331_v54, %v10371_v47 }
0x119b   :  { %v2337_v57 = vadd.f32 %v2333_v56, %v10373_v49 }
0x119c   :  { %v7606_v60 = vmul.f32 -1.442695, %v2336_v59 }
0x119d   :  { %9182 = vtanh.f32 %v2337_v57  ;;  %v7607_v10 = vmul.f32 -1.442695, %v2337_v57 }
0x119e   :  { %9184 = vpow2.f32 %v7606_v60 }
0x11a7   :  { %v9183_v58 = vpop.eup %9182 }
0x11a8   :  { %2356 = vrot.lane.b32.xlu0 %v9183_v58, %s9768_s13  ;;  %v9185_v61 = vpop.eup %9184 }
0x11a9   :  { %v2344_v62 = vadd.f32 1.0, %v9185_v61 }
0x11ab   :  { %9186 = vrcp.f32 %v2344_v62 }
0x11b5   :  { %v9187_v63 = vpop.eup %9186 }
0x11b6   :  { %v2354_v3 = vmul.f32 %v9187_v63, %v2352_v2 }
0x121a   :  { %v2357_v0 = vpop.permute.xlu0 %2356 }
0x121b   :  { %v2359_v1 = vmul.f32 %v9187_v63, %v2357_v0 }
0x121d   :  { %2361 = vrot.lane.b32.xlu1 %v2359_v1, %s9768_s13 }
0x128f   :  { %v2362_v5 = vpop.permute.xlu1 %2361 }
0x1290   :  { %v2364_v6 = vadd.f32 %v2362_v5, %v2354_v3 }
0x1292   :  { %9188 = vtanh.f32 %v2364_v6  ;;  %v2472_v29 = vrot.slane %v2364_v6, 6 }
0x1293   :  { %9190 = vpow2.f32 %v7607_v10 }
0x129c   :  { %v9189_v9 = vpop.eup %9188 }
0x129d   :  { %2367 = vrot.lane.b32.xlu0 %v9189_v9, %s9768_s13  ;;  %v9191_v13 = vpop.eup %9190 }
0x129e   :  { %v2345_v14 = vadd.f32 1.0, %v9191_v13 }
0x12a0   :  { %9192 = vrcp.f32 %v2345_v14 }
0x12aa   :  { %v9193_v17 = vpop.eup %9192 }
0x130f   :  { %v2368_v18 = vpop.permute.xlu0 %2367 }
0x1310   :  { %v10458_v19 = vmul.f32 %v9193_v17, %v2368_v18 }
0x1312   :  { %2371 = vst.msk [vmem:[#allocation2 + $0x8] sm:$0x3] %vm1890_vm1, %v10458_v19  ;;  %7608 = vmatmul.mubr.msk.f32.vlgmr.msra.gmra.mrb[20].mxu0 %vm1783_vm2, %v10458_v19 }
0x1313   :  { %8678 = vmatpush1.bf16.msra.mxu0 %v10254_v52  ;;  %2685 = vmatprep.mubr.f32.mxu0 %v9767_v11 }
0x1314   :  { %8680 = vmatprep.subr.bf16.mxu0 %v10264_v55 }
0x1317   :  { %8682 = vmatpush1.bf16.msra.mxu0 %v10287_v8 }
0x1318   :  { %8684 = vmatprep.subr.bf16.mxu0 %v10297_v12 }
0x131b   :  { %8686 = vmatpush1.bf16.msra.mxu0 %v10306_v15 }
0x131c   :  { %8688 = vmatprep.subr.bf16.mxu0 %v10322_v24 }
0x131f   :  { %8690 = vmatpush1.bf16.msra.mxu0 %v10324_v25 }
0x13e5   :  { %v2445_v20 = vpop.f32.mrb[20].mxu0 }
0x13e6   :  { %v2447_v22 = vpop.f32.mrb[21].mxu0  ;;  %v2452_v55 = vrot.slane %v2445_v20, 6 }
0x13e7   :  { %v2453_v23 = vrot.slane %v2447_v22, 6 }
0x13e8   :  { %v2456_v8 = vadd.f32 %v2452_v55, %v10371_v47 }
0x13e9   :  { %v2457_v26 = vadd.f32 %v2453_v23, %v10373_v49 }
0x13ea   :  { %v7609_v27 = vmul.f32 -1.442695, %v2456_v8 }
0x13eb   :  { %9194 = vtanh.f32 %v2457_v26  ;;  %v7610_v33 = vmul.f32 -1.442695, %v2457_v26 }
0x13ec   :  { %9196 = vpow2.f32 %v7609_v27 }
0x13f5   :  { %v9195_v52 = vpop.eup %9194 }
0x13f6   :  { %2476 = vrot.lane.b32.xlu1 %v9195_v52, %s9768_s13  ;;  %v9197_v12 = vpop.eup %9196 }
0x13f7   :  { %v2464_v15 = vadd.f32 1.0, %v9197_v12 }
0x13f9   :  { %9198 = vrcp.f32 %v2464_v15 }
0x1403   :  { %v9199_v24 = vpop.eup %9198 }
0x1404   :  { %v2474_v30 = vmul.f32 %v9199_v24, %v2472_v29 }
0x1468   :  { %v2477_v28 = vpop.permute.xlu1 %2476 }
0x1469   :  { %v2479_v25 = vmul.f32 %v9199_v24, %v2477_v28 }
0x146b   :  { %2481 = vrot.lane.b32.xlu0 %v2479_v25, %s9768_s13 }
0x14dd   :  { %v2482_v31 = vpop.permute.xlu0 %2481 }
0x14de   :  { %v2484_v32 = vadd.f32 %v2482_v31, %v2474_v30 }
0x14e0   :  { %9200 = vtanh.f32 %v2484_v32  ;;  %v2593_v63 = vrot.slane %v2484_v32, 6 }
0x14e1   :  { %9202 = vpow2.f32 %v7610_v33 }
0x14ea   :  { %v9201_v50 = vpop.eup %9200 }
0x14eb   :  { %2487 = vrot.lane.b32.xlu1 %v9201_v50, %s9768_s13  ;;  %v9203_v36 = vpop.eup %9202 }
0x14ec   :  { %v2465_v43 = vadd.f32 1.0, %v9203_v36 }
0x14ee   :  { %9204 = vrcp.f32 %v2465_v43 }
0x14f8   :  { %v9205_v38 = vpop.eup %9204 }
0x155d   :  { %v2488_v39 = vpop.permute.xlu1 %2487 }
0x155e   :  { %v10477_v40 = vmul.f32 %v9205_v38, %v2488_v39 }
0x1560   :  { %2491 = vst.msk [vmem:[#allocation2 + $0x8] sm:$0xc] %vm2011_vm3, %v10477_v40  ;;  %v2497_v41 = vrot.slane %v10477_v40, 2 }
0x1562   :  { %7611 = vmatmul.mubr.msk.f32.vlgmr.msra.gmra.mrb[14].mxu1 %vm1783_vm2, %v2497_v41 }
0x1563   :  { %8125 = vmatprep.mubr.msk.f32.mxu1 %vm315_vm0, %v10236_v46 }
0x1635   :  { %v2566_v44 = vpop.f32.mrb[14].mxu1 }
0x1636   :  { %v2568_v45 = vpop.f32.mrb[15].mxu1  ;;  %v2573_v56 = vrot.slane %v2566_v44, 4 }
0x1637   :  { %v2574_v48 = vrot.slane %v2568_v45, 4 }
0x1638   :  { %v2577_v57 = vadd.f32 %v2573_v56, %v10371_v47  ;;  %v2739_v56 = vld [vmem:[#allocation2] sm:$0xff] }
0x1639   :  { %v2578_v53 = vadd.f32 %v2574_v48, %v10373_v49  ;;  %v2846_v48 = vld [vmem:[#allocation20 + $0x8] sm:$0xff] }
0x163a   :  { %v7612_v58 = vmul.f32 -1.442695, %v2577_v57 }
0x163b   :  { %9206 = vtanh.f32 %v2578_v53  ;;  %v7613_v5 = vmul.f32 -1.442695, %v2578_v53  ;;  %v2848_v53 = vld [vmem:[#allocation20 + $0x18] sm:$0xff] }
0x163c   :  { %9208 = vpow2.f32 %v7612_v58 }
0x1645   :  { %v9207_v54 = vpop.eup %9206 }
0x1646   :  { %2597 = vrot.lane.b32.xlu0 %v9207_v54, %s9768_s13  ;;  %v9209_v59 = vpop.eup %9208 }
0x1647   :  { %v2585_v60 = vadd.f32 1.0, %v9209_v59 }
0x1649   :  { %9210 = vrcp.f32 %v2585_v60 }
0x1653   :  { %v9211_v61 = vpop.eup %9210 }
0x1654   :  { %v2595_v0 = vmul.f32 %v9211_v61, %v2593_v63  ;;  %v2850_v63 = vld [vmem:[#allocation20 + $0x28] sm:$0xff] }
0x16b8   :  { %v2598_v62 = vpop.permute.xlu0 %2597 }
0x16b9   :  { %v2600_v46 = vmul.f32 %v9211_v61, %v2598_v62  ;;  %v8695_v61 = vpack.c.bf16 %v2848_v53, %v2846_v48  ;;  %v2845_v62 = vld [vmem:[#allocation20] sm:$0xff]  ;;  %v2834_v48 = vld [vmem:[%s11139_s15 + $0x28] sm:$0xff] }
0x16ba   :  { %v2836_v53 = vld [vmem:[%s11139_s15 + $0x38] sm:$0xff] }
0x16bb   :  { %2602 = vrot.lane.b32.xlu1 %v2600_v46, %s9768_s13  ;;  %v2847_v46 = vld [vmem:[#allocation20 + $0x10] sm:$0xff] }
0x172d   :  { %v2603_v1 = vpop.permute.xlu1 %2602 }
0x172e   :  { %v2605_v2 = vadd.f32 %v2603_v1, %v2595_v0  ;;  %v2852_v0 = vld [vmem:[#allocation20 + $0x38] sm:$0xff]  ;;  %v8697_v1 = vpack.c.bf16 %v2847_v46, %v2845_v62 }
0x172f   :  { %v2838_v46 = vld [vmem:[%s11139_s15 + $0x48] sm:$0xff] }
0x1730   :  { %9212 = vtanh.f32 %v2605_v2 }
0x1731   :  { %9214 = vpow2.f32 %v7613_v5  ;;  %v2851_v5 = vld [vmem:[#allocation20 + $0x30] sm:$0xff] }
0x173a   :  { %v9213_v3 = vpop.eup %9212 }
0x173b   :  { %2608 = vrot.lane.b32.xlu0 %v9213_v3, %s9768_s13  ;;  %v9215_v6 = vpop.eup %9214  ;;  %v2849_v3 = vld [vmem:[#allocation20 + $0x20] sm:$0xff] }
0x173c   :  { %v2586_v9 = vadd.f32 1.0, %v9215_v6  ;;  %v2854_v6 = vld [vmem:[#allocation20 + $0x48] sm:$0xff] }
0x173e   :  { %9216 = vrcp.f32 %v2586_v9  ;;  %v2856_v9 = vld [vmem:[#allocation20 + $0x58] sm:$0xff] }
0x1748   :  { %v9217_v10 = vpop.eup %9216 }
0x17ad   :  { %v2609_v13 = vpop.permute.xlu0 %2608 }
0x17ae   :  { %v2611_v14 = vmul.f32 %v9217_v10, %v2609_v13  ;;  %v8701_v10 = vpack.c.bf16 %v2851_v5, %v2849_v3  ;;  %v8703_v13 = vpack.c.bf16 %v2856_v9, %v2854_v6  ;;  %v2839_v3 = vld [vmem:[%s11139_s15 + $0x50] sm:$0xff]  ;;  %v2842_v5 = vld [vmem:[%s11139_s15 + $0x68] sm:$0xff]  ;;  %v2844_v6 = vld [vmem:[%s11139_s15 + $0x78] sm:$0xff] }
0x17b0   :  { %2612 = vst.msk [vmem:[#allocation2 + $0x8] sm:$0x30] %vm2133_vm4, %v2611_v14  ;;  %v2618_v17 = vrot.slane %v2611_v14, 4 }
0x17b2   :  { %7614 = vmatmul.mubr.msk.f32.vlgmr.msra.gmra.mrb[22].mxu0 %vm1783_vm2, %v2618_v17  ;;  %v2855_v17 = vld [vmem:[#allocation20 + $0x50] sm:$0xff] }
0x17b3   :  { %3123 = vmatprep.mubr.f32.mxu0 %v9767_v11 }
0x1885   :  { %v2687_v18 = vpop.f32.mrb[22].mxu0 }
0x1886   :  { %v2689_v20 = vpop.f32.mrb[23].mxu0  ;;  %v2694_v52 = vrot.slane %v2687_v18, 2  ;;  %v2858_v18 = vld [vmem:[#allocation20 + $0x68] sm:$0xff] }
0x1887   :  { %v2695_v22 = vrot.slane %v2689_v20, 2  ;;  %v2860_v20 = vld [vmem:[#allocation20 + $0x78] sm:$0xff] }
0x1888   :  { %v2698_v55 = vadd.f32 %v2694_v52, %v10371_v47  ;;  %v2714_v47 = vrot.slane %v2605_v2, 6  ;;  %v8699_v2 = vpack.c.bf16 %v2852_v0, %v2850_v63  ;;  %v2859_v52 = vld [vmem:[#allocation20 + $0x70] sm:$0xff]  ;;  %v2840_v63 = vld [vmem:[%s11139_s15 + $0x58] sm:$0xff] }
0x1889   :  { %v2699_v23 = vadd.f32 %v2695_v22, %v10373_v49 }
0x188a   :  { %v7615_v8 = vmul.f32 -1.442695, %v2698_v55 }
0x188b   :  { %9218 = vtanh.f32 %v2699_v23 }
0x188c   :  { %9220 = vpow2.f32 %v7615_v8  ;;  %v2832_v8 = vld [vmem:[%s11139_s15 + $0x18] sm:$0xff] }
0x1895   :  { %v9219_v26 = vpop.eup %9218 }
0x1896   :  { %2718 = vrot.lane.b32.xlu1 %v9219_v26, %s9768_s13  ;;  %v9221_v27 = vpop.eup %9220  ;;  %v2857_v26 = vld [vmem:[#allocation20 + $0x60] sm:$0xff] }
0x1897   :  { %v2706_v12 = vadd.f32 1.0, %v9221_v27  ;;  %v8709_v55 = vpack.c.bf16 %v2859_v52, %v2857_v26 }
0x1899   :  { %9222 = vrcp.f32 %v2706_v12  ;;  %v3044_v12 = vld [vmem:[#allocation22 + $0x8] sm:$0xff] }
0x18a3   :  { %v9223_v15 = vpop.eup %9222 }
0x18a4   :  { %v2716_v49 = vmul.f32 %v9223_v15, %v2714_v47  ;;  %v3045_v47 = vld [vmem:[#allocation22 + $0x10] sm:$0xff] }
0x1908   :  { %v2719_v24 = vpop.permute.xlu1 %2718 }
0x1909   :  { %v2721_v28 = vmul.f32 %v9223_v15, %v2719_v24  ;;  %v3046_v15 = vld [vmem:[#allocation22 + $0x18] sm:$0xff] }
0x190a   :  { %v10540_v24 = vpack.c.bf16 %v3046_v15, %v3044_v12 }
0x190b   :  { %2723 = vrot.lane.b32.xlu0 %v2721_v28, %s9768_s13  ;;  %v3043_v28 = vld [vmem:[#allocation22] sm:$0xff] }
0x190c   :  { %8728 = vmatprep.subr.bf16.mxu0 %v10540_v24 }
0x190f   :  { %1893 = vrot.lane.b32.xlu0 %v10379_v7, %s9769_s19 }
0x1913   :  { %2136 = vrot.lane.b32.xlu0 %v10419_v16, %s9769_s19 }
0x1917   :  { %2373 = vrot.lane.b32.xlu0 %v10458_v19, %s9769_s19  ;;  %v7616_v19 = vmul.f32 -1.442695, %v2699_v23  ;;  %v8707_v23 = vpack.c.bf16 %v2860_v20, %v2858_v18  ;;  %v3027_v20 = vld [vmem:[#allocation23] sm:$0x3] }
0x191b   :  { %2614 = vrot.lane.b32.xlu0 %v2611_v14, %s9769_s19  ;;  %v2853_v14 = vld [vmem:[#allocation20 + $0x40] sm:$0xff] }
0x191c   :  { %v8705_v22 = vpack.c.bf16 %v2855_v17, %v2853_v14  ;;  %v2843_v14 = vld [vmem:[%s11139_s15 + $0x70] sm:$0xff] }
0x197d   :  { %v2724_v25 = vpop.permute.xlu0 %2723 }
0x197e   :  { %v2726_v29 = vadd.f32 %v2724_v25, %v2716_v49  ;;  %v10542_v49 = vpack.c.bf16 %v3045_v47, %v3043_v28  ;;  %v3048_v25 = vld [vmem:[#allocation22 + $0x28] sm:$0xff] }
0x1980   :  { %9224 = vtanh.f32 %v2726_v29  ;;  %8730 = vmatpush1.bf16.msra.mxu0 %v10542_v49  ;;  %v3050_v29 = vld [vmem:[#allocation22 + $0x38] sm:$0xff] }
0x1981   :  { %v1894_v30 = vpop.permute.xlu0 %1893  ;;  %9226 = vpow2.f32 %v7616_v19  ;;  %v3054_v19 = vld [vmem:[#allocation22 + $0x58] sm:$0xff] }
0x1982   :  { %1896 = vst.msk [vmem:[#allocation3 + $0xe] sm:$0x3] %vm1890_vm1, %v1894_v30  ;;  %v3047_v30 = vld [vmem:[#allocation22 + $0x20] sm:$0xff] }
0x1985   :  { %v2137_v31 = vpop.permute.xlu0 %2136 }
0x1986   :  { %2139 = vst.msk [vmem:[#allocation3 + $0x6] sm:$0x30] %vm2133_vm4, %v2137_v31  ;;  %v3049_v31 = vld [vmem:[#allocation22 + $0x30] sm:$0xff] }
0x1989   :  { %v2374_v7 = vpop.permute.xlu0 %2373 }
0x198a   :  { %v9225_v32 = vpop.eup %9224  ;;  %2376 = vst.msk [vmem:[#allocation3 + $0x6] sm:$0x3] %vm1890_vm1, %v2374_v7  ;;  %v10546_v7 = vpack.c.bf16 %v3050_v29, %v3048_v25 }
0x198b   :  { %2729 = vrot.lane.b32.xlu1 %v9225_v32, %s9768_s13  ;;  %v9227_v50 = vpop.eup %9226  ;;  %v10548_v32 = vpack.c.bf16 %v3049_v31, %v3047_v30 }
0x198c   :  { %v2707_v33 = vadd.f32 1.0, %v9227_v50  ;;  %8732 = vmatprep.subr.bf16.mxu0 %v10546_v7  ;;  %v3051_v50 = vld [vmem:[#allocation22 + $0x40] sm:$0xff] }
0x198d   :  { %v2615_v16 = vpop.permute.xlu0 %2614  ;;  %8734 = vmatpush1.bf16.msra.mxu0 %v10548_v32 }
0x198e   :  { %2617 = vst.msk [vmem:[#allocation3 - $0x2] sm:$0x30] %vm2133_vm4, %v2615_v16  ;;  %9228 = vrcp.f32 %v2707_v33  ;;  %v3052_v16 = vld [vmem:[#allocation22 + $0x48] sm:$0xff]  ;;  %v3053_v33 = vld [vmem:[#allocation22 + $0x50] sm:$0xff] }
0x198f   :  { %2014 = vrot.lane.b32.xlu1 %v10399_v42, %s9769_s19 }
0x1993   :  { %2258 = vrot.lane.b32.xlu1 %v10439_v51, %s9769_s19 }
0x1997   :  { %2493 = vrot.lane.b32.xlu1 %v10477_v40, %s9769_s19 }
0x1998   :  { %v9229_v36 = vpop.eup %9228 }
0x19fd   :  { %v2730_v43 = vpop.permute.xlu1 %2729 }
0x19fe   :  { %v2732_v38 = vmul.f32 %v9229_v36, %v2730_v43  ;;  %v10552_v36 = vpack.c.bf16 %v3054_v19, %v3052_v16  ;;  %v10554_v43 = vpack.c.bf16 %v3053_v33, %v3051_v50 }
0x1a00   :  { %2733 = vst.msk [vmem:[#allocation2 + $0x8] sm:$0xc0] %vm2255_vm5, %v2732_v38  ;;  %2735 = vrot.lane.b32.xlu1 %v2732_v38, %s9769_s19  ;;  %8736 = vmatprep.subr.bf16.mxu0 %v10552_v36  ;;  %v3056_v38 = vld [vmem:[#allocation22 + $0x68] sm:$0xff] }
0x1a01   :  { %v2015_v39 = vpop.permute.xlu1 %2014  ;;  %8738 = vmatpush1.bf16.msra.mxu0 %v10554_v43 }
0x1a02   :  { %2017 = vst.msk [vmem:[#allocation3 + $0xa] sm:$0xc] %vm2011_vm3, %v2015_v39  ;;  %v3058_v39 = vld [vmem:[#allocation22 + $0x78] sm:$0xff] }
0x1a05   :  { %v2259_v42 = vpop.permute.xlu1 %2258 }
0x1a06   :  { %2261 = vst.msk [vmem:[#allocation3 + $0x2] sm:$0xc0] %vm2255_vm5, %v2259_v42  ;;  %v3055_v42 = vld [vmem:[#allocation22 + $0x60] sm:$0xff] }
0x1a07   :  { %v2740_v54 = vld [vmem:[#allocation2 + $0x8] sm:$0xff] }
0x1a09   :  { %v2494_v51 = vpop.permute.xlu1 %2493 }
0x1a0a   :  { %2496 = vst.msk [vmem:[#allocation3 + $0x2] sm:$0xc] %vm2011_vm3, %v2494_v51  ;;  %v3057_v51 = vld [vmem:[#allocation22 + $0x70] sm:$0xff] }
0x1a0d   :  { %v2742_v40 = vld [vmem:[#allocation3 + $0x8] sm:$0xff] }
0x1a0e   :  { %2747 = vrot.lane.b32.xlu1 %v2742_v40, %s9770_s2  ;;  %v10558_v40 = vpack.c.bf16 %v3058_v39, %v3056_v38 }
0x1a10   :  { %8740 = vmatprep.subr.bf16.mxu0 %v10558_v40 }
0x1a72   :  { %v2736_v41 = vpop.permute.xlu1 %2735 }
0x1a73   :  { %2738 = vst.msk [vmem:[#allocation3 - $0x6] sm:$0xc0] %vm2255_vm5, %v2736_v41  ;;  %v10560_v41 = vpack.c.bf16 %v3057_v51, %v3055_v42 }
0x1a75   :  { %8742 = vmatpush1.bf16.msra.mxu0 %v10560_v41 }
0x1a76   :  { %8744 = vmatprep.subr.bf16.mxu0 %v10540_v24 }
0x1a78   :  { %3124 = vmatmul.mubr.f32.vlgmr.msra.gmra.mrb[24].mxu0 %v9767_v11 }
0x1a79   :  { %8746 = vmatpush1.bf16.msra.mxu0 %v10542_v49  ;;  %3234 = vmatprep.mubr.f32.mxu0 %v9767_v11 }
0x1a7a   :  { %v2741_v44 = vld [vmem:[#allocation3] sm:$0xff]  ;;  %8748 = vmatprep.subr.bf16.mxu0 %v10546_v7 }
0x1a7b   :  { %2745 = vrot.lane.b32.xlu0 %v2741_v44, %s9770_s2  ;;  %v2829_v44 = vld [vmem:[%s11139_s15] sm:$0xff] }
0x1a7d   :  { %8750 = vmatpush1.bf16.msra.mxu0 %v10548_v32 }
0x1a7e   :  { %8752 = vmatprep.subr.bf16.mxu0 %v10552_v36 }
0x1a80   :  { %v2748_v45 = vpop.permute.xlu1 %2747 }
0x1a81   :  { %v10524_v58 = vsel %vm2751_vm6, %v2740_v54, %v2748_v45  ;;  %8754 = vmatpush1.bf16.msra.mxu0 %v10554_v43  ;;  %v2831_v45 = vld [vmem:[%s11139_s15 + $0x10] sm:$0xff] }
0x1a82   :  { %8756 = vmatprep.subr.bf16.mxu0 %v10558_v40  ;;  %v8713_v54 = vpack.c.bf16 %v2831_v45, %v2829_v44 }
0x1a85   :  { %8758 = vmatpush1.bf16.msra.mxu0 %v10560_v41 }
0x1a86   :  { %8776 = vmatprep.subr.bf16.mxu0 %v10540_v24 }
0x1aed   :  { %v2746_v57 = vpop.permute.xlu0 %2745 }
0x1aee   :  { %v10527_v59 = vsel %vm2751_vm6, %v2739_v56, %v2746_v57  ;;  %v8715_v57 = vpack.c.bf16 %v2836_v53, %v2834_v48 }
0x1aef   :  { %v8691_v60 = vpack.c.bf16 %v10524_v58, %v10527_v59 }
0x1af1   :  { %8692 = vmatprep.subr.bf16.mxu1 %v8691_v60 }
0x1af2   :  { %8694 = vmatpush3.bf16.msra.mxu1 %v8691_v60  ;;  %v2833_v60 = vld [vmem:[%s11139_s15 + $0x20] sm:$0xff] }
0x1af3   :  { %8696 = vmatprep.subr.bf16.mxu1 %v8695_v61  ;;  %v2835_v61 = vld [vmem:[%s11139_s15 + $0x30] sm:$0xff] }
0x1af4   :  { %v8717_v0 = vpack.c.bf16 %v2835_v61, %v2833_v60 }
0x1af5   :  { %8126 = vmatmul.mubr.msk.f32.vlgmr.msra.gmra.mrb[16].mxu1 %vm315_vm0, %v10277_v4  ;;  %v2830_v4 = vld [vmem:[%s11139_s15 + $0x8] sm:$0xff] }
0x1af6   :  { %8698 = vmatpush1.bf16.msra.mxu1 %v8697_v1  ;;  %2931 = vmatprep.mubr.f32.mxu1 %v9767_v11  ;;  %v8711_v27 = vpack.c.bf16 %v2832_v8, %v2830_v4  ;;  %v8719_v1 = vpack.c.bf16 %v2840_v63, %v2838_v46 }
0x1af7   :  { %8700 = vmatprep.subr.bf16.mxu1 %v8699_v2  ;;  %v2837_v2 = vld [vmem:[%s11139_s15 + $0x40] sm:$0xff] }
0x1af8   :  { %v8721_v9 = vpack.c.bf16 %v2839_v3, %v2837_v2 }
0x1afa   :  { %8702 = vmatpush1.bf16.msra.mxu1 %v8701_v10  ;;  %v8723_v10 = vpack.c.bf16 %v2844_v6, %v2842_v5 }
0x1afb   :  { %8704 = vmatprep.subr.bf16.mxu1 %v8703_v13  ;;  %v2841_v13 = vld [vmem:[%s11139_s15 + $0x60] sm:$0xff] }
0x1afc   :  { %v8725_v17 = vpack.c.bf16 %v2843_v14, %v2841_v13 }
0x1afe   :  { %8706 = vmatpush1.bf16.msra.mxu1 %v8705_v22  ;;  %v3036_v22 = vrot.slane %v3027_v20, %v1759_v37 }
0x1aff   :  { %8708 = vmatprep.subr.bf16.mxu1 %v8707_v23 }
0x1b02   :  { %8710 = vmatpush1.bf16.msra.mxu1 %v8709_v55 }
0x1b03   :  { %8712 = vmatprep.subr.bf16.mxu1 %v8711_v27 }
0x1bc8   :  { %v8127_v56 = vpop.f32.mrb[16].mxu1 }
0x1bc9   :  { %v2820_v62 = vpop.f32.mrb[17].mxu1 }
0x1bca   :  { %7619 = vmatmul.mubr.msk.f32.vlgmr.msra.gmra.mrb[18].mxu1 %vm1783_vm2, %v2820_v62 }
0x1bcb   :  { %8714 = vmatpush1.bf16.msra.mxu1 %v8713_v54  ;;  %2937 = vmatprep.mubr.f32.mxu1 %v9767_v11 }
0x1bcc   :  { %8716 = vmatprep.subr.bf16.mxu1 %v8715_v57 }
0x1bce   :  { %7620 = vmatmul.mubr.msk.f32.gmra.mrb[20].mxu1 %vm1783_vm2, %v8127_v56 }
0x1bcf   :  { %8718 = vmatpush1.bf16.msra.mxu1 %v8717_v0  ;;  %3014 = vmatprep.mubr.f32.mxu1 %v9767_v11 }
0x1bd0   :  { %8720 = vmatprep.subr.bf16.mxu1 %v8719_v1 }
0x1bd3   :  { %8722 = vmatpush1.bf16.msra.mxu1 %v8721_v9 }
0x1bd4   :  { %8724 = vmatprep.subr.bf16.mxu1 %v8723_v10 }
0x1bd7   :  { %8726 = vmatpush1.bf16.msra.mxu1 %v8725_v17 }
0x1bd8   :  { %8760 = vmatprep.subr.bf16.mxu1 %v10540_v24 }
0x1bda   :  { %7621 = vmatmul.mubr.msk.f32.vlgmr.msra.gmra.mrb[18].mxu1 %vm1783_vm2, %v10527_v59  ;;  %v3125_v59 = vpop.f32.mrb[24].mxu0 }
0x1bdb   :  { %3020 = vmatprep.mubr.f32.mxu1 %v9767_v11  ;;  %8762 = vmatpush1.bf16.msra.mxu1 %v10542_v49  ;;  %v3127_v18 = vpop.f32.mrb[25].mxu0 }
0x1bdc   :  { %8764 = vmatprep.subr.bf16.mxu1 %v10546_v7 }
0x1bde   :  { %7622 = vmatmul.mubr.msk.f32.gmra.mrb[20].mxu1 %vm1783_vm2, %v10524_v58  ;;  %v3032_v58 = vrot.slane %v3027_v20, %v1755_v35 }
0x1bdf   :  { %8766 = vmatpush1.bf16.msra.mxu1 %v10548_v32  ;;  %3355 = vmatprep.mubr.f32.mxu1 %v9767_v11 }
0x1be0   :  { %8768 = vmatprep.subr.bf16.mxu1 %v10552_v36 }
0x1be3   :  { %8770 = vmatpush1.bf16.msra.mxu1 %v10554_v43 }
0x1be4   :  { %8772 = vmatprep.subr.bf16.mxu1 %v10558_v40 }
0x1be7   :  { %8774 = vmatpush1.bf16.msra.mxu1 %v10560_v41 }
0x1be8   :  { %8792 = vmatprep.subr.bf16.mxu1 %v10540_v24 }
0x1cad   :  { %v3016_v23 = vpop.f32.mrb[18].mxu1 }
0x1cae   :  { %v10640_v26 = vadd.f32 %v3032_v58, %v3016_v23  ;;  %v3018_v52 = vpop.f32.mrb[19].mxu1 }
0x1caf   :  { %v10642_v55 = vadd.f32 %v3036_v22, %v3018_v52 }
0x1cb0   :  { %v3130_v34 = vadd.f32 %v3125_v59, %v10640_v26 }
0x1cb1   :  { %v3131_v4 = vadd.f32 %v3127_v18, %v10642_v55  ;;  %v3022_v8 = vpop.f32.mrb[20].mxu1 }
0x1cb2   :  { %v10645_v27 = vadd.f32 %v3032_v58, %v3022_v8  ;;  %v3024_v12 = vpop.f32.mrb[21].mxu1  ;;  %v7623_v35 = vmul.f32 -1.442695, %v3130_v34 }
0x1cb3   :  { %9230 = vtanh.f32 %v3131_v4  ;;  %v10647_v15 = vadd.f32 %v3036_v22, %v3024_v12  ;;  %v7624_v33 = vmul.f32 -1.442695, %v3131_v4 }
0x1cb4   :  { %9232 = vpow2.f32 %v7623_v35 }
0x1cbd   :  { %v9231_v28 = vpop.eup %9230 }
0x1cbe   :  { %3147 = vrot.lane.b32.xlu0 %v9231_v28, %s9768_s13  ;;  %v9233_v37 = vpop.eup %9232 }
0x1cbf   :  { %v3138_v47 = vadd.f32 1.0, %v9233_v37 }
0x1cc1   :  { %9234 = vrcp.f32 %v3138_v47 }
0x1ccb   :  { %v9235_v25 = vpop.eup %9234 }
0x1ccc   :  { %v3145_v31 = vmul.f32 0.0, %v9235_v25 }
0x1d30   :  { %v3148_v29 = vpop.permute.xlu0 %3147 }
0x1d31   :  { %v3150_v30 = vmul.f32 %v9235_v25, %v3148_v29 }
0x1d33   :  { %3152 = vrot.lane.b32.xlu1 %v3150_v30, %s9768_s13 }
0x1da5   :  { %v3153_v16 = vpop.permute.xlu1 %3152 }
0x1da6   :  { %v3155_v19 = vadd.f32 %v3153_v16, %v3145_v31 }
0x1da8   :  { %9236 = vtanh.f32 %v3155_v19  ;;  %v3263_v2 = vrot.slane %v3155_v19, 6 }
0x1da9   :  { %9238 = vpow2.f32 %v7624_v33 }
0x1db2   :  { %v9237_v50 = vpop.eup %9236 }
0x1db3   :  { %3158 = vrot.lane.b32.xlu0 %v9237_v50, %s9768_s13  ;;  %v9239_v38 = vpop.eup %9238 }
0x1db4   :  { %v3139_v39 = vadd.f32 1.0, %v9239_v38 }
0x1db6   :  { %9240 = vrcp.f32 %v3139_v39 }
0x1dc0   :  { %v9241_v42 = vpop.eup %9240 }
0x1e25   :  { %v3159_v51 = vpop.permute.xlu0 %3158 }
0x1e26   :  { %v10653_v44 = vmul.f32 %v9241_v42, %v3159_v51 }
0x1e28   :  { %3162 = vst.msk [vmem:[#allocation2] sm:$0x3] %vm1890_vm1, %v10653_v44  ;;  %7625 = vmatmul.mubr.msk.f32.vlgmr.msra.gmra.mrb[26].mxu0 %vm1783_vm2, %v10653_v44 }
0x1e29   :  { %8778 = vmatpush1.bf16.msra.mxu0 %v10542_v49  ;;  %3476 = vmatprep.mubr.f32.mxu0 %v9767_v11 }
0x1e2a   :  { %8780 = vmatprep.subr.bf16.mxu0 %v10546_v7 }
0x1e2d   :  { %8782 = vmatpush1.bf16.msra.mxu0 %v10548_v32 }
0x1e2e   :  { %8784 = vmatprep.subr.bf16.mxu0 %v10552_v36 }
0x1e31   :  { %8786 = vmatpush1.bf16.msra.mxu0 %v10554_v43 }
0x1e32   :  { %8788 = vmatprep.subr.bf16.mxu0 %v10558_v40 }
0x1e35   :  { %8790 = vmatpush1.bf16.msra.mxu0 %v10560_v41 }
0x1e36   :  { %8808 = vmatprep.subr.bf16.mxu0 %v10540_v24 }
0x1efb   :  { %v3236_v45 = vpop.f32.mrb[26].mxu0 }
0x1efc   :  { %v3238_v48 = vpop.f32.mrb[27].mxu0  ;;  %v3243_v57 = vrot.slane %v3236_v45, 6 }
0x1efd   :  { %v3244_v53 = vrot.slane %v3238_v48, 6 }
0x1efe   :  { %v3247_v60 = vadd.f32 %v3243_v57, %v10640_v26 }
0x1eff   :  { %v3248_v54 = vadd.f32 %v3244_v53, %v10642_v55 }
0x1f00   :  { %v7626_v61 = vmul.f32 -1.442695, %v3247_v60 }
0x1f01   :  { %9242 = vtanh.f32 %v3248_v54  ;;  %v7627_v10 = vmul.f32 -1.442695, %v3248_v54 }
0x1f02   :  { %9244 = vpow2.f32 %v7626_v61 }
0x1f0b   :  { %v9243_v56 = vpop.eup %9242 }
0x1f0c   :  { %3267 = vrot.lane.b32.xlu1 %v9243_v56, %s9768_s13  ;;  %v9245_v62 = vpop.eup %9244 }
0x1f0d   :  { %v3255_v46 = vadd.f32 1.0, %v9245_v62 }
0x1f0f   :  { %9246 = vrcp.f32 %v3255_v46 }
0x1f19   :  { %v9247_v63 = vpop.eup %9246 }
0x1f1a   :  { %v3265_v3 = vmul.f32 %v9247_v63, %v3263_v2 }
0x1f7e   :  { %v3268_v0 = vpop.permute.xlu1 %3267 }
0x1f7f   :  { %v3270_v1 = vmul.f32 %v9247_v63, %v3268_v0 }
0x1f81   :  { %3272 = vrot.lane.b32.xlu0 %v3270_v1, %s9768_s13 }
0x1ff3   :  { %v3273_v5 = vpop.permute.xlu0 %3272 }
0x1ff4   :  { %v3275_v6 = vadd.f32 %v3273_v5, %v3265_v3 }
0x1ff6   :  { %9248 = vtanh.f32 %v3275_v6  ;;  %v3384_v29 = vrot.slane %v3275_v6, 6 }
0x1ff7   :  { %9250 = vpow2.f32 %v7627_v10 }
0x2000   :  { %v9249_v9 = vpop.eup %9248 }
0x2001   :  { %3278 = vrot.lane.b32.xlu1 %v9249_v9, %s9768_s13  ;;  %v9251_v13 = vpop.eup %9250 }
0x2002   :  { %v3256_v14 = vadd.f32 1.0, %v9251_v13 }
0x2004   :  { %9252 = vrcp.f32 %v3256_v14 }
0x200e   :  { %v9253_v17 = vpop.eup %9252 }
0x2073   :  { %v3279_v59 = vpop.permute.xlu1 %3278 }
0x2074   :  { %v10673_v18 = vmul.f32 %v9253_v17, %v3279_v59 }
0x2076   :  { %3282 = vst.msk [vmem:[#allocation2] sm:$0xc] %vm2011_vm3, %v10673_v18  ;;  %v3288_v20 = vrot.slane %v10673_v18, 2 }
0x2078   :  { %7628 = vmatmul.mubr.msk.f32.vlgmr.msra.gmra.mrb[22].mxu1 %vm1783_vm2, %v3288_v20 }
0x2079   :  { %8794 = vmatpush1.bf16.msra.mxu1 %v10542_v49  ;;  %3597 = vmatprep.mubr.f32.mxu1 %v9767_v11 }
0x207a   :  { %8796 = vmatprep.subr.bf16.mxu1 %v10546_v7 }
0x207d   :  { %8798 = vmatpush1.bf16.msra.mxu1 %v10548_v32 }
0x207e   :  { %8800 = vmatprep.subr.bf16.mxu1 %v10552_v36 }
0x2081   :  { %8802 = vmatpush1.bf16.msra.mxu1 %v10554_v43 }
0x2082   :  { %8804 = vmatprep.subr.bf16.mxu1 %v10558_v40 }
0x2085   :  { %8806 = vmatpush1.bf16.msra.mxu1 %v10560_v41 }
0x2086   :  { %8824 = vmatprep.subr.bf16.mxu1 %v10540_v24 }
0x214b   :  { %v3357_v58 = vpop.f32.mrb[22].mxu1 }
0x214c   :  { %v3359_v22 = vpop.f32.mrb[23].mxu1  ;;  %v3364_v8 = vrot.slane %v3357_v58, 4 }
0x214d   :  { %v3365_v23 = vrot.slane %v3359_v22, 4 }
0x214e   :  { %v3368_v12 = vadd.f32 %v3364_v8, %v10640_v26 }
0x214f   :  { %v3369_v52 = vadd.f32 %v3365_v23, %v10642_v55 }
0x2150   :  { %v7629_v28 = vmul.f32 -1.442695, %v3368_v12 }
0x2151   :  { %9254 = vtanh.f32 %v3369_v52  ;;  %v7630_v50 = vmul.f32 -1.442695, %v3369_v52 }
0x2152   :  { %9256 = vpow2.f32 %v7629_v28 }
0x215b   :  { %v9255_v4 = vpop.eup %9254 }
0x215c   :  { %3388 = vrot.lane.b32.xlu0 %v9255_v4, %s9768_s13  ;;  %v9257_v34 = vpop.eup %9256 }
0x215d   :  { %v3376_v35 = vadd.f32 1.0, %v9257_v34 }
0x215f   :  { %9258 = vrcp.f32 %v3376_v35 }
0x2169   :  { %v9259_v37 = vpop.eup %9258 }
0x216a   :  { %v3386_v30 = vmul.f32 %v9259_v37, %v3384_v29 }
0x21ce   :  { %v3389_v47 = vpop.permute.xlu0 %3388 }
0x21cf   :  { %v3391_v25 = vmul.f32 %v9259_v37, %v3389_v47 }
0x21d1   :  { %3393 = vrot.lane.b32.xlu1 %v3391_v25, %s9768_s13 }
0x2243   :  { %v3394_v31 = vpop.permute.xlu1 %3393 }
0x2244   :  { %v3396_v16 = vadd.f32 %v3394_v31, %v3386_v30 }
0x2246   :  { %9260 = vtanh.f32 %v3396_v16  ;;  %v3505_v2 = vrot.slane %v3396_v16, 6 }
0x2247   :  { %9262 = vpow2.f32 %v7630_v50 }
0x2250   :  { %v9261_v19 = vpop.eup %9260 }
0x2251   :  { %3399 = vrot.lane.b32.xlu0 %v9261_v19, %s9768_s13  ;;  %v9263_v33 = vpop.eup %9262 }
0x2252   :  { %v3377_v38 = vadd.f32 1.0, %v9263_v33 }
0x2254   :  { %9264 = vrcp.f32 %v3377_v38 }
0x225e   :  { %v9265_v39 = vpop.eup %9264 }
0x22c3   :  { %v3400_v42 = vpop.permute.xlu0 %3399 }
0x22c4   :  { %v10693_v51 = vmul.f32 %v9265_v39, %v3400_v42 }
0x22c6   :  { %3403 = vst.msk [vmem:[#allocation2] sm:$0x30] %vm2133_vm4, %v10693_v51  ;;  %v3409_v45 = vrot.slane %v10693_v51, 4 }
0x22c8   :  { %7631 = vmatmul.mubr.msk.f32.vlgmr.msra.gmra.mrb[28].mxu0 %vm1783_vm2, %v3409_v45 }
0x22c9   :  { %8810 = vmatpush1.bf16.msra.mxu0 %v10542_v49  ;;  %3711 = vmatprep.mubr.f32.mxu0 %v9767_v11 }
0x22ca   :  { %8812 = vmatprep.subr.bf16.mxu0 %v10546_v7 }
0x22cd   :  { %8814 = vmatpush1.bf16.msra.mxu0 %v10548_v32 }
0x22ce   :  { %8816 = vmatprep.subr.bf16.mxu0 %v10552_v36 }
0x22d1   :  { %8818 = vmatpush1.bf16.msra.mxu0 %v10554_v43 }
0x22d2   :  { %8820 = vmatprep.subr.bf16.mxu0 %v10558_v40 }
0x22d5   :  { %8822 = vmatpush1.bf16.msra.mxu0 %v10560_v41 }
0x22d6   :  { %8840 = vmatprep.subr.bf16.mxu0 %v10540_v24 }
0x239b   :  { %v3478_v48 = vpop.f32.mrb[28].mxu0 }
0x239c   :  { %v3480_v53 = vpop.f32.mrb[29].mxu0  ;;  %v3485_v60 = vrot.slane %v3478_v48, 2 }
0x239d   :  { %v3486_v54 = vrot.slane %v3480_v53, 2 }
0x239e   :  { %v3489_v61 = vadd.f32 %v3485_v60, %v10640_v26 }
0x239f   :  { %v3490_v56 = vadd.f32 %v3486_v54, %v10642_v55 }
0x23a0   :  { %v7632_v62 = vmul.f32 -1.442695, %v3489_v61 }
0x23a1   :  { %9266 = vtanh.f32 %v3490_v56  ;;  %v7633_v9 = vmul.f32 -1.442695, %v3490_v56 }
0x23a2   :  { %9268 = vpow2.f32 %v7632_v62 }
0x23ab   :  { %v9267_v57 = vpop.eup %9266 }
0x23ac   :  { %3509 = vrot.lane.b32.xlu1 %v9267_v57, %s9768_s13  ;;  %v9269_v46 = vpop.eup %9268 }
0x23ad   :  { %v3497_v63 = vadd.f32 1.0, %v9269_v46 }
0x23af   :  { %9270 = vrcp.f32 %v3497_v63 }
0x23b9   :  { %v9271_v0 = vpop.eup %9270 }
0x23ba   :  { %v3507_v3 = vmul.f32 %v9271_v0, %v3505_v2 }
0x241e   :  { %v3510_v1 = vpop.permute.xlu1 %3509 }
0x241f   :  { %v3512_v24 = vmul.f32 %v9271_v0, %v3510_v1 }
0x2421   :  { %3514 = vrot.lane.b32.xlu0 %v3512_v24, %s9768_s13 }
0x2493   :  { %v3515_v55 = vpop.permute.xlu0 %3514 }
0x2494   :  { %v3517_v5 = vadd.f32 %v3515_v55, %v3507_v3 }
0x2496   :  { %9272 = vtanh.f32 %v3517_v5  ;;  %v3620_v37 = vrot.slane %v3517_v5, 6 }
0x2497   :  { %9274 = vpow2.f32 %v7633_v9 }
0x24a0   :  { %v9273_v6 = vpop.eup %9272 }
0x24a1   :  { %3520 = vrot.lane.b32.xlu1 %v9273_v6, %s9768_s13  ;;  %v9275_v26 = vpop.eup %9274 }
0x24a2   :  { %v3498_v10 = vadd.f32 1.0, %v9275_v26 }
0x24a4   :  { %9276 = vrcp.f32 %v3498_v10 }
0x24ae   :  { %v9277_v13 = vpop.eup %9276 }
0x2513   :  { %v3521_v14 = vpop.permute.xlu1 %3520 }
0x2514   :  { %v10713_v17 = vmul.f32 %v9277_v13, %v3521_v14 }
0x2516   :  { %3524 = vst.msk [vmem:[#allocation2] sm:$0xc0] %vm2255_vm5, %v10713_v17  ;;  %v3530_v59 = vrot.slane %v10713_v17, 6 }
0x2518   :  { %7634 = vmatmul.mubr.msk.f32.vlgmr.msra.gmra.mrb[24].mxu1 %vm1783_vm2, %v3530_v59 }
0x2519   :  { %8826 = vmatpush1.bf16.msra.mxu1 %v10542_v49  ;;  %3832 = vmatprep.mubr.f32.mxu1 %v9767_v11 }
0x251a   :  { %8828 = vmatprep.subr.bf16.mxu1 %v10546_v7 }
0x251d   :  { %8830 = vmatpush1.bf16.msra.mxu1 %v10548_v32 }
0x251e   :  { %8832 = vmatprep.subr.bf16.mxu1 %v10552_v36 }
0x2521   :  { %8834 = vmatpush1.bf16.msra.mxu1 %v10554_v43 }
0x2522   :  { %8836 = vmatprep.subr.bf16.mxu1 %v10558_v40 }
0x2525   :  { %8838 = vmatpush1.bf16.msra.mxu1 %v10560_v41 }
0x25eb   :  { %v3599_v20 = vpop.f32.mrb[24].mxu1 }
0x25ec   :  { %v3601_v58 = vpop.f32.mrb[25].mxu1  ;;  %v3604_v52 = vadd.f32 %v3599_v20, %v10645_v27 }
0x25ed   :  { %v3605_v22 = vadd.f32 %v3601_v58, %v10647_v15 }
0x25ee   :  { %v7635_v4 = vmul.f32 -1.442695, %v3604_v52 }
0x25ef   :  { %9278 = vtanh.f32 %v3605_v22  ;;  %v7636_v31 = vmul.f32 -1.442695, %v3605_v22 }
0x25f0   :  { %9280 = vpow2.f32 %v7635_v4 }
0x25f9   :  { %v9279_v23 = vpop.eup %9278 }
0x25fa   :  { %3624 = vrot.lane.b32.xlu0 %v9279_v23, %s9768_s13  ;;  %v9281_v8 = vpop.eup %9280 }
0x25fb   :  { %v3612_v12 = vadd.f32 1.0, %v9281_v8 }
0x25fd   :  { %9282 = vrcp.f32 %v3612_v12 }
0x2607   :  { %v9283_v28 = vpop.eup %9282 }
0x2608   :  { %v3622_v47 = vmul.f32 %v9283_v28, %v3620_v37 }
0x266c   :  { %v3625_v34 = vpop.permute.xlu0 %3624 }
0x266d   :  { %v3627_v35 = vmul.f32 %v9283_v28, %v3625_v34 }
0x266f   :  { %3629 = vrot.lane.b32.xlu1 %v3627_v35, %s9768_s13 }
0x26e1   :  { %v3630_v25 = vpop.permute.xlu1 %3629 }
0x26e2   :  { %v3632_v29 = vadd.f32 %v3630_v25, %v3622_v47 }
0x26e4   :  { %9284 = vtanh.f32 %v3632_v29  ;;  %v3740_v56 = vrot.slane %v3632_v29, 6 }
0x26e5   :  { %9286 = vpow2.f32 %v7636_v31 }
0x26ee   :  { %v9285_v30 = vpop.eup %9284 }
0x26ef   :  { %3635 = vrot.lane.b32.xlu0 %v9285_v30, %s9768_s13  ;;  %v9287_v16 = vpop.eup %9286 }
0x26f0   :  { %v3613_v19 = vadd.f32 1.0, %v9287_v16 }
0x26f2   :  { %9288 = vrcp.f32 %v3613_v19 }
0x26fc   :  { %v9289_v50 = vpop.eup %9288 }
0x2761   :  { %v3636_v33 = vpop.permute.xlu0 %3635 }
0x2762   :  { %v10732_v38 = vmul.f32 %v9289_v50, %v3636_v33 }
0x2764   :  { %3639 = vst.msk [vmem:[#allocation2 + $0x8] sm:$0x3] %vm1890_vm1, %v10732_v38  ;;  %7637 = vmatmul.mubr.msk.f32.vlgmr.msra.gmra.mrb[30].mxu0 %vm1783_vm2, %v10732_v38 }
0x2765   :  { %8842 = vmatpush1.bf16.msra.mxu0 %v10542_v49  ;;  %3953 = vmatprep.mubr.f32.mxu0 %v9767_v11 }
0x2766   :  { %8844 = vmatprep.subr.bf16.mxu0 %v10546_v7 }
0x2769   :  { %8846 = vmatpush1.bf16.msra.mxu0 %v10548_v32 }
0x276a   :  { %8848 = vmatprep.subr.bf16.mxu0 %v10552_v36 }
0x276d   :  { %8850 = vmatpush1.bf16.msra.mxu0 %v10554_v43 }
0x276e   :  { %8852 = vmatprep.subr.bf16.mxu0 %v10558_v40 }
0x2771   :  { %8854 = vmatpush1.bf16.msra.mxu0 %v10560_v41 }
0x2837   :  { %v3713_v39 = vpop.f32.mrb[30].mxu0 }
0x2838   :  { %v3715_v42 = vpop.f32.mrb[31].mxu0  ;;  %v3720_v7 = vrot.slane %v3713_v39, 6 }
0x2839   :  { %v3721_v45 = vrot.slane %v3715_v42, 6 }
0x283a   :  { %v3724_v32 = vadd.f32 %v3720_v7, %v10645_v27 }
0x283b   :  { %v3725_v48 = vadd.f32 %v3721_v45, %v10647_v15 }
0x283c   :  { %v7638_v53 = vmul.f32 -1.442695, %v3724_v32 }
0x283d   :  { %9290 = vtanh.f32 %v3725_v48  ;;  %v7639_v46 = vmul.f32 -1.442695, %v3725_v48 }
0x283e   :  { %9292 = vpow2.f32 %v7638_v53 }
0x2847   :  { %v9291_v49 = vpop.eup %9290 }
0x2848   :  { %3744 = vrot.lane.b32.xlu1 %v9291_v49, %s9768_s13  ;;  %v9293_v36 = vpop.eup %9292 }
0x2849   :  { %v3732_v43 = vadd.f32 1.0, %v9293_v36 }
0x284b   :  { %9294 = vrcp.f32 %v3732_v43 }
0x2855   :  { %v9295_v40 = vpop.eup %9294 }
0x2856   :  { %v3742_v57 = vmul.f32 %v9295_v40, %v3740_v56 }
0x28ba   :  { %v3745_v54 = vpop.permute.xlu1 %3744 }
0x28bb   :  { %v3747_v41 = vmul.f32 %v9295_v40, %v3745_v54 }
0x28bd   :  { %3749 = vrot.lane.b32.xlu0 %v3747_v41, %s9768_s13 }
0x292f   :  { %v3750_v60 = vpop.permute.xlu0 %3749 }
0x2930   :  { %v3752_v61 = vadd.f32 %v3750_v60, %v3742_v57 }
0x2932   :  { %9296 = vtanh.f32 %v3752_v61  ;;  %v3861_v52 = vrot.slane %v3752_v61, 6 }
0x2933   :  { %9298 = vpow2.f32 %v7639_v46  ;;  %v10784_v46 = vld [vmem:[#allocation5] sm:$0xff] }
0x293c   :  { %v9297_v62 = vpop.eup %9296 }
0x293d   :  { %3755 = vrot.lane.b32.xlu1 %v9297_v62, %s9768_s13  ;;  %v9299_v63 = vpop.eup %9298 }
0x293e   :  { %v3733_v0 = vadd.f32 1.0, %v9299_v63  ;;  %v4022_v63 = vld [vmem:[#allocation5 + $0x8] sm:$0xff] }
0x2940   :  { %9300 = vrcp.f32 %v3733_v0  ;;  %v10786_v0 = vld [vmem:[#allocation8] sm:$0xff] }
0x294a   :  { %v9301_v1 = vpop.eup %9300 }
0x29af   :  { %v3756_v24 = vpop.permute.xlu1 %3755 }
0x29b0   :  { %v10751_v2 = vmul.f32 %v9301_v1, %v3756_v24  ;;  %v10791_v1 = vpack.c.bf16 %v4022_v63, %v10784_v46  ;;  %v4023_v24 = vld [vmem:[#allocation5 + $0x10] sm:$0xff] }
0x29b1   :  { %v10872_v63 = vld [vmem:[#allocation13] sm:$0xff] }
0x29b2   :  { %3759 = vst.msk [vmem:[#allocation2 + $0x8] sm:$0xc] %vm2011_vm3, %v10751_v2  ;;  %v3765_v3 = vrot.slane %v10751_v2, 2  ;;  %8856 = vmatprep.subr.bf16.mxu1 %v10791_v1 }
0x29b4   :  { %7640 = vmatmul.mubr.msk.f32.vlgmr.msra.gmra.mrb[26].mxu1 %vm1783_vm2, %v3765_v3 }
0x29b5   :  { %8858 = vmatpush3.bf16.msra.mxu1 %v10791_v1 }
0x2a87   :  { %v3834_v55 = vpop.f32.mrb[26].mxu1 }
0x2a88   :  { %v3836_v5 = vpop.f32.mrb[27].mxu1  ;;  %v3841_v10 = vrot.slane %v3834_v55, 4 }
0x2a89   :  { %v3842_v6 = vrot.slane %v3836_v5, 4 }
0x2a8a   :  { %v3845_v13 = vadd.f32 %v3841_v10, %v10645_v27 }
0x2a8b   :  { %v3846_v9 = vadd.f32 %v3842_v6, %v10647_v15  ;;  %v4112_v6 = vld [vmem:[#allocation8 + $0x10] sm:$0xff] }
0x2a8c   :  { %v7641_v14 = vmul.f32 -1.442695, %v3845_v13  ;;  %v4026_v13 = vld [vmem:[#allocation5 + $0x28] sm:$0xff] }
0x2a8d   :  { %9302 = vtanh.f32 %v3846_v9  ;;  %v7642_v34 = vmul.f32 -1.442695, %v3846_v9  ;;  %v4113_v9 = vld [vmem:[#allocation8 + $0x18] sm:$0xff] }
0x2a8e   :  { %9304 = vpow2.f32 %v7641_v14  ;;  %v10800_v10 = vpack.c.bf16 %v4113_v9, %v4112_v6  ;;  %v4114_v14 = vld [vmem:[#allocation8 + $0x20] sm:$0xff] }
0x2a97   :  { %v9303_v26 = vpop.eup %9302 }
0x2a98   :  { %3865 = vrot.lane.b32.xlu0 %v9303_v26, %s9768_s13  ;;  %v9305_v59 = vpop.eup %9304  ;;  %v4025_v26 = vld [vmem:[#allocation5 + $0x20] sm:$0xff] }
0x2a99   :  { %v3853_v20 = vadd.f32 1.0, %v9305_v59  ;;  %v4115_v59 = vld [vmem:[#allocation8 + $0x28] sm:$0xff] }
0x2a9b   :  { %9306 = vrcp.f32 %v3853_v20  ;;  %v8863_v20 = vpack.c.bf16 %v4026_v13, %v4025_v26  ;;  %v4434_v26 = vld [vmem:[%s11187_s9 + $0x10] sm:$0xff]  ;;  %v4435_v13 = vld [vmem:[%s11187_s9 + $0x18] sm:$0xff] }
0x2aa5   :  { %v9307_v58 = vpop.eup %9306 }
0x2aa6   :  { %v3863_v4 = vmul.f32 %v9307_v58, %v3861_v52 }
0x2b0a   :  { %v3866_v22 = vpop.permute.xlu0 %3865 }
0x2b0b   :  { %v3868_v23 = vmul.f32 %v9307_v58, %v3866_v22  ;;  %v8879_v22 = vpack.c.bf16 %v4115_v59, %v4114_v14  ;;  %v8915_v14 = vpack.c.bf16 %v4435_v13, %v4434_v26  ;;  %v4436_v59 = vld [vmem:[%s11187_s9 + $0x20] sm:$0xff] }
0x2b0d   :  { %3870 = vrot.lane.b32.xlu1 %v3868_v23, %s9768_s13  ;;  %v4028_v23 = vld [vmem:[#allocation5 + $0x38] sm:$0xff] }
0x2b7f   :  { %v3871_v8 = vpop.permute.xlu1 %3870 }
0x2b80   :  { %v3873_v12 = vadd.f32 %v3871_v8, %v3863_v4  ;;  %v4116_v4 = vld [vmem:[#allocation8 + $0x30] sm:$0xff]  ;;  %v4117_v8 = vld [vmem:[#allocation8 + $0x38] sm:$0xff] }
0x2b82   :  { %9308 = vtanh.f32 %v3873_v12 }
0x2b83   :  { %9310 = vpow2.f32 %v7642_v34  ;;  %v4194_v34 = vld [vmem:[#allocation10 + $0x8] sm:$0xff] }
0x2b8c   :  { %v9309_v28 = vpop.eup %9308 }
0x2b8d   :  { %3876 = vrot.lane.b32.xlu0 %v9309_v28, %s9768_s13  ;;  %v9311_v35 = vpop.eup %9310  ;;  %v10812_v28 = vld [vmem:[#allocation10] sm:$0xff] }
0x2b8e   :  { %v3854_v37 = vadd.f32 1.0, %v9311_v35  ;;  %v10815_v35 = vpack.c.bf16 %v4194_v34, %v10812_v28 }
0x2b90   :  { %9312 = vrcp.f32 %v3854_v37 }
0x2b9a   :  { %v9313_v47 = vpop.eup %9312 }
0x2bff   :  { %v3877_v25 = vpop.permute.xlu0 %3876 }
0x2c00   :  { %v3879_v29 = vmul.f32 %v9313_v47, %v3877_v25 }
0x2c02   :  { %3880 = vst.msk [vmem:[#allocation2 + $0x8] sm:$0x30] %vm2133_vm4, %v3879_v29  ;;  %v3886_v30 = vrot.slane %v3879_v29, 4 }
0x2c04   :  { %7643 = vmatmul.mubr.msk.f32.vlgmr.msra.gmra.mrb[32].mxu0 %vm1783_vm2, %v3886_v30  ;;  %v4007_v30 = vld [vmem:[#allocation2] sm:$0xff] }
0x2cd7   :  { %v3955_v31 = vpop.f32.mrb[32].mxu0 }
0x2cd8   :  { %v3957_v16 = vpop.f32.mrb[33].mxu0  ;;  %v3962_v39 = vrot.slane %v3955_v31, 2 }
0x2cd9   :  { %v3963_v19 = vrot.slane %v3957_v16, 2 }
0x2cda   :  { %v3966_v42 = vadd.f32 %v3962_v39, %v10645_v27  ;;  %v3982_v27 = vrot.slane %v3873_v12, 6  ;;  %v8883_v12 = vpack.c.bf16 %v4117_v8, %v4116_v4 }
0x2cdb   :  { %v3967_v50 = vadd.f32 %v3963_v19, %v10647_v15  ;;  %v4195_v19 = vld [vmem:[#allocation10 + $0x10] sm:$0xff] }
0x2cdc   :  { %v7644_v45 = vmul.f32 -1.442695, %v3966_v42 }
0x2cdd   :  { %9314 = vtanh.f32 %v3967_v50 }
0x2cde   :  { %9316 = vpow2.f32 %v7644_v45 }
0x2ce7   :  { %v9315_v33 = vpop.eup %9314 }
0x2ce8   :  { %3986 = vrot.lane.b32.xlu1 %v9315_v33, %s9768_s13  ;;  %v9317_v48 = vpop.eup %9316 }
0x2ce9   :  { %v3974_v49 = vadd.f32 1.0, %v9317_v48  ;;  %v4197_v48 = vld [vmem:[#allocation10 + $0x20] sm:$0xff] }
0x2ceb   :  { %9318 = vrcp.f32 %v3974_v49  ;;  %v4198_v49 = vld [vmem:[#allocation10 + $0x28] sm:$0xff] }
0x2cf5   :  { %v9319_v7 = vpop.eup %9318 }
0x2cf6   :  { %v3984_v15 = vmul.f32 %v9319_v7, %v3982_v27  ;;  %v4200_v27 = vld [vmem:[#allocation10 + $0x38] sm:$0xff] }
0x2d5a   :  { %v3987_v32 = vpop.permute.xlu1 %3986 }
0x2d5b   :  { %v3989_v53 = vmul.f32 %v9319_v7, %v3987_v32  ;;  %v8895_v7 = vpack.c.bf16 %v4198_v49, %v4197_v48  ;;  %v10833_v32 = vld [vmem:[#allocation11] sm:$0xff] }
0x2d5d   :  { %3991 = vrot.lane.b32.xlu0 %v3989_v53, %s9768_s13  ;;  %v4199_v53 = vld [vmem:[#allocation10 + $0x30] sm:$0xff] }
0x2d61   :  { %3641 = vrot.lane.b32.xlu0 %v10732_v38, %s9769_s19 }
0x2d65   :  { %3882 = vrot.lane.b32.xlu0 %v3879_v29, %s9769_s19 }
0x2d69   :  { %3164 = vrot.lane.b32.xlu0 %v10653_v44, %s9769_s19 }
0x2d6d   :  { %3405 = vrot.lane.b32.xlu0 %v10693_v51, %s9769_s19  ;;  %v7645_v51 = vmul.f32 -1.442695, %v3967_v50  ;;  %v4196_v50 = vld [vmem:[#allocation10 + $0x18] sm:$0xff] }
0x2d6e   :  { %v10825_v42 = vpack.c.bf16 %v4196_v50, %v4195_v19 }
0x2dcf   :  { %v3992_v36 = vpop.permute.xlu0 %3991 }
0x2dd0   :  { %v3994_v43 = vadd.f32 %v3992_v36, %v3984_v15  ;;  %v8899_v15 = vpack.c.bf16 %v4200_v27, %v4199_v53 }
0x2dd2   :  { %9320 = vtanh.f32 %v3994_v43 }
0x2dd3   :  { %v3642_v40 = vpop.permute.xlu0 %3641  ;;  %9322 = vpow2.f32 %v7645_v51 }
0x2dd4   :  { %3644 = vst.msk [vmem:[#allocation3 + $0x6] sm:$0x3] %vm1890_vm1, %v3642_v40 }
0x2dd7   :  { %v3883_v54 = vpop.permute.xlu0 %3882 }
0x2dd8   :  { %3885 = vst.msk [vmem:[#allocation3 - $0x2] sm:$0x30] %vm2133_vm4, %v3883_v54 }
0x2ddb   :  { %v3165_v38 = vpop.permute.xlu0 %3164 }
0x2ddc   :  { %v9321_v41 = vpop.eup %9320  ;;  %3167 = vst.msk [vmem:[#allocation3 + $0xe] sm:$0x3] %vm1890_vm1, %v3165_v38 }
0x2ddd   :  { %3997 = vrot.lane.b32.xlu1 %v9321_v41, %s9768_s13  ;;  %v9323_v56 = vpop.eup %9322 }
0x2dde   :  { %v3975_v57 = vadd.f32 1.0, %v9323_v56 }
0x2ddf   :  { %v3406_v44 = vpop.permute.xlu0 %3405 }
0x2de0   :  { %3408 = vst.msk [vmem:[#allocation3 + $0x6] sm:$0x30] %vm2133_vm4, %v3406_v44  ;;  %9324 = vrcp.f32 %v3975_v57 }
0x2de1   :  { %3761 = vrot.lane.b32.xlu1 %v10751_v2, %s9769_s19  ;;  %v4024_v2 = vld [vmem:[#allocation5 + $0x18] sm:$0xff] }
0x2de2   :  { %v10796_v5 = vpack.c.bf16 %v4024_v2, %v4023_v24  ;;  %v4433_v24 = vld [vmem:[%s11187_s9 + $0x8] sm:$0xff] }
0x2de4   :  { %8860 = vmatprep.subr.bf16.mxu1 %v10796_v5 }
0x2de5   :  { %3284 = vrot.lane.b32.xlu1 %v10673_v18, %s9769_s19  ;;  %v4111_v18 = vld [vmem:[#allocation8 + $0x8] sm:$0xff]  ;;  %8862 = vmatpush3.bf16.msra.mxu1 %v10796_v5 }
0x2de6   :  { %v10794_v55 = vpack.c.bf16 %v4111_v18, %v10786_v0  ;;  %8864 = vmatprep.subr.bf16.mxu1 %v8863_v20  ;;  %v10879_v18 = vld [vmem:[%s11187_s9] sm:$0xff] }
0x2de7   :  { %v10885_v9 = vpack.c.bf16 %v4433_v24, %v10879_v18 }
0x2de8   :  { %8872 = vmatprep.subr.bf16.mxu0 %v10794_v55 }
0x2de9   :  { %8874 = vmatpush3.bf16.msra.mxu0 %v10794_v55  ;;  %8866 = vmatpush3.bf16.msra.mxu1 %v8863_v20  ;;  %v4437_v20 = vld [vmem:[%s11187_s9 + $0x28] sm:$0xff] }
0x2dea   :  { %v9325_v60 = vpop.eup %9324  ;;  %8876 = vmatprep.subr.bf16.mxu0 %v10800_v10 }
0x2ded   :  { %8878 = vmatpush3.bf16.msra.mxu0 %v10800_v10 }
0x2dee   :  { %8880 = vmatprep.subr.bf16.mxu0 %v8879_v22 }
0x2df1   :  { %8882 = vmatpush3.bf16.msra.mxu0 %v8879_v22  ;;  %v8919_v22 = vpack.c.bf16 %v4437_v20, %v4436_v59 }
0x2df2   :  { %8884 = vmatprep.subr.bf16.mxu0 %v8883_v12 }
0x2df5   :  { %8886 = vmatpush3.bf16.msra.mxu0 %v8883_v12 }
0x2e4f   :  { %v3998_v61 = vpop.permute.xlu1 %3997 }
0x2e50   :  { %v4000_v62 = vmul.f32 %v9325_v60, %v3998_v61 }
0x2e52   :  { %4001 = vst.msk [vmem:[#allocation2 + $0x8] sm:$0xc0] %vm2255_vm5, %v4000_v62  ;;  %4003 = vrot.lane.b32.xlu1 %v4000_v62, %s9769_s19  ;;  %v10868_v62 = vld [vmem:[#allocation11 + $0x8] sm:$0xff] }
0x2e53   :  { %v3762_v3 = vpop.permute.xlu1 %3761 }
0x2e54   :  { %3764 = vst.msk [vmem:[#allocation3 + $0x2] sm:$0xc] %vm2011_vm3, %v3762_v3 }
0x2e56   :  { %3526 = vrot.lane.b32.xlu1 %v10713_v17, %s9769_s19  ;;  %v4027_v17 = vld [vmem:[#allocation5 + $0x30] sm:$0xff]  ;;  %s11186_s19 = sld [smem:[#allocation52_spill]] }
0x2e57   :  { %v3285_v58 = vpop.permute.xlu1 %3284  ;;  %v8867_v52 = vpack.c.bf16 %v4028_v23, %v4027_v17  ;;  %v4438_v17 = vld [vmem:[%s11187_s9 + $0x30] sm:$0xff]  ;;  %v4439_v23 = vld [vmem:[%s11187_s9 + $0x38] sm:$0xff] }
0x2e58   :  { %3287 = vst.msk [vmem:[#allocation3 + $0xa] sm:$0xc] %vm2011_vm3, %v3285_v58  ;;  %v10900_v58 = vld [vmem:[#allocation13 + $0x8] sm:$0xff]  ;;  %v8923_v4 = vpack.c.bf16 %v4439_v23, %v4438_v17 }
0x2e59   :  { %8868 = vmatprep.subr.bf16.mxu1 %v8867_v52  ;;  %v4008_v39 = vld [vmem:[#allocation2 + $0x8] sm:$0xff] }
0x2e5a   :  { %8870 = vmatpush3.bf16.msra.mxu1 %v8867_v52 }
0x2e5b   :  { %8888 = vmatprep.subr.bf16.mxu1 %v10815_v35 }
0x2e5c   :  { %v10842_v36 = vld [vmem:[%s11186_s19] sm:$0xff]  ;;  %v4522_v43 = vld [vmem:[%s11186_s19 + $0x8] sm:$0xff]  ;;  %v4523_v54 = vld [vmem:[%s11186_s19 + $0x10] sm:$0xff] }
0x2e5d   :  { %v10848_v40 = vpack.c.bf16 %v4522_v43, %v10842_v36  ;;  %v4524_v38 = vld [vmem:[%s11186_s19 + $0x18] sm:$0xff]  ;;  %v4525_v44 = vld [vmem:[%s11186_s19 + $0x20] sm:$0xff]  ;;  %v4526_v51 = vld [vmem:[%s11186_s19 + $0x28] sm:$0xff] }
0x2e5e   :  { %v10856_v41 = vpack.c.bf16 %v4524_v38, %v4523_v54  ;;  %v8935_v56 = vpack.c.bf16 %v4526_v51, %v4525_v44  ;;  %v4527_v52 = vld [vmem:[%s11186_s19 + $0x30] sm:$0xff]  ;;  %v4528_v8 = vld [vmem:[%s11186_s19 + $0x38] sm:$0xff] }
0x2e5f   :  { %v8939_v12 = vpack.c.bf16 %v4528_v8, %v4527_v52 }
0x2ec4   :  { %v4004_v37 = vpop.permute.xlu1 %4003 }
0x2ec5   :  { %4006 = vst.msk [vmem:[#allocation3 - $0x6] sm:$0xc0] %vm2255_vm5, %v4004_v37 }
0x2ec8   :  { %v3527_v47 = vpop.permute.xlu1 %3526 }
0x2ec9   :  { %3529 = vst.msk [vmem:[#allocation3 + $0x2] sm:$0xc0] %vm2255_vm5, %v3527_v47 }
0x2ecc   :  { %v4009_v25 = vld [vmem:[#allocation3] sm:$0xff] }
0x2ecd   :  { %4013 = vrot.lane.b32.xlu0 %v4009_v25, %s9770_s2 }
0x2ed0   :  { %v4010_v29 = vld [vmem:[#allocation3 + $0x8] sm:$0xff] }
0x2ed1   :  { %4015 = vrot.lane.b32.xlu1 %v4010_v29, %s9770_s2  ;;  %s9775_s2 = smov [#allocation32]  }
0x2ed2   :  { %s7541_s1 = sshll.u32 %s9775_s2, 4  ;;  %s7542_s1 = int_to_ptr.vmem [resolvable:$true] %s7541_s1 }
0x2ed3   :  { %s9704_s27 = scalar_lea.vmem %s7542_s1, 32  ;;  %p9709_p11 = scmp.lt.s32.totalorder %s7542_s1, %s7542_s1 }
0x2ed4   :  { %p9705_p10 = scmp.ne.s32.totalorder %s7542_s1, %s9704_s27  ;;  %p9710_p12 = scmp.lt.s32.totalorder %s9704_s27, %s9704_s27 }
0x2ed6   :  { %p9711_p13 = por %p9710_p12, %p9709_p11 }
0x2ed8   :  { %p9712_p0 = pnand %p9711_p13, %p9705_p10 }
0x2f3f   :  { %v4014_v31 = vpop.permute.xlu0 %4013 }
0x2f40   :  { %v4019_v16 = vsel %vm2751_vm6, %v4007_v30, %v4014_v31 }
0x2f41   :  { %8144 = vmatprep.mubr.msk.f32.mxu1 %vm1783_vm2, %v4019_v16  ;;  %8163 = vmatprep.mubr.msk.f32.mxu0 %vm1783_vm2, %v4019_v16 }
0x2f43   :  { %v4016_v33 = vpop.permute.xlu1 %4015 }
0x2f44   :  { %v4020_v45 = vsel %vm2751_vm6, %v4008_v39, %v4016_v33 }
0x2f45   :  { %8145 = vmatmul.mubr.msk.f32.vlgmr.msra.gmra.mrb[28].mxu1 %vm1783_vm2, %v4020_v45  ;;  %8164 = vmatmul.mubr.msk.f32.vlgmr.msra.gmra.mrb[34].mxu0 %vm1783_vm2, %v4020_v45 }
0x2f46   :  { %8890 = vmatpush3.bf16.msra.mxu1 %v10815_v35  ;;  %8182 = vmatprep.mubr.msk.f32.mxu1 %vm1783_vm2, %v4019_v16 }
0x2f47   :  { %8892 = vmatprep.subr.bf16.mxu1 %v10825_v42  ;;  %8189 = vmatprep.mubr.msk.f32.mxu0 %vm315_vm0, %v10833_v32 }
0x2f4a   :  { %8894 = vmatpush3.bf16.msra.mxu1 %v10825_v42 }
0x2f4b   :  { %8896 = vmatprep.subr.bf16.mxu1 %v8895_v7 }
0x2f4e   :  { %8898 = vmatpush3.bf16.msra.mxu1 %v8895_v7 }
0x2f4f   :  { %8900 = vmatprep.subr.bf16.mxu1 %v8899_v15 }
0x2f52   :  { %8902 = vmatpush3.bf16.msra.mxu1 %v8899_v15 }
0x2f53   :  { %8928 = vmatprep.subr.bf16.mxu1 %v10848_v40 }
0x2f55   :  { %8183 = vmatmul.mubr.msk.f32.vlgmr.msra.gmra.mrb[30].mxu1 %vm1783_vm2, %v4020_v45 }
0x2f56   :  { %8930 = vmatpush3.bf16.msra.mxu1 %v10848_v40 }
0x2f57   :  { %8932 = vmatprep.subr.bf16.mxu1 %v10856_v41 }
0x2f5a   :  { %8934 = vmatpush3.bf16.msra.mxu1 %v10856_v41 }
0x2f5b   :  { %8936 = vmatprep.subr.bf16.mxu1 %v8935_v56 }
0x2f5e   :  { %8938 = vmatpush3.bf16.msra.mxu1 %v8935_v56 }
0x2f5f   :  { %8940 = vmatprep.subr.bf16.mxu1 %v8939_v12 }
0x2f62   :  { %8942 = vmatpush3.bf16.msra.mxu1 %v8939_v12 }
0x2f63   :  { %8952 = vmatprep.subr.bf16.mxu1 %v10794_v55 }
0x3018   :  { %v8146_v57 = vpop.f32.mrb[28].mxu1 }
0x3019   :  { %v4101_v60 = vpop.f32.mrb[29].mxu1 }
0x301a   :  { %v8903_v61 = vpack.c.bf16 %v8146_v57, %v4101_v60 }
0x301c   :  { %8904 = vmatprep.subr.bf16.mxu0 %v8903_v61 }
0x301d   :  { %8906 = vmatpush3.bf16.msra.mxu0 %v8903_v61 }
0x3020   :  { %8190 = vmatmul.mubr.msk.f32.vlgmr.msra.gmra.mrb[34].mxu0 %vm315_vm0, %v10868_v62 }
0x3021   :  { %8196 = vmatprep.mubr.msk.f32.mxu0 %vm315_vm0, %v10872_v63 }
0x3028   :  { %v8184_v2 = vpop.f32.mrb[30].mxu1 }
0x3029   :  { %v4267_v3 = vpop.f32.mrb[31].mxu1 }
0x302a   :  { %v8907_v6 = vpack.c.bf16 %v8184_v2, %v4267_v3 }
0x302c   :  { %8908 = vmatprep.subr.bf16.mxu0 %v8907_v6 }
0x302d   :  { %8910 = vmatpush3.bf16.msra.mxu0 %v8907_v6 }
0x302e   :  { %8912 = vmatprep.subr.bf16.mxu0 %v10885_v9 }
0x3030   :  { %8197 = vmatmul.mubr.msk.f32.vlgmr.msra.gmra.mrb[34].mxu0 %vm315_vm0, %v10900_v58 }
0x3031   :  { %8914 = vmatpush3.bf16.msra.mxu0 %v10885_v9 }
0x3032   :  { %8916 = vmatprep.subr.bf16.mxu0 %v8915_v14 }
0x3035   :  { %8918 = vmatpush3.bf16.msra.mxu0 %v8915_v14 }
0x3036   :  { %8920 = vmatprep.subr.bf16.mxu0 %v8919_v22 }
0x3039   :  { %8922 = vmatpush3.bf16.msra.mxu0 %v8919_v22 }
0x303a   :  { %8924 = vmatprep.subr.bf16.mxu0 %v8923_v4 }
0x303d   :  { %8926 = vmatpush3.bf16.msra.mxu0 %v8923_v4 }
0x303e   :  { %8944 = vmatprep.subr.bf16.mxu0 %v10791_v1 }
0x3103   :  { %v8198_v34 = vpop.f32.mrb[34].mxu0 }
0x3104   :  { %v4429_v37 = vadd.f32 %v8198_v34, %v10199_v21  ;;  %v4417_v47 = vpop.f32.mrb[35].mxu0 }
0x3105   :  { %v4428_v25 = vadd.f32 %v4417_v47, %v10199_v21 }
0x3106   :  { %v4431_v30 = vmax.f32 %v4429_v37, 0.0 }
0x3107   :  { %v4430_v29 = vmax.f32 %v4428_v25, 0.0  ;;  %v6277_v25 = vld [vmem:[#allocation5] sm:$0xf] }
0x3109   :  { %8215 = vmatprep.mubr.msk.f32.mxu0 %vm1783_vm2, %v4430_v29  ;;  %8234 = vmatprep.mubr.msk.f32.mxu1 %vm1783_vm2, %v4430_v29  ;;  %v6364_v29 = vld [vmem:[#allocation8] sm:$0xf] }
0x310a   :  { %8216 = vmatmul.mubr.msk.f32.vlgmr.msra.gmra.mrb[36].mxu0 %vm1783_vm2, %v4431_v30  ;;  %8235 = vmatmul.mubr.msk.f32.vlgmr.msra.gmra.mrb[32].mxu1 %vm1783_vm2, %v4431_v30  ;;  %v6443_v30 = vld [vmem:[#allocation10] sm:$0xf] }
0x310b   :  { %8946 = vmatpush3.bf16.msra.mxu0 %v10791_v1  ;;  %8954 = vmatpush3.bf16.msra.mxu1 %v10794_v55 }
0x310c   :  { %8948 = vmatprep.subr.bf16.mxu0 %v10796_v5  ;;  %8956 = vmatprep.subr.bf16.mxu1 %v10800_v10 }
0x310f   :  { %8950 = vmatpush3.bf16.msra.mxu0 %v10796_v5  ;;  %8958 = vmatpush3.bf16.msra.mxu1 %v10800_v10 }
0x3110   :  { %8960 = vmatprep.subr.bf16.mxu0 %v10815_v35 }
0x31dd   :  { %v8217_v31 = vpop.f32.mrb[36].mxu0  ;;  %v8236_v16 = vpop.f32.mrb[32].mxu1 }
0x31de   :  { %v4605_v19 = vmax.f32 %v8217_v31, %v8236_v16  ;;  %v4512_v50 = vpop.f32.mrb[37].mxu0  ;;  %v4595_v33 = vpop.f32.mrb[33].mxu1 }
0x31df   :  { %v4604_v39 = vmax.f32 %v4512_v50, %v4595_v33 }
0x31e1   :  { %8245 = vmatprep.mubr.msk.f32.mxu0 %vm2751_vm6, %v4604_v39  ;;  %8256 = vmatprep.mubr.msk.f32.mxu1 %vm2751_vm6, %v4604_v39 }
0x31e2   :  { %8246 = vmatmul.mubr.msk.f32.vlgmr.msra.gmra.mrb[38].mxu0 %vm2751_vm6, %v4605_v19  ;;  %8257 = vmatmul.mubr.msk.f32.vlgmr.msra.gmra.mrb[34].mxu1 %vm2751_vm6, %v4605_v19 }
0x31e3   :  { %8962 = vmatpush3.bf16.msra.mxu0 %v10815_v35  ;;  %8267 = vmatprep.mubr.msk.f32.mxu0 %vm2751_vm6, %v4604_v39 }
0x31e4   :  { %8964 = vmatprep.subr.bf16.mxu0 %v10825_v42  ;;  %8274 = vmatprep.mubr.msk.f32.mxu1 %vm315_vm0, %v10833_v32 }
0x31e7   :  { %8966 = vmatpush3.bf16.msra.mxu0 %v10825_v42 }
0x31e8   :  { %8976 = vmatprep.subr.bf16.mxu0 %v10885_v9 }
0x31ea   :  { %8268 = vmatmul.mubr.msk.f32.vlgmr.msra.gmra.mrb[40].mxu0 %vm2751_vm6, %v4605_v19 }
0x31eb   :  { %8978 = vmatpush3.bf16.msra.mxu0 %v10885_v9 }
0x31ec   :  { %8980 = vmatprep.subr.bf16.mxu0 %v8915_v14 }
0x31ef   :  { %8982 = vmatpush3.bf16.msra.mxu0 %v8915_v14 }
0x31f0   :  { %8992 = vmatprep.subr.bf16.mxu0 %v10791_v1 }
0x32b5   :  { %v8247_v5 = vpop.f32.mrb[38].mxu0 }
0x32b6   :  { %v4682_v10 = vpop.f32.mrb[39].mxu0 }
0x32b7   :  { %v8967_v45 = vpack.c.bf16 %v8247_v5, %v4682_v10 }
0x32b9   :  { %8968 = vmatprep.subr.bf16.mxu1 %v8967_v45 }
0x32ba   :  { %8970 = vmatpush3.bf16.msra.mxu1 %v8967_v45 }
0x32bd   :  { %v8269_v48 = vpop.f32.mrb[40].mxu0  ;;  %8275 = vmatmul.mubr.msk.f32.vlgmr.msra.gmra.mrb[34].mxu1 %vm315_vm0, %v10868_v62 }
0x32be   :  { %v4840_v42 = vpop.f32.mrb[41].mxu0  ;;  %8281 = vmatprep.mubr.msk.f32.mxu1 %vm315_vm0, %v10872_v63 }
0x32bf   :  { %v8971_v49 = vpack.c.bf16 %v8269_v48, %v4840_v42 }
0x32c1   :  { %8972 = vmatprep.subr.bf16.mxu1 %v8971_v49 }
0x32c2   :  { %8974 = vmatpush3.bf16.msra.mxu1 %v8971_v49  ;;  %v6678_v49 = vld [vmem:[%s11187_s9] sm:$0xf] }
0x32c3   :  { %8984 = vmatprep.subr.bf16.mxu1 %v10848_v40 }
0x32c5   :  { %8282 = vmatmul.mubr.msk.f32.vlgmr.msra.gmra.mrb[34].mxu1 %vm315_vm0, %v10900_v58 }
0x32c6   :  { %8986 = vmatpush3.bf16.msra.mxu1 %v10848_v40 }
0x32c7   :  { %8988 = vmatprep.subr.bf16.mxu1 %v10856_v41 }
0x32ca   :  { %8990 = vmatpush3.bf16.msra.mxu1 %v10856_v41 }
0x32cb   :  { %8996 = vmatprep.subr.bf16.mxu1 %v10794_v55 }
0x3398   :  { %v8283_v7 = vpop.f32.mrb[34].mxu1 }
0x3399   :  { %v5002_v53 = vadd.f32 %v8283_v7, %v10199_v21  ;;  %v4990_v27 = vpop.f32.mrb[35].mxu1  ;;  %v6763_v7 = vld [vmem:[%s11186_s19] sm:$0xf]  ;;  %s9772_s19 = smov 127  }
0x339a   :  { %v5001_v15 = vadd.f32 %v4990_v27, %v10199_v21 }
0x339b   :  { %v5004_v54 = vmax.f32 %v5002_v53, 0.0 }
0x339c   :  { %v5003_v43 = vmax.f32 %v5001_v15, 0.0 }
0x339e   :  { %8292 = vmatprep.mubr.msk.f32.mxu0 %vm2751_vm6, %v5003_v43  ;;  %8303 = vmatprep.mubr.msk.f32.mxu1 %vm2751_vm6, %v5003_v43 }
0x339f   :  { %8293 = vmatmul.mubr.msk.f32.vlgmr.msra.gmra.mrb[42].mxu0 %vm2751_vm6, %v5004_v54  ;;  %8304 = vmatmul.mubr.msk.f32.vlgmr.msra.gmra.mrb[36].mxu1 %vm2751_vm6, %v5004_v54 }
0x33a0   :  { %8994 = vmatpush3.bf16.msra.mxu0 %v10791_v1  ;;  %8998 = vmatpush3.bf16.msra.mxu1 %v10794_v55 }
0x33a1   :  { %9000 = vmatprep.subr.bf16.mxu0 %v10815_v35 }
0x3472   :  { %v8294_v38 = vpop.f32.mrb[42].mxu0  ;;  %v8305_v41 = vpop.f32.mrb[36].mxu1 }
0x3473   :  { %v5170_v44 = vmax.f32 %v8294_v38, %v8305_v41  ;;  %v5081_v51 = vpop.f32.mrb[43].mxu0  ;;  %v5160_v56 = vpop.f32.mrb[37].mxu1  ;;  %v6844_v41 = vld [vmem:[#allocation5] sm:$0x3] }
0x3474   :  { %v5169_v57 = vmax.f32 %v5081_v51, %v5160_v56  ;;  %v7010_v51 = vld [vmem:[#allocation10] sm:$0x3] }
0x3476   :  { %8310 = vmatprep.mubr.msk.f32.mxu0 %vm315_vm0, %v5169_v57  ;;  %8317 = vmatprep.mubr.msk.f32.mxu1 %vm315_vm0, %v5169_v57 }
0x3477   :  { %8311 = vmatmul.mubr.msk.f32.vlgmr.msra.gmra.mrb[44].mxu0 %vm315_vm0, %v5170_v44  ;;  %8318 = vmatmul.mubr.msk.f32.vlgmr.msra.gmra.mrb[38].mxu1 %vm315_vm0, %v5170_v44 }
0x3478   :  { %9002 = vmatpush3.bf16.msra.mxu0 %v10815_v35  ;;  %8324 = vmatprep.mubr.msk.f32.mxu0 %vm315_vm0, %v5169_v57 }
0x3479   :  { %8331 = vmatprep.mubr.msk.f32.mxu1 %vm315_vm0, %v10833_v32  ;;  %9012 = vmatprep.subr.bf16.mxu0 %v10885_v9 }
0x347b   :  { %8325 = vmatmul.mubr.msk.f32.vlgmr.msra.gmra.mrb[46].mxu0 %vm315_vm0, %v5170_v44  ;;  %v6931_v44 = vld [vmem:[#allocation8] sm:$0x3] }
0x347c   :  { %9014 = vmatpush3.bf16.msra.mxu0 %v10885_v9 }
0x347d   :  { %9016 = vmatprep.subr.bf16.mxu0 %v10848_v40 }
0x354a   :  { %v8312_v1 = vpop.f32.mrb[44].mxu0 }
0x354b   :  { %v5245_v55 = vpop.f32.mrb[45].mxu0 }
0x354c   :  { %v9003_v60 = vpack.c.bf16 %v8312_v1, %v5245_v55 }
0x354e   :  { %v8326_v61 = vpop.f32.mrb[46].mxu0  ;;  %9004 = vmatprep.subr.bf16.mxu1 %v9003_v60 }
0x354f   :  { %v5399_v24 = vpop.f32.mrb[47].mxu0  ;;  %9006 = vmatpush3.bf16.msra.mxu1 %v9003_v60 }
0x3550   :  { %v9007_v35 = vpack.c.bf16 %v8326_v61, %v5399_v24 }
0x3552   :  { %8332 = vmatmul.mubr.msk.f32.vlgmr.msra.gmra.mrb[38].mxu1 %vm315_vm0, %v10868_v62  ;;  %9008 = vmatprep.subr.bf16.mxu1 %v9007_v35 }
0x3553   :  { %9010 = vmatpush3.bf16.msra.mxu1 %v9007_v35  ;;  %8338 = vmatprep.mubr.msk.f32.mxu1 %vm315_vm0, %v10872_v63 }
0x3554   :  { %8355 = vmatprep.subr.mxu1 %v10784_v46 }
0x355a   :  { %8339 = vmatmul.mubr.msk.f32.vlgmr.msra.gmra.mrb[38].mxu1 %vm315_vm0, %v10900_v58 }
0x355b   :  { %8356 = vmatpush3.msra.mxu1 %v10784_v46 }
0x355c   :  { %8365 = vmatprep.subr.mxu1 %v10812_v28 }
0x362d   :  { %v8340_v2 = vpop.f32.mrb[38].mxu1 }
0x362e   :  { %v5561_v3 = vadd.f32 %v8340_v2, %v10199_v21  ;;  %v5549_v6 = vpop.f32.mrb[39].mxu1 }
0x362f   :  { %v5560_v9 = vadd.f32 %v5549_v6, %v10199_v21 }
0x3630   :  { %v5563_v13 = vmax.f32 %v5561_v3, 0.0 }
0x3631   :  { %v5562_v26 = vmax.f32 %v5560_v9, 0.0 }
0x3633   :  { %8345 = vmatprep.mubr.msk.f32.mxu0 %vm315_vm0, %v5562_v26 }
0x3634   :  { %8346 = vmatmul.mubr.msk.f32.vlgmr.msra.gmra.mrb[48].mxu0 %vm315_vm0, %v5563_v13 }
0x3635   :  { %9018 = vmatpush3.bf16.msra.mxu0 %v10848_v40  ;;  %8352 = vmatprep.mubr.msk.f32.mxu0 %vm315_vm0, %v5562_v26 }
0x3636   :  { %8360 = vmatprep.subr.mxu0 %v10786_v0 }
0x3638   :  { %8353 = vmatmul.mubr.msk.f32.vlgmr.msra.gmra.mrb[50].mxu0 %vm315_vm0, %v5563_v13 }
0x3639   :  { %8361 = vmatpush3.msra.mxu0 %v10786_v0 }
0x3707   :  { %v8347_v46 = vpop.f32.mrb[48].mxu0 }
0x3708   :  { %v5638_v14 = vpop.f32.mrb[49].mxu0 }
0x370b   :  { %v8354_v59 = vpop.f32.mrb[50].mxu0 }
0x370c   :  { %v5725_v20 = vmax.f32 %v8347_v46, %v8354_v59  ;;  %v5715_v22 = vpop.f32.mrb[51].mxu0 }
0x370d   :  { %v5724_v17 = vmax.f32 %v5638_v14, %v5715_v22 }
0x370f   :  { %8357 = vmatprep.mubr.msk.f32.mxu1 %vm5727_vm7, %v5724_v17  ;;  %8362 = vmatprep.mubr.msk.f32.mxu0 %vm5727_vm7, %v5724_v17 }
0x3710   :  { %8358 = vmatmul.mubr.msk.f32.vlgmr.msra.gmra.mrb[40].mxu1 %vm5727_vm7, %v5725_v20  ;;  %8363 = vmatmul.mubr.msk.f32.vlgmr.msra.gmra.mrb[52].mxu0 %vm5727_vm7, %v5725_v20 }
0x3711   :  { %8367 = vmatprep.mubr.msk.f32.mxu1 %vm5727_vm7, %v5724_v17  ;;  %8366 = vmatpush3.msra.mxu1 %v10812_v28 }
0x3712   :  { %8374 = vmatprep.mubr.msk.f32.mxu0 %vm315_vm0, %v10833_v32  ;;  %8384 = vmatprep.subr.mxu1 %v10879_v18 }
0x3714   :  { %8368 = vmatmul.mubr.msk.f32.vlgmr.msra.gmra.mrb[42].mxu1 %vm5727_vm7, %v5725_v20 }
0x3715   :  { %8385 = vmatpush3.msra.mxu1 %v10879_v18 }
0x3716   :  { %8389 = vmatprep.subr.mxu1 %v10842_v36 }
0x37e3   :  { %v8359_v0 = vpop.f32.mrb[40].mxu1 }
0x37e4   :  { %v5800_v40 = vpop.f32.mrb[41].mxu1 }
0x37e5   :  { %v9019_v23 = vpack.c.bf16 %v8359_v0, %v5800_v40  ;;  %v9773_v0 = vmov 0.0|0.0   ;;  %v7256_v40 = vld [vmem:[#allocation25] sm:$0xff] }
0x37e7   :  { %v8369_v52 = vpop.f32.mrb[42].mxu1  ;;  %9020 = vmatprep.subr.bf16.mxu0 %v9019_v23 }
0x37e8   :  { %v5952_v4 = vpop.f32.mrb[43].mxu1  ;;  %9022 = vmatpush3.bf16.msra.mxu0 %v9019_v23 }
0x37e9   :  { %v9023_v8 = vpack.c.bf16 %v8369_v52, %v5952_v4 }
0x37eb   :  { %8375 = vmatmul.mubr.msk.f32.vlgmr.msra.gmra.mrb[52].mxu0 %vm315_vm0, %v10868_v62  ;;  %9024 = vmatprep.subr.bf16.mxu0 %v9023_v8 }
0x37ec   :  { %9026 = vmatpush3.bf16.msra.mxu0 %v9023_v8  ;;  %8381 = vmatprep.mubr.msk.f32.mxu0 %vm315_vm0, %v10872_v63 }
0x37ed   :  { %8394 = vmatprep.subr.msk.mxu0 %vm6285_vm8, %v6277_v25 }
0x37f3   :  { %8382 = vmatmul.mubr.msk.f32.vlgmr.msra.gmra.mrb[52].mxu0 %vm315_vm0, %v10900_v58 }
0x37f4   :  { %8395 = vmatpush3.msk.msra.mxu0 %vm6285_vm8, %v6277_v25  ;;  %v7368_v25 = vld [vmem:[%s11147_s23 + $0x18] sm:$0xff] }
0x37f5   :  { %8404 = vmatprep.subr.msk.mxu0 %vm6285_vm8, %v6443_v30 }
0x38c6   :  { %v8383_v28 = vpop.f32.mrb[52].mxu0 }
0x38c7   :  { %v6114_v18 = vadd.f32 %v8383_v28, %v10199_v21  ;;  %v6102_v12 = vpop.f32.mrb[53].mxu0  ;;  %v7365_v28 = vld [vmem:[%s11147_s23] sm:$0xff] }
0x38c8   :  { %v6113_v34 = vadd.f32 %v6102_v12, %v10199_v21 }
0x38c9   :  { %v6116_v47 = vmax.f32 %v6114_v18, 0.0  ;;  %v7366_v18 = vld [vmem:[%s11147_s23 + $0x8] sm:$0xff] }
0x38ca   :  { %v6115_v37 = vmax.f32 %v6113_v34, 0.0  ;;  %v7255_v34 = vld [vmem:[#allocation28] sm:$0x3] }
0x38cc   :  { %8386 = vmatprep.mubr.msk.f32.mxu1 %vm5727_vm7, %v6115_v37 }
0x38cd   :  { %8387 = vmatmul.mubr.msk.f32.vlgmr.msra.gmra.mrb[44].mxu1 %vm5727_vm7, %v6116_v47 }
0x38ce   :  { %8391 = vmatprep.mubr.msk.f32.mxu1 %vm5727_vm7, %v6115_v37  ;;  %8390 = vmatpush3.msra.mxu1 %v10842_v36  ;;  %v9047_v37 = vpack.c.bf16 %v7366_v18, %v7365_v28 }
0x38cf   :  { %8399 = vmatprep.subr.msk.mxu1 %vm6285_vm8, %v6364_v29 }
0x38d1   :  { %8392 = vmatmul.mubr.msk.f32.vlgmr.msra.gmra.mrb[46].mxu1 %vm5727_vm7, %v6116_v47  ;;  %v7367_v47 = vld [vmem:[%s11147_s23 + $0x10] sm:$0xff] }
0x38d2   :  { %8400 = vmatpush3.msk.msra.mxu1 %vm6285_vm8, %v6364_v29  ;;  %v9050_v29 = vpack.c.bf16 %v7368_v25, %v7367_v47 }
0x39a0   :  { %v8388_v31 = vpop.f32.mrb[44].mxu1 }
0x39a1   :  { %v6190_v16 = vpop.f32.mrb[45].mxu1 }
0x39a4   :  { %v8393_v19 = vpop.f32.mrb[46].mxu1 }
0x39a5   :  { %v6276_v36 = vmax.f32 %v8388_v31, %v8393_v19  ;;  %v6266_v50 = vpop.f32.mrb[47].mxu1  ;;  %v7450_v31 = vld [vmem:[%s11149_s25 + $0x8] sm:$0xff] }
0x39a6   :  { %v6275_v33 = vmax.f32 %v6190_v16, %v6266_v50  ;;  %v7734_v16 = vld [vmem:[%s11189_s8] ss:$0 sm:$0xff] }
0x39a8   :  { %8396 = vmatprep.mubr.msk.f32.mxu0 %vm6278_vm9, %v6275_v33  ;;  %8401 = vmatprep.mubr.msk.f32.mxu1 %vm6278_vm9, %v6275_v33 }
0x39a9   :  { %8397 = vmatmul.mubr.msk.f32.vlgmr.msra.gmra.mrb[54].mxu0 %vm6278_vm9, %v6276_v36  ;;  %8402 = vmatmul.mubr.msk.f32.vlgmr.msra.gmra.mrb[48].mxu1 %vm6278_vm9, %v6276_v36 }
0x39aa   :  { %8406 = vmatprep.mubr.msk.f32.mxu0 %vm6278_vm9, %v6275_v33  ;;  %8405 = vmatpush3.msk.msra.mxu0 %vm6285_vm8, %v6443_v30  ;;  %v7449_v30 = vld [vmem:[%s11149_s25] sm:$0xff] }
0x39ab   :  { %8413 = vmatprep.mubr.msk.f32.mxu1 %vm315_vm0, %v10833_v32  ;;  %8423 = vmatprep.subr.msk.mxu0 %vm6285_vm8, %v6678_v49  ;;  %v7736_v33 = vld [vmem:[#allocation26] ss:$0 sm:$0xff] }
0x39ad   :  { %8407 = vmatmul.mubr.msk.f32.vlgmr.msra.gmra.mrb[56].mxu0 %vm6278_vm9, %v6276_v36 }
0x39ae   :  { %8424 = vmatpush3.msk.msra.mxu0 %vm6285_vm8, %v6678_v49  ;;  %v7737_v49 = vld [vmem:[#allocation29] ss:$0 sm:$0xff] }
0x39af   :  { %8428 = vmatprep.subr.msk.mxu0 %vm6285_vm8, %v6763_v7 }
0x3a7c   :  { %v8398_v39 = vpop.f32.mrb[54].mxu0 }
0x3a7d   :  { %v6355_v5 = vpop.f32.mrb[55].mxu0 }
0x3a7e   :  { %v9027_v10 = vpack.c.bf16 %v8398_v39, %v6355_v5 }
0x3a80   :  { %v8408_v45 = vpop.f32.mrb[56].mxu0  ;;  %9028 = vmatprep.subr.bf16.mxu1 %v9027_v10 }
0x3a81   :  { %v6513_v48 = vpop.f32.mrb[57].mxu0  ;;  %9030 = vmatpush3.bf16.msra.mxu1 %v9027_v10 }
0x3a82   :  { %v9031_v42 = vpack.c.bf16 %v8408_v45, %v6513_v48  ;;  %v7451_v45 = vld [vmem:[%s11149_s25 + $0x10] sm:$0xff]  ;;  %v7452_v48 = vld [vmem:[%s11149_s25 + $0x18] sm:$0xff] }
0x3a84   :  { %8414 = vmatmul.mubr.msk.f32.vlgmr.msra.gmra.mrb[48].mxu1 %vm315_vm0, %v10868_v62  ;;  %9032 = vmatprep.subr.bf16.mxu1 %v9031_v42 }
0x3a85   :  { %9034 = vmatpush3.bf16.msra.mxu1 %v9031_v42  ;;  %8420 = vmatprep.mubr.msk.f32.mxu1 %vm315_vm0, %v10872_v63  ;;  %v9056_v42 = vpack.c.bf16 %v7452_v48, %v7451_v45 }
0x3a86   :  { %8433 = vmatprep.subr.msk.mxu1 %vm6852_vm10, %v6844_v41 }
0x3a8c   :  { %8421 = vmatmul.mubr.msk.f32.vlgmr.msra.gmra.mrb[48].mxu1 %vm315_vm0, %v10900_v58 }
0x3a8d   :  { %8434 = vmatpush3.msk.msra.mxu1 %vm6852_vm10, %v6844_v41 }
0x3a8e   :  { %8443 = vmatprep.subr.msk.mxu1 %vm6852_vm10, %v7010_v51 }
0x3b5f   :  { %v8422_v53 = vpop.f32.mrb[48].mxu1 }
0x3b60   :  { %v6675_v27 = vadd.f32 %v8422_v53, %v10199_v21  ;;  %v6663_v15 = vpop.f32.mrb[49].mxu1 }
0x3b61   :  { %v6674_v43 = vadd.f32 %v6663_v15, %v10199_v21  ;;  %v7739_v15 = vld [vmem:[#allocation31] ss:$0 sm:$0xff] }
0x3b62   :  { %v6677_v38 = vmax.f32 %v6675_v27, 0.0 }
0x3b63   :  { %v6676_v54 = vmax.f32 %v6674_v43, 0.0 }
0x3b65   :  { %8425 = vmatprep.mubr.msk.f32.mxu0 %vm6278_vm9, %v6676_v54 }
0x3b66   :  { %8426 = vmatmul.mubr.msk.f32.vlgmr.msra.gmra.mrb[58].mxu0 %vm6278_vm9, %v6677_v38 }
0x3b67   :  { %8430 = vmatprep.mubr.msk.f32.mxu0 %vm6278_vm9, %v6676_v54  ;;  %8429 = vmatpush3.msk.msra.mxu0 %vm6285_vm8, %v6763_v7 }
0x3b68   :  { %8438 = vmatprep.subr.msk.mxu0 %vm6852_vm10, %v6931_v44 }
0x3b6a   :  { %8431 = vmatmul.mubr.msk.f32.vlgmr.msra.gmra.mrb[60].mxu0 %vm6278_vm9, %v6677_v38 }
0x3b6b   :  { %8439 = vmatpush3.msk.msra.mxu0 %vm6852_vm10, %v6931_v44 }
0x3c39   :  { %v8427_v56 = vpop.f32.mrb[58].mxu0 }
0x3c3a   :  { %v6754_v57 = vpop.f32.mrb[59].mxu0 }
0x3c3d   :  { %v8432_v1 = vpop.f32.mrb[60].mxu0 }
0x3c3e   :  { %v6843_v55 = vmax.f32 %v8427_v56, %v8432_v1  ;;  %v6833_v60 = vpop.f32.mrb[61].mxu0 }
0x3c3f   :  { %v6842_v61 = vmax.f32 %v6754_v57, %v6833_v60 }
0x3c41   :  { %8435 = vmatprep.mubr.msk.f32.mxu1 %vm6845_vm11, %v6842_v61  ;;  %8440 = vmatprep.mubr.msk.f32.mxu0 %vm6845_vm11, %v6842_v61 }
0x3c42   :  { %8436 = vmatmul.mubr.msk.f32.vlgmr.msra.gmra.mrb[50].mxu1 %vm6845_vm11, %v6843_v55  ;;  %8441 = vmatmul.mubr.msk.f32.vlgmr.msra.gmra.mrb[62].mxu0 %vm6845_vm11, %v6843_v55 }
0x3c43   :  { %8445 = vmatprep.mubr.msk.f32.mxu1 %vm6845_vm11, %v6842_v61  ;;  %8444 = vmatpush3.msk.msra.mxu1 %vm6852_vm10, %v7010_v51 }
0x3c44   :  { %8452 = vmatprep.mubr.msk.f32.mxu0 %vm315_vm0, %v10833_v32  ;;  %v9771_v32 = vmov 0   ;;  %9043 = vmatprep.subr.bf16.mxu1 %v9773_v0 }
0x3c45   :  { %9133 = vset.pattern.permute.xlu1 %v9771_v32  ;;  %9132 = vset.pattern.permute.xlu0 %v9771_v32 }
0x3c46   :  { %8446 = vmatmul.mubr.msk.f32.vlgmr.msra.gmra.mrb[52].mxu1 %vm6845_vm11, %v6843_v55 }
0x3c47   :  { %8466 = vmatprep.mubr.msk.f32.mxu1 %vm9774_vm12, %v9767_v11 }
0x3d15   :  { %v8437_v24 = vpop.f32.mrb[50].mxu1 }
0x3d16   :  { %v6922_v35 = vpop.f32.mrb[51].mxu1 }
0x3d17   :  { %v9035_v2 = vpack.c.bf16 %v8437_v24, %v6922_v35 }
0x3d19   :  { %v8447_v3 = vpop.f32.mrb[52].mxu1  ;;  %9036 = vmatprep.subr.bf16.mxu0 %v9035_v2 }
0x3d1a   :  { %v7080_v6 = vpop.f32.mrb[53].mxu1  ;;  %9038 = vmatpush3.bf16.msra.mxu0 %v9035_v2 }
0x3d1b   :  { %v9039_v9 = vpack.c.bf16 %v8447_v3, %v7080_v6 }
0x3d1d   :  { %8453 = vmatmul.mubr.msk.f32.vlgmr.msra.gmra.mrb[62].mxu0 %vm315_vm0, %v10868_v62  ;;  %9040 = vmatprep.subr.bf16.mxu0 %v9039_v9 }
0x3d1e   :  { %9042 = vmatpush3.bf16.msra.mxu0 %v9039_v9  ;;  %8459 = vmatprep.mubr.msk.f32.mxu0 %vm315_vm0, %v10872_v63 }
0x3d1f   :  { %9052 = vmatprep.subr.bf16.mxu0 %v9773_v0 }
0x3d25   :  { %8460 = vmatmul.mubr.msk.f32.vlgmr.msra.gmra.mrb[62].mxu0 %vm315_vm0, %v10900_v58  ;;  %v7270_v58 = vld [vmem:[%s11188_s21] sm:$0x3] }
0x3d26   :  { %8488 = vmatprep.mubr.msk.f32.mxu0 %vm9774_vm12, %v9767_v11 }
0x3df8   :  { %v8461_v26 = vpop.f32.mrb[62].mxu0 }
0x3df9   :  { %v7242_v13 = vadd.f32 %v8461_v26, %v10199_v21  ;;  %v7230_v46 = vpop.f32.mrb[63].mxu0 }
0x3dfa   :  { %v7241_v14 = vadd.f32 %v7230_v46, %v10199_v21  ;;  %v7257_v21 = vld [vmem:[#allocation25 + $0x8] sm:$0xff] }
0x3dfb   :  { %v7244_v59 = vmax.f32 %v7242_v13, 0.0 }
0x3dfc   :  { %v7243_v20 = vmax.f32 %v7241_v14, 0.0 }
0x3dfd   :  { %7249 = vrot.lane.b32.xlu1 %v7244_v59, %s9772_s19 }
0x3dfe   :  { %7247 = vrot.lane.b32.xlu0 %v7243_v20, %s9772_s19 }
0x3e6f   :  { %v7250_v62 = vpop.permute.xlu1 %7249 }
0x3e70   :  { %v7254_v22 = vmax.f32 %v7244_v59, %v7250_v62  ;;  %v7248_v63 = vpop.permute.xlu0 %7247 }
0x3e71   :  { %v7253_v17 = vmax.f32 %v7243_v20, %v7248_v63 }
0x3e72   :  { %7265 = vperm.xlu1 %9133, %v7254_v22  }
0x3e73   :  { %7260 = vperm.xlu0 %9132, %v7253_v17  }
0x3e76   :  { %7274 = vperm.xlu1 %9133, %v7270_v58  }
0x3ef1   :  { %v7266_v23 = vpop.permute.xlu1 %7265 }
0x3ef2   :  { %v7269_v52 = vmul.f32 %v7266_v23, %v7257_v21  ;;  %v7261_v4 = vpop.permute.xlu0 %7260 }
0x3ef3   :  { %v7268_v8 = vmul.f32 %v7261_v4, %v7256_v40 }
0x3ef5   :  { %v9044_v12 = vpack.c.bf16 %v7269_v52, %v7268_v8  ;;  %v7275_v19 = vpop.permute.xlu1 %7274 }
0x3ef6   :  { %v7283_v36 = vmul.f32 %v7734_v16, %v7275_v19 }
0x3ef7   :  { %9045 = vmatpush3.bf16.msra.mxu1 %v9044_v12 }
0x3ef8   :  { %9046 = vmatprep.subr.bf16.mxu1 %v9773_v0 }
0x3efa   :  { %8467 = vmatmul.mubr.msk.f32.vlgmr.msra.gmra.mrb[54].mxu1 %vm315_vm0, %v7255_v34 }
0x3efb   :  { %9048 = vmatpush3.bf16.msra.mxu1 %v9047_v37  ;;  %8477 = vmatprep.mubr.msk.f32.mxu1 %vm9774_vm12, %v9767_v11  ;;  %v9053_v11 = vpack.c.bf16 %v7450_v31, %v7449_v30 }
0x3efc   :  { %9049 = vmatprep.subr.bf16.mxu1 %v9773_v0 }
0x3efd   :  { %9054 = vmatpush3.bf16.msra.mxu0 %v9053_v11 }
0x3efe   :  { %9055 = vmatprep.subr.bf16.mxu0 %v9773_v0 }
0x3eff   :  { %9051 = vmatpush3.bf16.msra.mxu1 %v9050_v29 }
0x3f01   :  { %9057 = vmatpush3.bf16.msra.mxu0 %v9056_v42 }
0x3fcd   :  { %v7353_v50 = vpop.f32.mrb[54].mxu1 }
0x3fce   :  { %v7354_v39 = vadd.f32 %v7353_v50, %v7283_v36  ;;  %v8468_v5 = vpop.f32.mrb[55].mxu1 }
0x3fd0   :  { %v7364_v10 = vadd.f32 %v7736_v33, %v7354_v39 }
0x3fd2   :  { %8478 = vmatmul.mubr.msk.f32.vlgmr.msra.gmra.mrb[56].mxu1 %vm2751_vm6, %v7364_v10 }
0x40a5   :  { %v7445_v7 = vpop.f32.mrb[56].mxu1 }
0x40a6   :  { %v7446_v53 = vadd.f32 %v7737_v49, %v7445_v7  ;;  %v8479_v27 = vpop.f32.mrb[57].mxu1 }
0x40a8   :  { %8489 = vmatmul.mubr.msk.f32.vlgmr.msra.gmra.mrb[64].mxu0 %vm2751_vm6, %v7446_v53 }
0x417b   :  { %v7529_v43 = vpop.f32.mrb[64].mxu0 }
0x417c   :  { %v7530_v54 = vadd.f32 %v7739_v15, %v7529_v43  ;;  %v8490_v38 = vpop.f32.mrb[65].mxu0 }
0x417e   :  { %7534 = vst.msk [vmem:[#allocation32] sm:$0x3] %vm7533_vm13, %v7530_v54 }
0x417f   :  { %9715 = shalt.err (!%p9712_p0)
}
0x4180   :  { %s11190_s22 = sld [smem:[#allocation56_spill]] }
0x4186   :  { %s9716_s17 = scalar_lea.hbm %s11190_s22, 32 }
0x4187   :  { %p9717_p1 = scmp.ne.s32.totalorder %s11190_s22, %s9716_s17  ;;  %p9720_p2 = scmp.lt.u32.totalorder %s9716_s17, %s11190_s22 }
0x4189   :  { %p9722_p3 = pnand %p9720_p2, %p9717_p1 }
0x418b   :  { %9725 = shalt.err (!%p9722_p3)
}
0x418c   :  { %7544 = dma.vmem_to_hbm [thread:$0]  %s7542_s1, 32, %s11190_s22, [#allocation7]  }
0x418d   :  { %9744 = dma.done.wait [#allocation7], 32  }
0x418e   :  { %9745 = vsyncadd [#allocation7], 4294967264 }
0x418f   :  { %7548 = vsyncpa [#allocation6], 1 }
0x4190   :  { %7549 = vsyncpa [#allocation9], 1 }
0x4191   :  { %7550 = vsyncpa [#allocation12], 1 }
0x4192   :  { %7551 = vsyncpa [#allocation15], 1 }
0x4193   :  { %7552 = vsyncpa [#allocation18], 1 }
0x4194   :  { %7553 = vsyncpa [#allocation21], 1 }
0x4195   :  { %7554 = vsyncpa [#allocation24], 1 }
0x4196   :  { %7555 = vsyncpa [#allocation27], 1 }
0x4197   :  { %7556 = vsyncpa [#allocation30], 1 }
0x4198   :  { %7557 = vsyncpa [#allocation7], 1 }

</bundles_post_ra>
